<compile_context>
chip_gen: v7x
topology: tpu7x:2x2x1
jax: 0.10.0
libtpu: 0.0.40
codegen_flags: <defaults>
</compile_context>

<pallas_src>
import functools

import jax
import jax.numpy as jnp
from jax.experimental import pallas as pl
from jax.experimental.pallas import tpu as pltpu


# ----------------------------------------------------------------------------
# In-kernel helpers
# ----------------------------------------------------------------------------
def _bn_lrelu(y, gamma, beta):
    """Training-mode BatchNorm (biased var, TWO-pass stats) + LeakyReLU(0.2)."""
    mean = jnp.mean(y, axis=0, keepdims=True)
    var = jnp.mean(jnp.square(y - mean), axis=0, keepdims=True)
    z = (y - mean) * jax.lax.rsqrt(var + 1e-5) * gamma + beta
    return jnp.where(z > 0, z, 0.2 * z)


def _gather_patches(src_ref, dst_ref, *, n, h_in, w_in, h_out, w_out, c, k=4, s=2):
    """im2col gather-as-store for a k x k / stride-s conv.

    src_ref: (n*h_in*w_in, c) activation scratch (rows in (n, h, w) order).
    dst_ref: (>= n*h_out*w_out, k*k*c) patch scratch; tap (i, j) lands at lane
             offset (i*k+j)*c.  All offsets are static; the only non-trivial
             access is a stride-s sublane read via pl.ds.
    """
    for nn in range(n):
        for oh in range(h_out):
            m0 = (nn * h_out + oh) * w_out
            for i in range(k):
                row0 = nn * h_in * w_in + (s * oh + i) * w_in
                for j in range(k):
                    c0 = (i * k + j) * c
                    if w_out == 1:
                        rows = src_ref[row0 + j:row0 + j + 1, :]
                    else:
                        rows = src_ref[pl.ds(row0 + j, w_out, stride=s), :]
                    dst_ref[m0:m0 + w_out, c0:c0 + c] = rows


# ----------------------------------------------------------------------------
# The single fused Pallas kernel (whole Critic forward)
# ----------------------------------------------------------------------------
def _critic_kernel(dims,
                   p1_ref, w1_ref, b1_ref, gm1_ref, bt1_ref,
                   w2_ref, b2_ref, gm2_ref, bt2_ref,
                   w3_ref, b3_ref, o_ref,
                   y1_s, pat2_s, y2_s, pat3_s):
    (n, ho1, wo1, ho2, wo2, ho3, wo3, c1, c2) = dims
    m2 = n * ho2 * wo2
    m3 = n * ho3 * wo3

    # ---- Block 1: one im2col matmul + bias + BN + LeakyReLU ----------------
    y = jnp.dot(p1_ref[...], w1_ref[...], preferred_element_type=jnp.float32)
    y1_s[...] = _bn_lrelu(y + b1_ref[...], gm1_ref[...], bt1_ref[...])

    # ---- Block 2: in-kernel im2col (gather-as-store) + ONE long-K matmul ---
    if pat2_s.shape[0] > m2:                      # keep padded rows defined
        pat2_s[m2:, :] = jnp.zeros((pat2_s.shape[0] - m2, pat2_s.shape[1]),
                                   jnp.float32)
    _gather_patches(y1_s, pat2_s, n=n, h_in=ho1, w_in=wo1,
                    h_out=ho2, w_out=wo2, c=c1)
    y = jnp.dot(pat2_s[...].astype(jnp.bfloat16), w2_ref[...],
                preferred_element_type=jnp.float32)
    y2_s[...] = _bn_lrelu(y[:m2] + b2_ref[...], gm2_ref[...], bt2_ref[...])

    # ---- Block 3: in-kernel im2col + ONE tiny matmul + bias (final layer) --
    if pat3_s.shape[0] > m3:
        pat3_s[m3:, :] = jnp.zeros((pat3_s.shape[0] - m3, pat3_s.shape[1]),
                                   jnp.float32)
    _gather_patches(y2_s, pat3_s, n=n, h_in=ho2, w_in=wo2,
                    h_out=ho3, w_out=wo3, c=c2)
    o_ref[...] = (jnp.dot(pat3_s[...].astype(jnp.bfloat16), w3_ref[...],
                          preferred_element_type=jnp.float32) + b3_ref[...])


# ----------------------------------------------------------------------------
# One-time packing of weights (outside the per-call path)
# ----------------------------------------------------------------------------
def _round_up(x, m):
    return (x + m - 1) // m * m


def _pack_conv_weight(w_oihw, c_out_pad=None):
    """PyTorch (Cout, Cin, kh, kw) -> bf16 (kh*kw*Cin, Cout_pad), K order (i,j,c)."""
    co, ci, kh, kw = w_oihw.shape
    cop = co if c_out_pad is None else c_out_pad
    w = jnp.transpose(w_oihw.astype(jnp.float32), (2, 3, 1, 0)).reshape(kh * kw * ci, co)
    w = jnp.pad(w, ((0, 0), (0, cop - co)))
    return w.astype(jnp.bfloat16)


def _pad_row(v, c_pad):
    v = v.astype(jnp.float32)
    return jnp.pad(v, (0, c_pad - v.shape[0]))[None, :]


def prepare_critic(params):
    """Pack params into kernel-ready constants (call once, reuse every forward)."""
    c1 = params["w1"].shape[0]
    c2 = params["w2"].shape[0]
    c3 = params["w3"].shape[0]
    c3p = _round_up(c3, 128)          # only the HBM-stored output is lane-padded
    return {
        "w1": _pack_conv_weight(params["w1"]),
        "b1": _pad_row(params["b1"], c1),
        "gm1": _pad_row(params["gamma1"], c1),
        "bt1": _pad_row(params["beta1"], c1),
        "w2": _pack_conv_weight(params["w2"]),
        "b2": _pad_row(params["b2"], c2),
        "gm2": _pad_row(params["gamma2"], c2),
        "bt2": _pad_row(params["beta2"], c2),
        "w3": _pack_conv_weight(params["w3"], c_out_pad=c3p),
        "b3": _pad_row(params["b3"], c3p),
    }


# ----------------------------------------------------------------------------
# Wrapper: tiny block-1 im2col (Cin=1) + single fused pallas_call
# ----------------------------------------------------------------------------
def _build_p1(image_nchw, k=4, s=2):
    """Block-1 patches straight from NCHW (no NHWC transpose copy for Cin=1)."""
    n, c, h, w = image_nchw.shape
    ho, wo = (h - k) // s + 1, (w - k) // s + 1
    x = image_nchw.astype(jnp.float32)
    cols = []
    for i in range(k):
        for j in range(k):
            cols.append(x[:, :, i:i + s * (ho - 1) + 1:s, j:j + s * (wo - 1) + 1:s])
    p = jnp.stack(cols, axis=-1)                # (N, C, ho, wo, k*k)
    p = jnp.transpose(p, (0, 2, 3, 4, 1))       # (N, ho, wo, k*k, C); no-op move for C=1
    return p.reshape(n * ho * wo, k * k * c).astype(jnp.bfloat16)


@jax.jit
def critic_forward(prep, image_nchw):
    n, cin, h, w = image_nchw.shape
    ho1, wo1 = (h - 4) // 2 + 1, (w - 4) // 2 + 1
    ho2, wo2 = (ho1 - 4) // 2 + 1, (wo1 - 4) // 2 + 1
    ho3, wo3 = (ho2 - 4) // 2 + 1, (wo2 - 4) // 2 + 1

    c1 = prep["w2"].shape[0] // 16              # native block-1 channels (no pad)
    c2 = prep["w3"].shape[0] // 16              # native block-2 channels (no pad)
    c3p = prep["w3"].shape[1]                   # lane-padded output channels (128)
    m1 = n * ho1 * wo1
    m2 = n * ho2 * wo2
    m3 = n * ho3 * wo3
    m2p = _round_up(m2, 8)
    m3p = _round_up(m3, 8)

    p1 = _build_p1(image_nchw)                  # (m1, 16*Cin) bf16

    dims = (n, ho1, wo1, ho2, wo2, ho3, wo3, c1, c2)
    kernel = functools.partial(_critic_kernel, dims)

    args = (p1, prep["w1"], prep["b1"], prep["gm1"], prep["bt1"],
            prep["w2"], prep["b2"], prep["gm2"], prep["bt2"],
            prep["w3"], prep["b3"])

    flops = (2 * m1 * p1.shape[1] * c1
             + 2 * m2p * (16 * c1) * c2
             + 2 * m3p * (16 * c2) * c3p)
    bytes_accessed = sum(int(a.size) * a.dtype.itemsize for a in args) + m3p * c3p * 4
    cost = pl.CostEstimate(flops=int(flops), transcendentals=int(c1 + c2),
                           bytes_accessed=int(bytes_accessed))

    scratch_bytes = (m1 * c1 + m2p * 16 * c1 + m2 * c2 + m3p * 16 * c2) * 4
    vmem_limit = int(min(max(2 * (bytes_accessed + scratch_bytes), 16 * 2**20),
                         100 * 2**20))

    out_pad = pl.pallas_call(
        kernel,
        out_shape=jax.ShapeDtypeStruct((m3p, c3p), jnp.float32),
        in_specs=[pl.BlockSpec(memory_space=pltpu.MemorySpace.VMEM)] * len(args),
        out_specs=pl.BlockSpec(memory_space=pltpu.MemorySpace.VMEM),
        scratch_shapes=[
            pltpu.VMEM((m1, c1), jnp.float32),          # y1 activation
            pltpu.VMEM((m2p, 16 * c1), jnp.float32),    # block-2 im2col patches
            pltpu.VMEM((m2, c2), jnp.float32),          # y2 activation
            pltpu.VMEM((m3p, 16 * c2), jnp.float32),    # block-3 im2col patches
        ],
        compiler_params=pltpu.CompilerParams(vmem_limit_bytes=vmem_limit),
        cost_estimate=cost,
    )(*args)

    # PyTorch: crit_pred.view(len(crit_pred), -1); Cout == 1 so (N, Ho3*Wo3).
    return out_pad[:m3, :1].reshape(n, ho3 * wo3)


# ----------------------------------------------------------------------------
# Parameter init (matches the PyTorch layer shapes) + pure-JAX reference
# ----------------------------------------------------------------------------
def init_critic_params(key, image_channels=1, hidden_dim=64):
    ks = jax.random.split(key, 6)
    dims = [
        (hidden_dim, image_channels),
        (hidden_dim * 2, hidden_dim),
        (1, hidden_dim * 2),
    ]
    params = {}
    for idx, (co, ci) in enumerate(dims, start=1):
        w = 0.02 * jax.random.normal(ks[2 * (idx - 1)], (co, ci, 4, 4), jnp.float32)
        b = 0.02 * jax.random.normal(ks[2 * (idx - 1) + 1], (co,), jnp.float32)
        params[f"w{idx}"] = w
        params[f"b{idx}"] = b
        if idx < 3:
            params[f"gamma{idx}"] = jnp.ones((co,), jnp.float32)
            params[f"beta{idx}"] = jnp.zeros((co,), jnp.float32)
    return params


@jax.jit
def _reference_forward(params, image_nchw):
    def block(x, w, b, gamma=None, beta=None):
        y = jax.lax.conv_general_dilated(
            x, w, (2, 2), "VALID", dimension_numbers=("NCHW", "OIHW", "NCHW"))
        y = y + b[None, :, None, None]
        if gamma is not None:
            mean = jnp.mean(y, axis=(0, 2, 3), keepdims=True)
            var = jnp.mean((y - mean) ** 2, axis=(0, 2, 3), keepdims=True)
            y = (y - mean) * jax.lax.rsqrt(var + 1e-5)
            y = y * gamma[None, :, None, None] + beta[None, :, None, None]
            y = jnp.where(y > 0, y, 0.2 * y)
        return y

    x = image_nchw.astype(jnp.float32)
    y = block(x, params["w1"], params["b1"], params["gamma1"], params["beta1"])
    y = block(y, params["w2"], params["b2"], params["gamma2"], params["beta2"])
    y = block(y, params["w3"], params["b3"])
    return y.reshape(y.shape[0], -1)


if __name__ == "__main__":
    key = jax.random.PRNGKey(0)
    k_param, k_img = jax.random.split(key)

    # Small shapes: batch=2, image_channels=1, 22x22 input, hidden_dim=32.
    # Spatial trace: 22 -> 10 -> 4 -> 1, so the critic output is (N, 1).
    image_channels, hidden_dim = 1, 32
    n, hgt, wid = 2, 22, 22
    params = init_critic_params(k_param, image_channels, hidden_dim)
    image = jax.random.normal(k_img, (n, image_channels, hgt, wid), jnp.float32)

    prep = prepare_critic(params)                # one-time packing
    out = jax.block_until_ready(critic_forward(prep, image))
    assert out.shape == (n, 1), out.shape
    assert bool(jnp.all(jnp.isfinite(out)))

    ref = jax.block_until_ready(_reference_forward(params, image))
    assert jnp.allclose(out, ref, atol=0.08, rtol=0.08), (out, ref)

    print("KERNEL_OK")
</pallas_src>

<mosaic_0001>
module attributes {stable_mosaic.version = 11 : i64} {
  func.func @_critic_kernel(%arg0: memref<200x16xbf16, #tpu.memory_space<vmem>>, %arg1: memref<16x32xbf16, #tpu.memory_space<vmem>>, %arg2: memref<1x32xf32, #tpu.memory_space<vmem>>, %arg3: memref<1x32xf32, #tpu.memory_space<vmem>>, %arg4: memref<1x32xf32, #tpu.memory_space<vmem>>, %arg5: memref<512x64xbf16, #tpu.memory_space<vmem>>, %arg6: memref<1x64xf32, #tpu.memory_space<vmem>>, %arg7: memref<1x64xf32, #tpu.memory_space<vmem>>, %arg8: memref<1x64xf32, #tpu.memory_space<vmem>>, %arg9: memref<1024x128xbf16, #tpu.memory_space<vmem>>, %arg10: memref<1x128xf32, #tpu.memory_space<vmem>>, %arg11: memref<8x128xf32, #tpu.memory_space<vmem>>, %arg12: memref<200x32xf32, #tpu.memory_space<vmem>>, %arg13: memref<32x512xf32, #tpu.memory_space<vmem>>, %arg14: memref<32x64xf32, #tpu.memory_space<vmem>>, %arg15: memref<8x1024xf32, #tpu.memory_space<vmem>>) attributes {dimension_semantics = [], scalar_prefetch = 0 : i64, scratch_operands = 4 : i64, tpu.core_type = #tpu.core_type<tc>} {
    %c0 = arith.constant 0 : index
    %c0_0 = arith.constant 0 : index
    %0 = vector.load %arg0[%c0, %c0_0] : memref<200x16xbf16, #tpu.memory_space<vmem>>, vector<200x16xbf16>
    %c0_1 = arith.constant 0 : index
    %c0_2 = arith.constant 0 : index
    %1 = vector.load %arg1[%c0_1, %c0_2] : memref<16x32xbf16, #tpu.memory_space<vmem>>, vector<16x32xbf16>
    %cst = arith.constant dense<0.000000e+00> : vector<200x32xf32>
    %2 = tpu.matmul %0, %1, %cst {dimension_numbers = #tpu.dot_dimension_numbers<[1], [0], [0], [1], [0, 0, 1, 1], [], []>} : vector<200x16xbf16>, vector<16x32xbf16>, vector<200x32xf32> -> vector<200x32xf32>
    %c0_3 = arith.constant 0 : index
    %c0_4 = arith.constant 0 : index
    %3 = vector.load %arg2[%c0_3, %c0_4] : memref<1x32xf32, #tpu.memory_space<vmem>>, vector<1x32xf32>
    %4 = vector.broadcast %3 : vector<1x32xf32> to vector<200x32xf32>
    %5 = arith.addf %2, %4 : vector<200x32xf32>
    %c0_5 = arith.constant 0 : index
    %c0_6 = arith.constant 0 : index
    %6 = vector.load %arg3[%c0_5, %c0_6] : memref<1x32xf32, #tpu.memory_space<vmem>>, vector<1x32xf32>
    %c0_7 = arith.constant 0 : index
    %c0_8 = arith.constant 0 : index
    %7 = vector.load %arg4[%c0_7, %c0_8] : memref<1x32xf32, #tpu.memory_space<vmem>>, vector<1x32xf32>
    %cst_9 = arith.constant dense<0.000000e+00> : vector<32xf32>
    %8 = vector.multi_reduction <add>, %5, %cst_9 [0] : vector<200x32xf32> to vector<32xf32>
    %9 = vector.shape_cast %8 : vector<32xf32> to vector<1x32xf32>
    %cst_10 = arith.constant 2.000000e+02 : f32
    %10 = vector.broadcast %cst_10 : f32 to vector<1x32xf32>
    %11 = arith.divf %9, %10 : vector<1x32xf32>
    %12 = vector.broadcast %11 : vector<1x32xf32> to vector<200x32xf32>
    %13 = arith.subf %5, %12 : vector<200x32xf32>
    %14 = arith.mulf %13, %13 : vector<200x32xf32>
    %cst_11 = arith.constant dense<0.000000e+00> : vector<32xf32>
    %15 = vector.multi_reduction <add>, %14, %cst_11 [0] : vector<200x32xf32> to vector<32xf32>
    %16 = vector.shape_cast %15 : vector<32xf32> to vector<1x32xf32>
    %cst_12 = arith.constant 2.000000e+02 : f32
    %17 = vector.broadcast %cst_12 : f32 to vector<1x32xf32>
    %18 = arith.divf %16, %17 : vector<1x32xf32>
    %19 = vector.broadcast %11 : vector<1x32xf32> to vector<200x32xf32>
    %20 = arith.subf %5, %19 : vector<200x32xf32>
    %cst_13 = arith.constant 9.99999974E-6 : f32
    %21 = vector.broadcast %cst_13 : f32 to vector<1x32xf32>
    %22 = arith.addf %18, %21 : vector<1x32xf32>
    %23 = math.rsqrt %22 : vector<1x32xf32>
    %24 = vector.broadcast %23 : vector<1x32xf32> to vector<200x32xf32>
    %25 = arith.mulf %20, %24 : vector<200x32xf32>
    %26 = vector.broadcast %6 : vector<1x32xf32> to vector<200x32xf32>
    %27 = arith.mulf %25, %26 : vector<200x32xf32>
    %28 = vector.broadcast %7 : vector<1x32xf32> to vector<200x32xf32>
    %29 = arith.addf %27, %28 : vector<200x32xf32>
    %cst_14 = arith.constant 0.000000e+00 : f32
    %30 = vector.broadcast %cst_14 : f32 to vector<200x32xf32>
    %31 = arith.cmpf ogt, %29, %30 : vector<200x32xf32>
    %cst_15 = arith.constant 2.000000e-01 : f32
    %32 = vector.broadcast %cst_15 : f32 to vector<200x32xf32>
    %33 = arith.mulf %32, %29 : vector<200x32xf32>
    %34 = arith.select %31, %29, %33 : vector<200x32xi1>, vector<200x32xf32>
    %c0_16 = arith.constant 0 : index
    %c0_17 = arith.constant 0 : index
    %35 = vector.load %arg12[%c0_16, %c0_17] : memref<200x32xf32, #tpu.memory_space<vmem>>, vector<200x32xf32>
    tpu.vector_store %arg12[%c0_16, %c0_17], %34 {strides = array<i32>} : memref<200x32xf32, #tpu.memory_space<vmem>>, vector<200x32xf32>,
    %c0_18 = arith.constant 0 : index
    %c0_19 = arith.constant 0 : index
    %36 = tpu.strided_load %arg12[%c0_18, %c0_19] {strides = array<i32: 2, 1>} : memref<200x32xf32, #tpu.memory_space<vmem>>, vector<4x32xf32>
    %c0_20 = arith.constant 0 : index
    %c0_21 = arith.constant 0 : index
    %37 = vector.load %arg13[%c0_20, %c0_21] : memref<32x512xf32, #tpu.memory_space<vmem>>, vector<4x32xf32>
    tpu.vector_store %arg13[%c0_20, %c0_21], %36 {strides = array<i32>} : memref<32x512xf32, #tpu.memory_space<vmem>>, vector<4x32xf32>,
    %c1 = arith.constant 1 : index
    %c0_22 = arith.constant 0 : index
    %38 = tpu.strided_load %arg12[%c1, %c0_22] {strides = array<i32: 2, 1>} : memref<200x32xf32, #tpu.memory_space<vmem>>, vector<4x32xf32>
    %c0_23 = arith.constant 0 : index
    %c32 = arith.constant 32 : index
    %39 = vector.load %arg13[%c0_23, %c32] : memref<32x512xf32, #tpu.memory_space<vmem>>, vector<4x32xf32>
    tpu.vector_store %arg13[%c0_23, %c32], %38 {strides = array<i32>} : memref<32x512xf32, #tpu.memory_space<vmem>>, vector<4x32xf32>,
    %c2 = arith.constant 2 : index
    %c0_24 = arith.constant 0 : index
    %40 = tpu.strided_load %arg12[%c2, %c0_24] {strides = array<i32: 2, 1>} : memref<200x32xf32, #tpu.memory_space<vmem>>, vector<4x32xf32>
    %c0_25 = arith.constant 0 : index
    %c64 = arith.constant 64 : index
    %41 = vector.load %arg13[%c0_25, %c64] : memref<32x512xf32, #tpu.memory_space<vmem>>, vector<4x32xf32>
    tpu.vector_store %arg13[%c0_25, %c64], %40 {strides = array<i32>} : memref<32x512xf32, #tpu.memory_space<vmem>>, vector<4x32xf32>,
    %c3 = arith.constant 3 : index
    %c0_26 = arith.constant 0 : index
    %42 = tpu.strided_load %arg12[%c3, %c0_26] {strides = array<i32: 2, 1>} : memref<200x32xf32, #tpu.memory_space<vmem>>, vector<4x32xf32>
    %c0_27 = arith.constant 0 : index
    %c96 = arith.constant 96 : index
    %43 = vector.load %arg13[%c0_27, %c96] : memref<32x512xf32, #tpu.memory_space<vmem>>, vector<4x32xf32>
    tpu.vector_store %arg13[%c0_27, %c96], %42 {strides = array<i32>} : memref<32x512xf32, #tpu.memory_space<vmem>>, vector<4x32xf32>,
    %c10 = arith.constant 10 : index
    %c0_28 = arith.constant 0 : index
    %44 = tpu.strided_load %arg12[%c10, %c0_28] {strides = array<i32: 2, 1>} : memref<200x32xf32, #tpu.memory_space<vmem>>, vector<4x32xf32>
    %c0_29 = arith.constant 0 : index
    %c128 = arith.constant 128 : index
    %45 = vector.load %arg13[%c0_29, %c128] : memref<32x512xf32, #tpu.memory_space<vmem>>, vector<4x32xf32>
    tpu.vector_store %arg13[%c0_29, %c128], %44 {strides = array<i32>} : memref<32x512xf32, #tpu.memory_space<vmem>>, vector<4x32xf32>,
    %c11 = arith.constant 11 : index
    %c0_30 = arith.constant 0 : index
    %46 = tpu.strided_load %arg12[%c11, %c0_30] {strides = array<i32: 2, 1>} : memref<200x32xf32, #tpu.memory_space<vmem>>, vector<4x32xf32>
    %c0_31 = arith.constant 0 : index
    %c160 = arith.constant 160 : index
    %47 = vector.load %arg13[%c0_31, %c160] : memref<32x512xf32, #tpu.memory_space<vmem>>, vector<4x32xf32>
    tpu.vector_store %arg13[%c0_31, %c160], %46 {strides = array<i32>} : memref<32x512xf32, #tpu.memory_space<vmem>>, vector<4x32xf32>,
    %c12 = arith.constant 12 : index
    %c0_32 = arith.constant 0 : index
    %48 = tpu.strided_load %arg12[%c12, %c0_32] {strides = array<i32: 2, 1>} : memref<200x32xf32, #tpu.memory_space<vmem>>, vector<4x32xf32>
    %c0_33 = arith.constant 0 : index
    %c192 = arith.constant 192 : index
    %49 = vector.load %arg13[%c0_33, %c192] : memref<32x512xf32, #tpu.memory_space<vmem>>, vector<4x32xf32>
    tpu.vector_store %arg13[%c0_33, %c192], %48 {strides = array<i32>} : memref<32x512xf32, #tpu.memory_space<vmem>>, vector<4x32xf32>,
    %c13 = arith.constant 13 : index
    %c0_34 = arith.constant 0 : index
    %50 = tpu.strided_load %arg12[%c13, %c0_34] {strides = array<i32: 2, 1>} : memref<200x32xf32, #tpu.memory_space<vmem>>, vector<4x32xf32>
    %c0_35 = arith.constant 0 : index
    %c224 = arith.constant 224 : index
    %51 = vector.load %arg13[%c0_35, %c224] : memref<32x512xf32, #tpu.memory_space<vmem>>, vector<4x32xf32>
    tpu.vector_store %arg13[%c0_35, %c224], %50 {strides = array<i32>} : memref<32x512xf32, #tpu.memory_space<vmem>>, vector<4x32xf32>,
    %c20 = arith.constant 20 : index
    %c0_36 = arith.constant 0 : index
    %52 = tpu.strided_load %arg12[%c20, %c0_36] {strides = array<i32: 2, 1>} : memref<200x32xf32, #tpu.memory_space<vmem>>, vector<4x32xf32>
    %c0_37 = arith.constant 0 : index
    %c256 = arith.constant 256 : index
    %53 = vector.load %arg13[%c0_37, %c256] : memref<32x512xf32, #tpu.memory_space<vmem>>, vector<4x32xf32>
    tpu.vector_store %arg13[%c0_37, %c256], %52 {strides = array<i32>} : memref<32x512xf32, #tpu.memory_space<vmem>>, vector<4x32xf32>,
    %c21 = arith.constant 21 : index
    %c0_38 = arith.constant 0 : index
    %54 = tpu.strided_load %arg12[%c21, %c0_38] {strides = array<i32: 2, 1>} : memref<200x32xf32, #tpu.memory_space<vmem>>, vector<4x32xf32>
    %c0_39 = arith.constant 0 : index
    %c288 = arith.constant 288 : index
    %55 = vector.load %arg13[%c0_39, %c288] : memref<32x512xf32, #tpu.memory_space<vmem>>, vector<4x32xf32>
    tpu.vector_store %arg13[%c0_39, %c288], %54 {strides = array<i32>} : memref<32x512xf32, #tpu.memory_space<vmem>>, vector<4x32xf32>,
    %c22 = arith.constant 22 : index
    %c0_40 = arith.constant 0 : index
    %56 = tpu.strided_load %arg12[%c22, %c0_40] {strides = array<i32: 2, 1>} : memref<200x32xf32, #tpu.memory_space<vmem>>, vector<4x32xf32>
    %c0_41 = arith.constant 0 : index
    %c320 = arith.constant 320 : index
    %57 = vector.load %arg13[%c0_41, %c320] : memref<32x512xf32, #tpu.memory_space<vmem>>, vector<4x32xf32>
    tpu.vector_store %arg13[%c0_41, %c320], %56 {strides = array<i32>} : memref<32x512xf32, #tpu.memory_space<vmem>>, vector<4x32xf32>,
    %c23 = arith.constant 23 : index
    %c0_42 = arith.constant 0 : index
    %58 = tpu.strided_load %arg12[%c23, %c0_42] {strides = array<i32: 2, 1>} : memref<200x32xf32, #tpu.memory_space<vmem>>, vector<4x32xf32>
    %c0_43 = arith.constant 0 : index
    %c352 = arith.constant 352 : index
    %59 = vector.load %arg13[%c0_43, %c352] : memref<32x512xf32, #tpu.memory_space<vmem>>, vector<4x32xf32>
    tpu.vector_store %arg13[%c0_43, %c352], %58 {strides = array<i32>} : memref<32x512xf32, #tpu.memory_space<vmem>>, vector<4x32xf32>,
    %c30 = arith.constant 30 : index
    %c0_44 = arith.constant 0 : index
    %60 = tpu.strided_load %arg12[%c30, %c0_44] {strides = array<i32: 2, 1>} : memref<200x32xf32, #tpu.memory_space<vmem>>, vector<4x32xf32>
    %c0_45 = arith.constant 0 : index
    %c384 = arith.constant 384 : index
    %61 = vector.load %arg13[%c0_45, %c384] : memref<32x512xf32, #tpu.memory_space<vmem>>, vector<4x32xf32>
    tpu.vector_store %arg13[%c0_45, %c384], %60 {strides = array<i32>} : memref<32x512xf32, #tpu.memory_space<vmem>>, vector<4x32xf32>,
    %c31 = arith.constant 31 : index
    %c0_46 = arith.constant 0 : index
    %62 = tpu.strided_load %arg12[%c31, %c0_46] {strides = array<i32: 2, 1>} : memref<200x32xf32, #tpu.memory_space<vmem>>, vector<4x32xf32>
    %c0_47 = arith.constant 0 : index
    %c416 = arith.constant 416 : index
    %63 = vector.load %arg13[%c0_47, %c416] : memref<32x512xf32, #tpu.memory_space<vmem>>, vector<4x32xf32>
    tpu.vector_store %arg13[%c0_47, %c416], %62 {strides = array<i32>} : memref<32x512xf32, #tpu.memory_space<vmem>>, vector<4x32xf32>,
    %c32_48 = arith.constant 32 : index
    %c0_49 = arith.constant 0 : index
    %64 = tpu.strided_load %arg12[%c32_48, %c0_49] {strides = array<i32: 2, 1>} : memref<200x32xf32, #tpu.memory_space<vmem>>, vector<4x32xf32>
    %c0_50 = arith.constant 0 : index
    %c448 = arith.constant 448 : index
    %65 = vector.load %arg13[%c0_50, %c448] : memref<32x512xf32, #tpu.memory_space<vmem>>, vector<4x32xf32>
    tpu.vector_store %arg13[%c0_50, %c448], %64 {strides = array<i32>} : memref<32x512xf32, #tpu.memory_space<vmem>>, vector<4x32xf32>,
    %c33 = arith.constant 33 : index
    %c0_51 = arith.constant 0 : index
    %66 = tpu.strided_load %arg12[%c33, %c0_51] {strides = array<i32: 2, 1>} : memref<200x32xf32, #tpu.memory_space<vmem>>, vector<4x32xf32>
    %c0_52 = arith.constant 0 : index
    %c480 = arith.constant 480 : index
    %67 = vector.load %arg13[%c0_52, %c480] : memref<32x512xf32, #tpu.memory_space<vmem>>, vector<4x32xf32>
    tpu.vector_store %arg13[%c0_52, %c480], %66 {strides = array<i32>} : memref<32x512xf32, #tpu.memory_space<vmem>>, vector<4x32xf32>,
    %c20_53 = arith.constant 20 : index
    %c0_54 = arith.constant 0 : index
    %68 = tpu.strided_load %arg12[%c20_53, %c0_54] {strides = array<i32: 2, 1>} : memref<200x32xf32, #tpu.memory_space<vmem>>, vector<4x32xf32>
    %c4 = arith.constant 4 : index
    %c0_55 = arith.constant 0 : index
    %69 = vector.load %arg13[%c4, %c0_55] : memref<32x512xf32, #tpu.memory_space<vmem>>, vector<4x32xf32>
    tpu.vector_store %arg13[%c4, %c0_55], %68 {strides = array<i32>} : memref<32x512xf32, #tpu.memory_space<vmem>>, vector<4x32xf32>,
    %c21_56 = arith.constant 21 : index
    %c0_57 = arith.constant 0 : index
    %70 = tpu.strided_load %arg12[%c21_56, %c0_57] {strides = array<i32: 2, 1>} : memref<200x32xf32, #tpu.memory_space<vmem>>, vector<4x32xf32>
    %c4_58 = arith.constant 4 : index
    %c32_59 = arith.constant 32 : index
    %71 = vector.load %arg13[%c4_58, %c32_59] : memref<32x512xf32, #tpu.memory_space<vmem>>, vector<4x32xf32>
    tpu.vector_store %arg13[%c4_58, %c32_59], %70 {strides = array<i32>} : memref<32x512xf32, #tpu.memory_space<vmem>>, vector<4x32xf32>,
    %c22_60 = arith.constant 22 : index
    %c0_61 = arith.constant 0 : index
    %72 = tpu.strided_load %arg12[%c22_60, %c0_61] {strides = array<i32: 2, 1>} : memref<200x32xf32, #tpu.memory_space<vmem>>, vector<4x32xf32>
    %c4_62 = arith.constant 4 : index
    %c64_63 = arith.constant 64 : index
    %73 = vector.load %arg13[%c4_62, %c64_63] : memref<32x512xf32, #tpu.memory_space<vmem>>, vector<4x32xf32>
    tpu.vector_store %arg13[%c4_62, %c64_63], %72 {strides = array<i32>} : memref<32x512xf32, #tpu.memory_space<vmem>>, vector<4x32xf32>,
    %c23_64 = arith.constant 23 : index
    %c0_65 = arith.constant 0 : index
    %74 = tpu.strided_load %arg12[%c23_64, %c0_65] {strides = array<i32: 2, 1>} : memref<200x32xf32, #tpu.memory_space<vmem>>, vector<4x32xf32>
    %c4_66 = arith.constant 4 : index
    %c96_67 = arith.constant 96 : index
    %75 = vector.load %arg13[%c4_66, %c96_67] : memref<32x512xf32, #tpu.memory_space<vmem>>, vector<4x32xf32>
    tpu.vector_store %arg13[%c4_66, %c96_67], %74 {strides = array<i32>} : memref<32x512xf32, #tpu.memory_space<vmem>>, vector<4x32xf32>,
    %c30_68 = arith.constant 30 : index
    %c0_69 = arith.constant 0 : index
    %76 = tpu.strided_load %arg12[%c30_68, %c0_69] {strides = array<i32: 2, 1>} : memref<200x32xf32, #tpu.memory_space<vmem>>, vector<4x32xf32>
    %c4_70 = arith.constant 4 : index
    %c128_71 = arith.constant 128 : index
    %77 = vector.load %arg13[%c4_70, %c128_71] : memref<32x512xf32, #tpu.memory_space<vmem>>, vector<4x32xf32>
    tpu.vector_store %arg13[%c4_70, %c128_71], %76 {strides = array<i32>} : memref<32x512xf32, #tpu.memory_space<vmem>>, vector<4x32xf32>,
    %c31_72 = arith.constant 31 : index
    %c0_73 = arith.constant 0 : index
    %78 = tpu.strided_load %arg12[%c31_72, %c0_73] {strides = array<i32: 2, 1>} : memref<200x32xf32, #tpu.memory_space<vmem>>, vector<4x32xf32>
    %c4_74 = arith.constant 4 : index
    %c160_75 = arith.constant 160 : index
    %79 = vector.load %arg13[%c4_74, %c160_75] : memref<32x512xf32, #tpu.memory_space<vmem>>, vector<4x32xf32>
    tpu.vector_store %arg13[%c4_74, %c160_75], %78 {strides = array<i32>} : memref<32x512xf32, #tpu.memory_space<vmem>>, vector<4x32xf32>,
    %c32_76 = arith.constant 32 : index
    %c0_77 = arith.constant 0 : index
    %80 = tpu.strided_load %arg12[%c32_76, %c0_77] {strides = array<i32: 2, 1>} : memref<200x32xf32, #tpu.memory_space<vmem>>, vector<4x32xf32>
    %c4_78 = arith.constant 4 : index
    %c192_79 = arith.constant 192 : index
    %81 = vector.load %arg13[%c4_78, %c192_79] : memref<32x512xf32, #tpu.memory_space<vmem>>, vector<4x32xf32>
    tpu.vector_store %arg13[%c4_78, %c192_79], %80 {strides = array<i32>} : memref<32x512xf32, #tpu.memory_space<vmem>>, vector<4x32xf32>,
    %c33_80 = arith.constant 33 : index
    %c0_81 = arith.constant 0 : index
    %82 = tpu.strided_load %arg12[%c33_80, %c0_81] {strides = array<i32: 2, 1>} : memref<200x32xf32, #tpu.memory_space<vmem>>, vector<4x32xf32>
    %c4_82 = arith.constant 4 : index
    %c224_83 = arith.constant 224 : index
    %83 = vector.load %arg13[%c4_82, %c224_83] : memref<32x512xf32, #tpu.memory_space<vmem>>, vector<4x32xf32>
    tpu.vector_store %arg13[%c4_82, %c224_83], %82 {strides = array<i32>} : memref<32x512xf32, #tpu.memory_space<vmem>>, vector<4x32xf32>,
    %c40 = arith.constant 40 : index
    %c0_84 = arith.constant 0 : index
    %84 = tpu.strided_load %arg12[%c40, %c0_84] {strides = array<i32: 2, 1>} : memref<200x32xf32, #tpu.memory_space<vmem>>, vector<4x32xf32>
    %c4_85 = arith.constant 4 : index
    %c256_86 = arith.constant 256 : index
    %85 = vector.load %arg13[%c4_85, %c256_86] : memref<32x512xf32, #tpu.memory_space<vmem>>, vector<4x32xf32>
    tpu.vector_store %arg13[%c4_85, %c256_86], %84 {strides = array<i32>} : memref<32x512xf32, #tpu.memory_space<vmem>>, vector<4x32xf32>,
    %c41 = arith.constant 41 : index
    %c0_87 = arith.constant 0 : index
    %86 = tpu.strided_load %arg12[%c41, %c0_87] {strides = array<i32: 2, 1>} : memref<200x32xf32, #tpu.memory_space<vmem>>, vector<4x32xf32>
    %c4_88 = arith.constant 4 : index
    %c288_89 = arith.constant 288 : index
    %87 = vector.load %arg13[%c4_88, %c288_89] : memref<32x512xf32, #tpu.memory_space<vmem>>, vector<4x32xf32>
    tpu.vector_store %arg13[%c4_88, %c288_89], %86 {strides = array<i32>} : memref<32x512xf32, #tpu.memory_space<vmem>>, vector<4x32xf32>,
    %c42 = arith.constant 42 : index
    %c0_90 = arith.constant 0 : index
    %88 = tpu.strided_load %arg12[%c42, %c0_90] {strides = array<i32: 2, 1>} : memref<200x32xf32, #tpu.memory_space<vmem>>, vector<4x32xf32>
    %c4_91 = arith.constant 4 : index
    %c320_92 = arith.constant 320 : index
    %89 = vector.load %arg13[%c4_91, %c320_92] : memref<32x512xf32, #tpu.memory_space<vmem>>, vector<4x32xf32>
    tpu.vector_store %arg13[%c4_91, %c320_92], %88 {strides = array<i32>} : memref<32x512xf32, #tpu.memory_space<vmem>>, vector<4x32xf32>,
    %c43 = arith.constant 43 : index
    %c0_93 = arith.constant 0 : index
    %90 = tpu.strided_load %arg12[%c43, %c0_93] {strides = array<i32: 2, 1>} : memref<200x32xf32, #tpu.memory_space<vmem>>, vector<4x32xf32>
    %c4_94 = arith.constant 4 : index
    %c352_95 = arith.constant 352 : index
    %91 = vector.load %arg13[%c4_94, %c352_95] : memref<32x512xf32, #tpu.memory_space<vmem>>, vector<4x32xf32>
    tpu.vector_store %arg13[%c4_94, %c352_95], %90 {strides = array<i32>} : memref<32x512xf32, #tpu.memory_space<vmem>>, vector<4x32xf32>,
    %c50 = arith.constant 50 : index
    %c0_96 = arith.constant 0 : index
    %92 = tpu.strided_load %arg12[%c50, %c0_96] {strides = array<i32: 2, 1>} : memref<200x32xf32, #tpu.memory_space<vmem>>, vector<4x32xf32>
    %c4_97 = arith.constant 4 : index
    %c384_98 = arith.constant 384 : index
    %93 = vector.load %arg13[%c4_97, %c384_98] : memref<32x512xf32, #tpu.memory_space<vmem>>, vector<4x32xf32>
    tpu.vector_store %arg13[%c4_97, %c384_98], %92 {strides = array<i32>} : memref<32x512xf32, #tpu.memory_space<vmem>>, vector<4x32xf32>,
    %c51 = arith.constant 51 : index
    %c0_99 = arith.constant 0 : index
    %94 = tpu.strided_load %arg12[%c51, %c0_99] {strides = array<i32: 2, 1>} : memref<200x32xf32, #tpu.memory_space<vmem>>, vector<4x32xf32>
    %c4_100 = arith.constant 4 : index
    %c416_101 = arith.constant 416 : index
    %95 = vector.load %arg13[%c4_100, %c416_101] : memref<32x512xf32, #tpu.memory_space<vmem>>, vector<4x32xf32>
    tpu.vector_store %arg13[%c4_100, %c416_101], %94 {strides = array<i32>} : memref<32x512xf32, #tpu.memory_space<vmem>>, vector<4x32xf32>,
    %c52 = arith.constant 52 : index
    %c0_102 = arith.constant 0 : index
    %96 = tpu.strided_load %arg12[%c52, %c0_102] {strides = array<i32: 2, 1>} : memref<200x32xf32, #tpu.memory_space<vmem>>, vector<4x32xf32>
    %c4_103 = arith.constant 4 : index
    %c448_104 = arith.constant 448 : index
    %97 = vector.load %arg13[%c4_103, %c448_104] : memref<32x512xf32, #tpu.memory_space<vmem>>, vector<4x32xf32>
    tpu.vector_store %arg13[%c4_103, %c448_104], %96 {strides = array<i32>} : memref<32x512xf32, #tpu.memory_space<vmem>>, vector<4x32xf32>,
    %c53 = arith.constant 53 : index
    %c0_105 = arith.constant 0 : index
    %98 = tpu.strided_load %arg12[%c53, %c0_105] {strides = array<i32: 2, 1>} : memref<200x32xf32, #tpu.memory_space<vmem>>, vector<4x32xf32>
    %c4_106 = arith.constant 4 : index
    %c480_107 = arith.constant 480 : index
    %99 = vector.load %arg13[%c4_106, %c480_107] : memref<32x512xf32, #tpu.memory_space<vmem>>, vector<4x32xf32>
    tpu.vector_store %arg13[%c4_106, %c480_107], %98 {strides = array<i32>} : memref<32x512xf32, #tpu.memory_space<vmem>>, vector<4x32xf32>,
    %c40_108 = arith.constant 40 : index
    %c0_109 = arith.constant 0 : index
    %100 = tpu.strided_load %arg12[%c40_108, %c0_109] {strides = array<i32: 2, 1>} : memref<200x32xf32, #tpu.memory_space<vmem>>, vector<4x32xf32>
    %c8 = arith.constant 8 : index
    %c0_110 = arith.constant 0 : index
    %101 = vector.load %arg13[%c8, %c0_110] : memref<32x512xf32, #tpu.memory_space<vmem>>, vector<4x32xf32>
    tpu.vector_store %arg13[%c8, %c0_110], %100 {strides = array<i32>} : memref<32x512xf32, #tpu.memory_space<vmem>>, vector<4x32xf32>,
    %c41_111 = arith.constant 41 : index
    %c0_112 = arith.constant 0 : index
    %102 = tpu.strided_load %arg12[%c41_111, %c0_112] {strides = array<i32: 2, 1>} : memref<200x32xf32, #tpu.memory_space<vmem>>, vector<4x32xf32>
    %c8_113 = arith.constant 8 : index
    %c32_114 = arith.constant 32 : index
    %103 = vector.load %arg13[%c8_113, %c32_114] : memref<32x512xf32, #tpu.memory_space<vmem>>, vector<4x32xf32>
    tpu.vector_store %arg13[%c8_113, %c32_114], %102 {strides = array<i32>} : memref<32x512xf32, #tpu.memory_space<vmem>>, vector<4x32xf32>,
    %c42_115 = arith.constant 42 : index
    %c0_116 = arith.constant 0 : index
    %104 = tpu.strided_load %arg12[%c42_115, %c0_116] {strides = array<i32: 2, 1>} : memref<200x32xf32, #tpu.memory_space<vmem>>, vector<4x32xf32>
    %c8_117 = arith.constant 8 : index
    %c64_118 = arith.constant 64 : index
    %105 = vector.load %arg13[%c8_117, %c64_118] : memref<32x512xf32, #tpu.memory_space<vmem>>, vector<4x32xf32>
    tpu.vector_store %arg13[%c8_117, %c64_118], %104 {strides = array<i32>} : memref<32x512xf32, #tpu.memory_space<vmem>>, vector<4x32xf32>,
    %c43_119 = arith.constant 43 : index
    %c0_120 = arith.constant 0 : index
    %106 = tpu.strided_load %arg12[%c43_119, %c0_120] {strides = array<i32: 2, 1>} : memref<200x32xf32, #tpu.memory_space<vmem>>, vector<4x32xf32>
    %c8_121 = arith.constant 8 : index
    %c96_122 = arith.constant 96 : index
    %107 = vector.load %arg13[%c8_121, %c96_122] : memref<32x512xf32, #tpu.memory_space<vmem>>, vector<4x32xf32>
    tpu.vector_store %arg13[%c8_121, %c96_122], %106 {strides = array<i32>} : memref<32x512xf32, #tpu.memory_space<vmem>>, vector<4x32xf32>,
    %c50_123 = arith.constant 50 : index
    %c0_124 = arith.constant 0 : index
    %108 = tpu.strided_load %arg12[%c50_123, %c0_124] {strides = array<i32: 2, 1>} : memref<200x32xf32, #tpu.memory_space<vmem>>, vector<4x32xf32>
    %c8_125 = arith.constant 8 : index
    %c128_126 = arith.constant 128 : index
    %109 = vector.load %arg13[%c8_125, %c128_126] : memref<32x512xf32, #tpu.memory_space<vmem>>, vector<4x32xf32>
    tpu.vector_store %arg13[%c8_125, %c128_126], %108 {strides = array<i32>} : memref<32x512xf32, #tpu.memory_space<vmem>>, vector<4x32xf32>,
    %c51_127 = arith.constant 51 : index
    %c0_128 = arith.constant 0 : index
    %110 = tpu.strided_load %arg12[%c51_127, %c0_128] {strides = array<i32: 2, 1>} : memref<200x32xf32, #tpu.memory_space<vmem>>, vector<4x32xf32>
    %c8_129 = arith.constant 8 : index
    %c160_130 = arith.constant 160 : index
    %111 = vector.load %arg13[%c8_129, %c160_130] : memref<32x512xf32, #tpu.memory_space<vmem>>, vector<4x32xf32>
    tpu.vector_store %arg13[%c8_129, %c160_130], %110 {strides = array<i32>} : memref<32x512xf32, #tpu.memory_space<vmem>>, vector<4x32xf32>,
    %c52_131 = arith.constant 52 : index
    %c0_132 = arith.constant 0 : index
    %112 = tpu.strided_load %arg12[%c52_131, %c0_132] {strides = array<i32: 2, 1>} : memref<200x32xf32, #tpu.memory_space<vmem>>, vector<4x32xf32>
    %c8_133 = arith.constant 8 : index
    %c192_134 = arith.constant 192 : index
    %113 = vector.load %arg13[%c8_133, %c192_134] : memref<32x512xf32, #tpu.memory_space<vmem>>, vector<4x32xf32>
    tpu.vector_store %arg13[%c8_133, %c192_134], %112 {strides = array<i32>} : memref<32x512xf32, #tpu.memory_space<vmem>>, vector<4x32xf32>,
    %c53_135 = arith.constant 53 : index
    %c0_136 = arith.constant 0 : index
    %114 = tpu.strided_load %arg12[%c53_135, %c0_136] {strides = array<i32: 2, 1>} : memref<200x32xf32, #tpu.memory_space<vmem>>, vector<4x32xf32>
    %c8_137 = arith.constant 8 : index
    %c224_138 = arith.constant 224 : index
    %115 = vector.load %arg13[%c8_137, %c224_138] : memref<32x512xf32, #tpu.memory_space<vmem>>, vector<4x32xf32>
    tpu.vector_store %arg13[%c8_137, %c224_138], %114 {strides = array<i32>} : memref<32x512xf32, #tpu.memory_space<vmem>>, vector<4x32xf32>,
    %c60 = arith.constant 60 : index
    %c0_139 = arith.constant 0 : index
    %116 = tpu.strided_load %arg12[%c60, %c0_139] {strides = array<i32: 2, 1>} : memref<200x32xf32, #tpu.memory_space<vmem>>, vector<4x32xf32>
    %c8_140 = arith.constant 8 : index
    %c256_141 = arith.constant 256 : index
    %117 = vector.load %arg13[%c8_140, %c256_141] : memref<32x512xf32, #tpu.memory_space<vmem>>, vector<4x32xf32>
    tpu.vector_store %arg13[%c8_140, %c256_141], %116 {strides = array<i32>} : memref<32x512xf32, #tpu.memory_space<vmem>>, vector<4x32xf32>,
    %c61 = arith.constant 61 : index
    %c0_142 = arith.constant 0 : index
    %118 = tpu.strided_load %arg12[%c61, %c0_142] {strides = array<i32: 2, 1>} : memref<200x32xf32, #tpu.memory_space<vmem>>, vector<4x32xf32>
    %c8_143 = arith.constant 8 : index
    %c288_144 = arith.constant 288 : index
    %119 = vector.load %arg13[%c8_143, %c288_144] : memref<32x512xf32, #tpu.memory_space<vmem>>, vector<4x32xf32>
    tpu.vector_store %arg13[%c8_143, %c288_144], %118 {strides = array<i32>} : memref<32x512xf32, #tpu.memory_space<vmem>>, vector<4x32xf32>,
    %c62 = arith.constant 62 : index
    %c0_145 = arith.constant 0 : index
    %120 = tpu.strided_load %arg12[%c62, %c0_145] {strides = array<i32: 2, 1>} : memref<200x32xf32, #tpu.memory_space<vmem>>, vector<4x32xf32>
    %c8_146 = arith.constant 8 : index
    %c320_147 = arith.constant 320 : index
    %121 = vector.load %arg13[%c8_146, %c320_147] : memref<32x512xf32, #tpu.memory_space<vmem>>, vector<4x32xf32>
    tpu.vector_store %arg13[%c8_146, %c320_147], %120 {strides = array<i32>} : memref<32x512xf32, #tpu.memory_space<vmem>>, vector<4x32xf32>,
    %c63 = arith.constant 63 : index
    %c0_148 = arith.constant 0 : index
    %122 = tpu.strided_load %arg12[%c63, %c0_148] {strides = array<i32: 2, 1>} : memref<200x32xf32, #tpu.memory_space<vmem>>, vector<4x32xf32>
    %c8_149 = arith.constant 8 : index
    %c352_150 = arith.constant 352 : index
    %123 = vector.load %arg13[%c8_149, %c352_150] : memref<32x512xf32, #tpu.memory_space<vmem>>, vector<4x32xf32>
    tpu.vector_store %arg13[%c8_149, %c352_150], %122 {strides = array<i32>} : memref<32x512xf32, #tpu.memory_space<vmem>>, vector<4x32xf32>,
    %c70 = arith.constant 70 : index
    %c0_151 = arith.constant 0 : index
    %124 = tpu.strided_load %arg12[%c70, %c0_151] {strides = array<i32: 2, 1>} : memref<200x32xf32, #tpu.memory_space<vmem>>, vector<4x32xf32>
    %c8_152 = arith.constant 8 : index
    %c384_153 = arith.constant 384 : index
    %125 = vector.load %arg13[%c8_152, %c384_153] : memref<32x512xf32, #tpu.memory_space<vmem>>, vector<4x32xf32>
    tpu.vector_store %arg13[%c8_152, %c384_153], %124 {strides = array<i32>} : memref<32x512xf32, #tpu.memory_space<vmem>>, vector<4x32xf32>,
    %c71 = arith.constant 71 : index
    %c0_154 = arith.constant 0 : index
    %126 = tpu.strided_load %arg12[%c71, %c0_154] {strides = array<i32: 2, 1>} : memref<200x32xf32, #tpu.memory_space<vmem>>, vector<4x32xf32>
    %c8_155 = arith.constant 8 : index
    %c416_156 = arith.constant 416 : index
    %127 = vector.load %arg13[%c8_155, %c416_156] : memref<32x512xf32, #tpu.memory_space<vmem>>, vector<4x32xf32>
    tpu.vector_store %arg13[%c8_155, %c416_156], %126 {strides = array<i32>} : memref<32x512xf32, #tpu.memory_space<vmem>>, vector<4x32xf32>,
    %c72 = arith.constant 72 : index
    %c0_157 = arith.constant 0 : index
    %128 = tpu.strided_load %arg12[%c72, %c0_157] {strides = array<i32: 2, 1>} : memref<200x32xf32, #tpu.memory_space<vmem>>, vector<4x32xf32>
    %c8_158 = arith.constant 8 : index
    %c448_159 = arith.constant 448 : index
    %129 = vector.load %arg13[%c8_158, %c448_159] : memref<32x512xf32, #tpu.memory_space<vmem>>, vector<4x32xf32>
    tpu.vector_store %arg13[%c8_158, %c448_159], %128 {strides = array<i32>} : memref<32x512xf32, #tpu.memory_space<vmem>>, vector<4x32xf32>,
    %c73 = arith.constant 73 : index
    %c0_160 = arith.constant 0 : index
    %130 = tpu.strided_load %arg12[%c73, %c0_160] {strides = array<i32: 2, 1>} : memref<200x32xf32, #tpu.memory_space<vmem>>, vector<4x32xf32>
    %c8_161 = arith.constant 8 : index
    %c480_162 = arith.constant 480 : index
    %131 = vector.load %arg13[%c8_161, %c480_162] : memref<32x512xf32, #tpu.memory_space<vmem>>, vector<4x32xf32>
    tpu.vector_store %arg13[%c8_161, %c480_162], %130 {strides = array<i32>} : memref<32x512xf32, #tpu.memory_space<vmem>>, vector<4x32xf32>,
    %c60_163 = arith.constant 60 : index
    %c0_164 = arith.constant 0 : index
    %132 = tpu.strided_load %arg12[%c60_163, %c0_164] {strides = array<i32: 2, 1>} : memref<200x32xf32, #tpu.memory_space<vmem>>, vector<4x32xf32>
    %c12_165 = arith.constant 12 : index
    %c0_166 = arith.constant 0 : index
    %133 = vector.load %arg13[%c12_165, %c0_166] : memref<32x512xf32, #tpu.memory_space<vmem>>, vector<4x32xf32>
    tpu.vector_store %arg13[%c12_165, %c0_166], %132 {strides = array<i32>} : memref<32x512xf32, #tpu.memory_space<vmem>>, vector<4x32xf32>,
    %c61_167 = arith.constant 61 : index
    %c0_168 = arith.constant 0 : index
    %134 = tpu.strided_load %arg12[%c61_167, %c0_168] {strides = array<i32: 2, 1>} : memref<200x32xf32, #tpu.memory_space<vmem>>, vector<4x32xf32>
    %c12_169 = arith.constant 12 : index
    %c32_170 = arith.constant 32 : index
    %135 = vector.load %arg13[%c12_169, %c32_170] : memref<32x512xf32, #tpu.memory_space<vmem>>, vector<4x32xf32>
    tpu.vector_store %arg13[%c12_169, %c32_170], %134 {strides = array<i32>} : memref<32x512xf32, #tpu.memory_space<vmem>>, vector<4x32xf32>,
    %c62_171 = arith.constant 62 : index
    %c0_172 = arith.constant 0 : index
    %136 = tpu.strided_load %arg12[%c62_171, %c0_172] {strides = array<i32: 2, 1>} : memref<200x32xf32, #tpu.memory_space<vmem>>, vector<4x32xf32>
    %c12_173 = arith.constant 12 : index
    %c64_174 = arith.constant 64 : index
    %137 = vector.load %arg13[%c12_173, %c64_174] : memref<32x512xf32, #tpu.memory_space<vmem>>, vector<4x32xf32>
    tpu.vector_store %arg13[%c12_173, %c64_174], %136 {strides = array<i32>} : memref<32x512xf32, #tpu.memory_space<vmem>>, vector<4x32xf32>,
    %c63_175 = arith.constant 63 : index
    %c0_176 = arith.constant 0 : index
    %138 = tpu.strided_load %arg12[%c63_175, %c0_176] {strides = array<i32: 2, 1>} : memref<200x32xf32, #tpu.memory_space<vmem>>, vector<4x32xf32>
    %c12_177 = arith.constant 12 : index
    %c96_178 = arith.constant 96 : index
    %139 = vector.load %arg13[%c12_177, %c96_178] : memref<32x512xf32, #tpu.memory_space<vmem>>, vector<4x32xf32>
    tpu.vector_store %arg13[%c12_177, %c96_178], %138 {strides = array<i32>} : memref<32x512xf32, #tpu.memory_space<vmem>>, vector<4x32xf32>,
    %c70_179 = arith.constant 70 : index
    %c0_180 = arith.constant 0 : index
    %140 = tpu.strided_load %arg12[%c70_179, %c0_180] {strides = array<i32: 2, 1>} : memref<200x32xf32, #tpu.memory_space<vmem>>, vector<4x32xf32>
    %c12_181 = arith.constant 12 : index
    %c128_182 = arith.constant 128 : index
    %141 = vector.load %arg13[%c12_181, %c128_182] : memref<32x512xf32, #tpu.memory_space<vmem>>, vector<4x32xf32>
    tpu.vector_store %arg13[%c12_181, %c128_182], %140 {strides = array<i32>} : memref<32x512xf32, #tpu.memory_space<vmem>>, vector<4x32xf32>,
    %c71_183 = arith.constant 71 : index
    %c0_184 = arith.constant 0 : index
    %142 = tpu.strided_load %arg12[%c71_183, %c0_184] {strides = array<i32: 2, 1>} : memref<200x32xf32, #tpu.memory_space<vmem>>, vector<4x32xf32>
    %c12_185 = arith.constant 12 : index
    %c160_186 = arith.constant 160 : index
    %143 = vector.load %arg13[%c12_185, %c160_186] : memref<32x512xf32, #tpu.memory_space<vmem>>, vector<4x32xf32>
    tpu.vector_store %arg13[%c12_185, %c160_186], %142 {strides = array<i32>} : memref<32x512xf32, #tpu.memory_space<vmem>>, vector<4x32xf32>,
    %c72_187 = arith.constant 72 : index
    %c0_188 = arith.constant 0 : index
    %144 = tpu.strided_load %arg12[%c72_187, %c0_188] {strides = array<i32: 2, 1>} : memref<200x32xf32, #tpu.memory_space<vmem>>, vector<4x32xf32>
    %c12_189 = arith.constant 12 : index
    %c192_190 = arith.constant 192 : index
    %145 = vector.load %arg13[%c12_189, %c192_190] : memref<32x512xf32, #tpu.memory_space<vmem>>, vector<4x32xf32>
    tpu.vector_store %arg13[%c12_189, %c192_190], %144 {strides = array<i32>} : memref<32x512xf32, #tpu.memory_space<vmem>>, vector<4x32xf32>,
    %c73_191 = arith.constant 73 : index
    %c0_192 = arith.constant 0 : index
    %146 = tpu.strided_load %arg12[%c73_191, %c0_192] {strides = array<i32: 2, 1>} : memref<200x32xf32, #tpu.memory_space<vmem>>, vector<4x32xf32>
    %c12_193 = arith.constant 12 : index
    %c224_194 = arith.constant 224 : index
    %147 = vector.load %arg13[%c12_193, %c224_194] : memref<32x512xf32, #tpu.memory_space<vmem>>, vector<4x32xf32>
    tpu.vector_store %arg13[%c12_193, %c224_194], %146 {strides = array<i32>} : memref<32x512xf32, #tpu.memory_space<vmem>>, vector<4x32xf32>,
    %c80 = arith.constant 80 : index
    %c0_195 = arith.constant 0 : index
    %148 = tpu.strided_load %arg12[%c80, %c0_195] {strides = array<i32: 2, 1>} : memref<200x32xf32, #tpu.memory_space<vmem>>, vector<4x32xf32>
    %c12_196 = arith.constant 12 : index
    %c256_197 = arith.constant 256 : index
    %149 = vector.load %arg13[%c12_196, %c256_197] : memref<32x512xf32, #tpu.memory_space<vmem>>, vector<4x32xf32>
    tpu.vector_store %arg13[%c12_196, %c256_197], %148 {strides = array<i32>} : memref<32x512xf32, #tpu.memory_space<vmem>>, vector<4x32xf32>,
    %c81 = arith.constant 81 : index
    %c0_198 = arith.constant 0 : index
    %150 = tpu.strided_load %arg12[%c81, %c0_198] {strides = array<i32: 2, 1>} : memref<200x32xf32, #tpu.memory_space<vmem>>, vector<4x32xf32>
    %c12_199 = arith.constant 12 : index
    %c288_200 = arith.constant 288 : index
    %151 = vector.load %arg13[%c12_199, %c288_200] : memref<32x512xf32, #tpu.memory_space<vmem>>, vector<4x32xf32>
    tpu.vector_store %arg13[%c12_199, %c288_200], %150 {strides = array<i32>} : memref<32x512xf32, #tpu.memory_space<vmem>>, vector<4x32xf32>,
    %c82 = arith.constant 82 : index
    %c0_201 = arith.constant 0 : index
    %152 = tpu.strided_load %arg12[%c82, %c0_201] {strides = array<i32: 2, 1>} : memref<200x32xf32, #tpu.memory_space<vmem>>, vector<4x32xf32>
    %c12_202 = arith.constant 12 : index
    %c320_203 = arith.constant 320 : index
    %153 = vector.load %arg13[%c12_202, %c320_203] : memref<32x512xf32, #tpu.memory_space<vmem>>, vector<4x32xf32>
    tpu.vector_store %arg13[%c12_202, %c320_203], %152 {strides = array<i32>} : memref<32x512xf32, #tpu.memory_space<vmem>>, vector<4x32xf32>,
    %c83 = arith.constant 83 : index
    %c0_204 = arith.constant 0 : index
    %154 = tpu.strided_load %arg12[%c83, %c0_204] {strides = array<i32: 2, 1>} : memref<200x32xf32, #tpu.memory_space<vmem>>, vector<4x32xf32>
    %c12_205 = arith.constant 12 : index
    %c352_206 = arith.constant 352 : index
    %155 = vector.load %arg13[%c12_205, %c352_206] : memref<32x512xf32, #tpu.memory_space<vmem>>, vector<4x32xf32>
    tpu.vector_store %arg13[%c12_205, %c352_206], %154 {strides = array<i32>} : memref<32x512xf32, #tpu.memory_space<vmem>>, vector<4x32xf32>,
    %c90 = arith.constant 90 : index
    %c0_207 = arith.constant 0 : index
    %156 = tpu.strided_load %arg12[%c90, %c0_207] {strides = array<i32: 2, 1>} : memref<200x32xf32, #tpu.memory_space<vmem>>, vector<4x32xf32>
    %c12_208 = arith.constant 12 : index
    %c384_209 = arith.constant 384 : index
    %157 = vector.load %arg13[%c12_208, %c384_209] : memref<32x512xf32, #tpu.memory_space<vmem>>, vector<4x32xf32>
    tpu.vector_store %arg13[%c12_208, %c384_209], %156 {strides = array<i32>} : memref<32x512xf32, #tpu.memory_space<vmem>>, vector<4x32xf32>,
    %c91 = arith.constant 91 : index
    %c0_210 = arith.constant 0 : index
    %158 = tpu.strided_load %arg12[%c91, %c0_210] {strides = array<i32: 2, 1>} : memref<200x32xf32, #tpu.memory_space<vmem>>, vector<4x32xf32>
    %c12_211 = arith.constant 12 : index
    %c416_212 = arith.constant 416 : index
    %159 = vector.load %arg13[%c12_211, %c416_212] : memref<32x512xf32, #tpu.memory_space<vmem>>, vector<4x32xf32>
    tpu.vector_store %arg13[%c12_211, %c416_212], %158 {strides = array<i32>} : memref<32x512xf32, #tpu.memory_space<vmem>>, vector<4x32xf32>,
    %c92 = arith.constant 92 : index
    %c0_213 = arith.constant 0 : index
    %160 = tpu.strided_load %arg12[%c92, %c0_213] {strides = array<i32: 2, 1>} : memref<200x32xf32, #tpu.memory_space<vmem>>, vector<4x32xf32>
    %c12_214 = arith.constant 12 : index
    %c448_215 = arith.constant 448 : index
    %161 = vector.load %arg13[%c12_214, %c448_215] : memref<32x512xf32, #tpu.memory_space<vmem>>, vector<4x32xf32>
    tpu.vector_store %arg13[%c12_214, %c448_215], %160 {strides = array<i32>} : memref<32x512xf32, #tpu.memory_space<vmem>>, vector<4x32xf32>,
    %c93 = arith.constant 93 : index
    %c0_216 = arith.constant 0 : index
    %162 = tpu.strided_load %arg12[%c93, %c0_216] {strides = array<i32: 2, 1>} : memref<200x32xf32, #tpu.memory_space<vmem>>, vector<4x32xf32>
    %c12_217 = arith.constant 12 : index
    %c480_218 = arith.constant 480 : index
    %163 = vector.load %arg13[%c12_217, %c480_218] : memref<32x512xf32, #tpu.memory_space<vmem>>, vector<4x32xf32>
    tpu.vector_store %arg13[%c12_217, %c480_218], %162 {strides = array<i32>} : memref<32x512xf32, #tpu.memory_space<vmem>>, vector<4x32xf32>,
    %c100 = arith.constant 100 : index
    %c0_219 = arith.constant 0 : index
    %164 = tpu.strided_load %arg12[%c100, %c0_219] {strides = array<i32: 2, 1>} : memref<200x32xf32, #tpu.memory_space<vmem>>, vector<4x32xf32>
    %c16 = arith.constant 16 : index
    %c0_220 = arith.constant 0 : index
    %165 = vector.load %arg13[%c16, %c0_220] : memref<32x512xf32, #tpu.memory_space<vmem>>, vector<4x32xf32>
    tpu.vector_store %arg13[%c16, %c0_220], %164 {strides = array<i32>} : memref<32x512xf32, #tpu.memory_space<vmem>>, vector<4x32xf32>,
    %c101 = arith.constant 101 : index
    %c0_221 = arith.constant 0 : index
    %166 = tpu.strided_load %arg12[%c101, %c0_221] {strides = array<i32: 2, 1>} : memref<200x32xf32, #tpu.memory_space<vmem>>, vector<4x32xf32>
    %c16_222 = arith.constant 16 : index
    %c32_223 = arith.constant 32 : index
    %167 = vector.load %arg13[%c16_222, %c32_223] : memref<32x512xf32, #tpu.memory_space<vmem>>, vector<4x32xf32>
    tpu.vector_store %arg13[%c16_222, %c32_223], %166 {strides = array<i32>} : memref<32x512xf32, #tpu.memory_space<vmem>>, vector<4x32xf32>,
    %c102 = arith.constant 102 : index
    %c0_224 = arith.constant 0 : index
    %168 = tpu.strided_load %arg12[%c102, %c0_224] {strides = array<i32: 2, 1>} : memref<200x32xf32, #tpu.memory_space<vmem>>, vector<4x32xf32>
    %c16_225 = arith.constant 16 : index
    %c64_226 = arith.constant 64 : index
    %169 = vector.load %arg13[%c16_225, %c64_226] : memref<32x512xf32, #tpu.memory_space<vmem>>, vector<4x32xf32>
    tpu.vector_store %arg13[%c16_225, %c64_226], %168 {strides = array<i32>} : memref<32x512xf32, #tpu.memory_space<vmem>>, vector<4x32xf32>,
    %c103 = arith.constant 103 : index
    %c0_227 = arith.constant 0 : index
    %170 = tpu.strided_load %arg12[%c103, %c0_227] {strides = array<i32: 2, 1>} : memref<200x32xf32, #tpu.memory_space<vmem>>, vector<4x32xf32>
    %c16_228 = arith.constant 16 : index
    %c96_229 = arith.constant 96 : index
    %171 = vector.load %arg13[%c16_228, %c96_229] : memref<32x512xf32, #tpu.memory_space<vmem>>, vector<4x32xf32>
    tpu.vector_store %arg13[%c16_228, %c96_229], %170 {strides = array<i32>} : memref<32x512xf32, #tpu.memory_space<vmem>>, vector<4x32xf32>,
    %c110 = arith.constant 110 : index
    %c0_230 = arith.constant 0 : index
    %172 = tpu.strided_load %arg12[%c110, %c0_230] {strides = array<i32: 2, 1>} : memref<200x32xf32, #tpu.memory_space<vmem>>, vector<4x32xf32>
    %c16_231 = arith.constant 16 : index
    %c128_232 = arith.constant 128 : index
    %173 = vector.load %arg13[%c16_231, %c128_232] : memref<32x512xf32, #tpu.memory_space<vmem>>, vector<4x32xf32>
    tpu.vector_store %arg13[%c16_231, %c128_232], %172 {strides = array<i32>} : memref<32x512xf32, #tpu.memory_space<vmem>>, vector<4x32xf32>,
    %c111 = arith.constant 111 : index
    %c0_233 = arith.constant 0 : index
    %174 = tpu.strided_load %arg12[%c111, %c0_233] {strides = array<i32: 2, 1>} : memref<200x32xf32, #tpu.memory_space<vmem>>, vector<4x32xf32>
    %c16_234 = arith.constant 16 : index
    %c160_235 = arith.constant 160 : index
    %175 = vector.load %arg13[%c16_234, %c160_235] : memref<32x512xf32, #tpu.memory_space<vmem>>, vector<4x32xf32>
    tpu.vector_store %arg13[%c16_234, %c160_235], %174 {strides = array<i32>} : memref<32x512xf32, #tpu.memory_space<vmem>>, vector<4x32xf32>,
    %c112 = arith.constant 112 : index
    %c0_236 = arith.constant 0 : index
    %176 = tpu.strided_load %arg12[%c112, %c0_236] {strides = array<i32: 2, 1>} : memref<200x32xf32, #tpu.memory_space<vmem>>, vector<4x32xf32>
    %c16_237 = arith.constant 16 : index
    %c192_238 = arith.constant 192 : index
    %177 = vector.load %arg13[%c16_237, %c192_238] : memref<32x512xf32, #tpu.memory_space<vmem>>, vector<4x32xf32>
    tpu.vector_store %arg13[%c16_237, %c192_238], %176 {strides = array<i32>} : memref<32x512xf32, #tpu.memory_space<vmem>>, vector<4x32xf32>,
    %c113 = arith.constant 113 : index
    %c0_239 = arith.constant 0 : index
    %178 = tpu.strided_load %arg12[%c113, %c0_239] {strides = array<i32: 2, 1>} : memref<200x32xf32, #tpu.memory_space<vmem>>, vector<4x32xf32>
    %c16_240 = arith.constant 16 : index
    %c224_241 = arith.constant 224 : index
    %179 = vector.load %arg13[%c16_240, %c224_241] : memref<32x512xf32, #tpu.memory_space<vmem>>, vector<4x32xf32>
    tpu.vector_store %arg13[%c16_240, %c224_241], %178 {strides = array<i32>} : memref<32x512xf32, #tpu.memory_space<vmem>>, vector<4x32xf32>,
    %c120 = arith.constant 120 : index
    %c0_242 = arith.constant 0 : index
    %180 = tpu.strided_load %arg12[%c120, %c0_242] {strides = array<i32: 2, 1>} : memref<200x32xf32, #tpu.memory_space<vmem>>, vector<4x32xf32>
    %c16_243 = arith.constant 16 : index
    %c256_244 = arith.constant 256 : index
    %181 = vector.load %arg13[%c16_243, %c256_244] : memref<32x512xf32, #tpu.memory_space<vmem>>, vector<4x32xf32>
    tpu.vector_store %arg13[%c16_243, %c256_244], %180 {strides = array<i32>} : memref<32x512xf32, #tpu.memory_space<vmem>>, vector<4x32xf32>,
    %c121 = arith.constant 121 : index
    %c0_245 = arith.constant 0 : index
    %182 = tpu.strided_load %arg12[%c121, %c0_245] {strides = array<i32: 2, 1>} : memref<200x32xf32, #tpu.memory_space<vmem>>, vector<4x32xf32>
    %c16_246 = arith.constant 16 : index
    %c288_247 = arith.constant 288 : index
    %183 = vector.load %arg13[%c16_246, %c288_247] : memref<32x512xf32, #tpu.memory_space<vmem>>, vector<4x32xf32>
    tpu.vector_store %arg13[%c16_246, %c288_247], %182 {strides = array<i32>} : memref<32x512xf32, #tpu.memory_space<vmem>>, vector<4x32xf32>,
    %c122 = arith.constant 122 : index
    %c0_248 = arith.constant 0 : index
    %184 = tpu.strided_load %arg12[%c122, %c0_248] {strides = array<i32: 2, 1>} : memref<200x32xf32, #tpu.memory_space<vmem>>, vector<4x32xf32>
    %c16_249 = arith.constant 16 : index
    %c320_250 = arith.constant 320 : index
    %185 = vector.load %arg13[%c16_249, %c320_250] : memref<32x512xf32, #tpu.memory_space<vmem>>, vector<4x32xf32>
    tpu.vector_store %arg13[%c16_249, %c320_250], %184 {strides = array<i32>} : memref<32x512xf32, #tpu.memory_space<vmem>>, vector<4x32xf32>,
    %c123 = arith.constant 123 : index
    %c0_251 = arith.constant 0 : index
    %186 = tpu.strided_load %arg12[%c123, %c0_251] {strides = array<i32: 2, 1>} : memref<200x32xf32, #tpu.memory_space<vmem>>, vector<4x32xf32>
    %c16_252 = arith.constant 16 : index
    %c352_253 = arith.constant 352 : index
    %187 = vector.load %arg13[%c16_252, %c352_253] : memref<32x512xf32, #tpu.memory_space<vmem>>, vector<4x32xf32>
    tpu.vector_store %arg13[%c16_252, %c352_253], %186 {strides = array<i32>} : memref<32x512xf32, #tpu.memory_space<vmem>>, vector<4x32xf32>,
    %c130 = arith.constant 130 : index
    %c0_254 = arith.constant 0 : index
    %188 = tpu.strided_load %arg12[%c130, %c0_254] {strides = array<i32: 2, 1>} : memref<200x32xf32, #tpu.memory_space<vmem>>, vector<4x32xf32>
    %c16_255 = arith.constant 16 : index
    %c384_256 = arith.constant 384 : index
    %189 = vector.load %arg13[%c16_255, %c384_256] : memref<32x512xf32, #tpu.memory_space<vmem>>, vector<4x32xf32>
    tpu.vector_store %arg13[%c16_255, %c384_256], %188 {strides = array<i32>} : memref<32x512xf32, #tpu.memory_space<vmem>>, vector<4x32xf32>,
    %c131 = arith.constant 131 : index
    %c0_257 = arith.constant 0 : index
    %190 = tpu.strided_load %arg12[%c131, %c0_257] {strides = array<i32: 2, 1>} : memref<200x32xf32, #tpu.memory_space<vmem>>, vector<4x32xf32>
    %c16_258 = arith.constant 16 : index
    %c416_259 = arith.constant 416 : index
    %191 = vector.load %arg13[%c16_258, %c416_259] : memref<32x512xf32, #tpu.memory_space<vmem>>, vector<4x32xf32>
    tpu.vector_store %arg13[%c16_258, %c416_259], %190 {strides = array<i32>} : memref<32x512xf32, #tpu.memory_space<vmem>>, vector<4x32xf32>,
    %c132 = arith.constant 132 : index
    %c0_260 = arith.constant 0 : index
    %192 = tpu.strided_load %arg12[%c132, %c0_260] {strides = array<i32: 2, 1>} : memref<200x32xf32, #tpu.memory_space<vmem>>, vector<4x32xf32>
    %c16_261 = arith.constant 16 : index
    %c448_262 = arith.constant 448 : index
    %193 = vector.load %arg13[%c16_261, %c448_262] : memref<32x512xf32, #tpu.memory_space<vmem>>, vector<4x32xf32>
    tpu.vector_store %arg13[%c16_261, %c448_262], %192 {strides = array<i32>} : memref<32x512xf32, #tpu.memory_space<vmem>>, vector<4x32xf32>,
    %c133 = arith.constant 133 : index
    %c0_263 = arith.constant 0 : index
    %194 = tpu.strided_load %arg12[%c133, %c0_263] {strides = array<i32: 2, 1>} : memref<200x32xf32, #tpu.memory_space<vmem>>, vector<4x32xf32>
    %c16_264 = arith.constant 16 : index
    %c480_265 = arith.constant 480 : index
    %195 = vector.load %arg13[%c16_264, %c480_265] : memref<32x512xf32, #tpu.memory_space<vmem>>, vector<4x32xf32>
    tpu.vector_store %arg13[%c16_264, %c480_265], %194 {strides = array<i32>} : memref<32x512xf32, #tpu.memory_space<vmem>>, vector<4x32xf32>,
    %c120_266 = arith.constant 120 : index
    %c0_267 = arith.constant 0 : index
    %196 = tpu.strided_load %arg12[%c120_266, %c0_267] {strides = array<i32: 2, 1>} : memref<200x32xf32, #tpu.memory_space<vmem>>, vector<4x32xf32>
    %c20_268 = arith.constant 20 : index
    %c0_269 = arith.constant 0 : index
    %197 = vector.load %arg13[%c20_268, %c0_269] : memref<32x512xf32, #tpu.memory_space<vmem>>, vector<4x32xf32>
    tpu.vector_store %arg13[%c20_268, %c0_269], %196 {strides = array<i32>} : memref<32x512xf32, #tpu.memory_space<vmem>>, vector<4x32xf32>,
    %c121_270 = arith.constant 121 : index
    %c0_271 = arith.constant 0 : index
    %198 = tpu.strided_load %arg12[%c121_270, %c0_271] {strides = array<i32: 2, 1>} : memref<200x32xf32, #tpu.memory_space<vmem>>, vector<4x32xf32>
    %c20_272 = arith.constant 20 : index
    %c32_273 = arith.constant 32 : index
    %199 = vector.load %arg13[%c20_272, %c32_273] : memref<32x512xf32, #tpu.memory_space<vmem>>, vector<4x32xf32>
    tpu.vector_store %arg13[%c20_272, %c32_273], %198 {strides = array<i32>} : memref<32x512xf32, #tpu.memory_space<vmem>>, vector<4x32xf32>,
    %c122_274 = arith.constant 122 : index
    %c0_275 = arith.constant 0 : index
    %200 = tpu.strided_load %arg12[%c122_274, %c0_275] {strides = array<i32: 2, 1>} : memref<200x32xf32, #tpu.memory_space<vmem>>, vector<4x32xf32>
    %c20_276 = arith.constant 20 : index
    %c64_277 = arith.constant 64 : index
    %201 = vector.load %arg13[%c20_276, %c64_277] : memref<32x512xf32, #tpu.memory_space<vmem>>, vector<4x32xf32>
    tpu.vector_store %arg13[%c20_276, %c64_277], %200 {strides = array<i32>} : memref<32x512xf32, #tpu.memory_space<vmem>>, vector<4x32xf32>,
    %c123_278 = arith.constant 123 : index
    %c0_279 = arith.constant 0 : index
    %202 = tpu.strided_load %arg12[%c123_278, %c0_279] {strides = array<i32: 2, 1>} : memref<200x32xf32, #tpu.memory_space<vmem>>, vector<4x32xf32>
    %c20_280 = arith.constant 20 : index
    %c96_281 = arith.constant 96 : index
    %203 = vector.load %arg13[%c20_280, %c96_281] : memref<32x512xf32, #tpu.memory_space<vmem>>, vector<4x32xf32>
    tpu.vector_store %arg13[%c20_280, %c96_281], %202 {strides = array<i32>} : memref<32x512xf32, #tpu.memory_space<vmem>>, vector<4x32xf32>,
    %c130_282 = arith.constant 130 : index
    %c0_283 = arith.constant 0 : index
    %204 = tpu.strided_load %arg12[%c130_282, %c0_283] {strides = array<i32: 2, 1>} : memref<200x32xf32, #tpu.memory_space<vmem>>, vector<4x32xf32>
    %c20_284 = arith.constant 20 : index
    %c128_285 = arith.constant 128 : index
    %205 = vector.load %arg13[%c20_284, %c128_285] : memref<32x512xf32, #tpu.memory_space<vmem>>, vector<4x32xf32>
    tpu.vector_store %arg13[%c20_284, %c128_285], %204 {strides = array<i32>} : memref<32x512xf32, #tpu.memory_space<vmem>>, vector<4x32xf32>,
    %c131_286 = arith.constant 131 : index
    %c0_287 = arith.constant 0 : index
    %206 = tpu.strided_load %arg12[%c131_286, %c0_287] {strides = array<i32: 2, 1>} : memref<200x32xf32, #tpu.memory_space<vmem>>, vector<4x32xf32>
    %c20_288 = arith.constant 20 : index
    %c160_289 = arith.constant 160 : index
    %207 = vector.load %arg13[%c20_288, %c160_289] : memref<32x512xf32, #tpu.memory_space<vmem>>, vector<4x32xf32>
    tpu.vector_store %arg13[%c20_288, %c160_289], %206 {strides = array<i32>} : memref<32x512xf32, #tpu.memory_space<vmem>>, vector<4x32xf32>,
    %c132_290 = arith.constant 132 : index
    %c0_291 = arith.constant 0 : index
    %208 = tpu.strided_load %arg12[%c132_290, %c0_291] {strides = array<i32: 2, 1>} : memref<200x32xf32, #tpu.memory_space<vmem>>, vector<4x32xf32>
    %c20_292 = arith.constant 20 : index
    %c192_293 = arith.constant 192 : index
    %209 = vector.load %arg13[%c20_292, %c192_293] : memref<32x512xf32, #tpu.memory_space<vmem>>, vector<4x32xf32>
    tpu.vector_store %arg13[%c20_292, %c192_293], %208 {strides = array<i32>} : memref<32x512xf32, #tpu.memory_space<vmem>>, vector<4x32xf32>,
    %c133_294 = arith.constant 133 : index
    %c0_295 = arith.constant 0 : index
    %210 = tpu.strided_load %arg12[%c133_294, %c0_295] {strides = array<i32: 2, 1>} : memref<200x32xf32, #tpu.memory_space<vmem>>, vector<4x32xf32>
    %c20_296 = arith.constant 20 : index
    %c224_297 = arith.constant 224 : index
    %211 = vector.load %arg13[%c20_296, %c224_297] : memref<32x512xf32, #tpu.memory_space<vmem>>, vector<4x32xf32>
    tpu.vector_store %arg13[%c20_296, %c224_297], %210 {strides = array<i32>} : memref<32x512xf32, #tpu.memory_space<vmem>>, vector<4x32xf32>,
    %c140 = arith.constant 140 : index
    %c0_298 = arith.constant 0 : index
    %212 = tpu.strided_load %arg12[%c140, %c0_298] {strides = array<i32: 2, 1>} : memref<200x32xf32, #tpu.memory_space<vmem>>, vector<4x32xf32>
    %c20_299 = arith.constant 20 : index
    %c256_300 = arith.constant 256 : index
    %213 = vector.load %arg13[%c20_299, %c256_300] : memref<32x512xf32, #tpu.memory_space<vmem>>, vector<4x32xf32>
    tpu.vector_store %arg13[%c20_299, %c256_300], %212 {strides = array<i32>} : memref<32x512xf32, #tpu.memory_space<vmem>>, vector<4x32xf32>,
    %c141 = arith.constant 141 : index
    %c0_301 = arith.constant 0 : index
    %214 = tpu.strided_load %arg12[%c141, %c0_301] {strides = array<i32: 2, 1>} : memref<200x32xf32, #tpu.memory_space<vmem>>, vector<4x32xf32>
    %c20_302 = arith.constant 20 : index
    %c288_303 = arith.constant 288 : index
    %215 = vector.load %arg13[%c20_302, %c288_303] : memref<32x512xf32, #tpu.memory_space<vmem>>, vector<4x32xf32>
    tpu.vector_store %arg13[%c20_302, %c288_303], %214 {strides = array<i32>} : memref<32x512xf32, #tpu.memory_space<vmem>>, vector<4x32xf32>,
    %c142 = arith.constant 142 : index
    %c0_304 = arith.constant 0 : index
    %216 = tpu.strided_load %arg12[%c142, %c0_304] {strides = array<i32: 2, 1>} : memref<200x32xf32, #tpu.memory_space<vmem>>, vector<4x32xf32>
    %c20_305 = arith.constant 20 : index
    %c320_306 = arith.constant 320 : index
    %217 = vector.load %arg13[%c20_305, %c320_306] : memref<32x512xf32, #tpu.memory_space<vmem>>, vector<4x32xf32>
    tpu.vector_store %arg13[%c20_305, %c320_306], %216 {strides = array<i32>} : memref<32x512xf32, #tpu.memory_space<vmem>>, vector<4x32xf32>,
    %c143 = arith.constant 143 : index
    %c0_307 = arith.constant 0 : index
    %218 = tpu.strided_load %arg12[%c143, %c0_307] {strides = array<i32: 2, 1>} : memref<200x32xf32, #tpu.memory_space<vmem>>, vector<4x32xf32>
    %c20_308 = arith.constant 20 : index
    %c352_309 = arith.constant 352 : index
    %219 = vector.load %arg13[%c20_308, %c352_309] : memref<32x512xf32, #tpu.memory_space<vmem>>, vector<4x32xf32>
    tpu.vector_store %arg13[%c20_308, %c352_309], %218 {strides = array<i32>} : memref<32x512xf32, #tpu.memory_space<vmem>>, vector<4x32xf32>,
    %c150 = arith.constant 150 : index
    %c0_310 = arith.constant 0 : index
    %220 = tpu.strided_load %arg12[%c150, %c0_310] {strides = array<i32: 2, 1>} : memref<200x32xf32, #tpu.memory_space<vmem>>, vector<4x32xf32>
    %c20_311 = arith.constant 20 : index
    %c384_312 = arith.constant 384 : index
    %221 = vector.load %arg13[%c20_311, %c384_312] : memref<32x512xf32, #tpu.memory_space<vmem>>, vector<4x32xf32>
    tpu.vector_store %arg13[%c20_311, %c384_312], %220 {strides = array<i32>} : memref<32x512xf32, #tpu.memory_space<vmem>>, vector<4x32xf32>,
    %c151 = arith.constant 151 : index
    %c0_313 = arith.constant 0 : index
    %222 = tpu.strided_load %arg12[%c151, %c0_313] {strides = array<i32: 2, 1>} : memref<200x32xf32, #tpu.memory_space<vmem>>, vector<4x32xf32>
    %c20_314 = arith.constant 20 : index
    %c416_315 = arith.constant 416 : index
    %223 = vector.load %arg13[%c20_314, %c416_315] : memref<32x512xf32, #tpu.memory_space<vmem>>, vector<4x32xf32>
    tpu.vector_store %arg13[%c20_314, %c416_315], %222 {strides = array<i32>} : memref<32x512xf32, #tpu.memory_space<vmem>>, vector<4x32xf32>,
    %c152 = arith.constant 152 : index
    %c0_316 = arith.constant 0 : index
    %224 = tpu.strided_load %arg12[%c152, %c0_316] {strides = array<i32: 2, 1>} : memref<200x32xf32, #tpu.memory_space<vmem>>, vector<4x32xf32>
    %c20_317 = arith.constant 20 : index
    %c448_318 = arith.constant 448 : index
    %225 = vector.load %arg13[%c20_317, %c448_318] : memref<32x512xf32, #tpu.memory_space<vmem>>, vector<4x32xf32>
    tpu.vector_store %arg13[%c20_317, %c448_318], %224 {strides = array<i32>} : memref<32x512xf32, #tpu.memory_space<vmem>>, vector<4x32xf32>,
    %c153 = arith.constant 153 : index
    %c0_319 = arith.constant 0 : index
    %226 = tpu.strided_load %arg12[%c153, %c0_319] {strides = array<i32: 2, 1>} : memref<200x32xf32, #tpu.memory_space<vmem>>, vector<4x32xf32>
    %c20_320 = arith.constant 20 : index
    %c480_321 = arith.constant 480 : index
    %227 = vector.load %arg13[%c20_320, %c480_321] : memref<32x512xf32, #tpu.memory_space<vmem>>, vector<4x32xf32>
    tpu.vector_store %arg13[%c20_320, %c480_321], %226 {strides = array<i32>} : memref<32x512xf32, #tpu.memory_space<vmem>>, vector<4x32xf32>,
    %c140_322 = arith.constant 140 : index
    %c0_323 = arith.constant 0 : index
    %228 = tpu.strided_load %arg12[%c140_322, %c0_323] {strides = array<i32: 2, 1>} : memref<200x32xf32, #tpu.memory_space<vmem>>, vector<4x32xf32>
    %c24 = arith.constant 24 : index
    %c0_324 = arith.constant 0 : index
    %229 = vector.load %arg13[%c24, %c0_324] : memref<32x512xf32, #tpu.memory_space<vmem>>, vector<4x32xf32>
    tpu.vector_store %arg13[%c24, %c0_324], %228 {strides = array<i32>} : memref<32x512xf32, #tpu.memory_space<vmem>>, vector<4x32xf32>,
    %c141_325 = arith.constant 141 : index
    %c0_326 = arith.constant 0 : index
    %230 = tpu.strided_load %arg12[%c141_325, %c0_326] {strides = array<i32: 2, 1>} : memref<200x32xf32, #tpu.memory_space<vmem>>, vector<4x32xf32>
    %c24_327 = arith.constant 24 : index
    %c32_328 = arith.constant 32 : index
    %231 = vector.load %arg13[%c24_327, %c32_328] : memref<32x512xf32, #tpu.memory_space<vmem>>, vector<4x32xf32>
    tpu.vector_store %arg13[%c24_327, %c32_328], %230 {strides = array<i32>} : memref<32x512xf32, #tpu.memory_space<vmem>>, vector<4x32xf32>,
    %c142_329 = arith.constant 142 : index
    %c0_330 = arith.constant 0 : index
    %232 = tpu.strided_load %arg12[%c142_329, %c0_330] {strides = array<i32: 2, 1>} : memref<200x32xf32, #tpu.memory_space<vmem>>, vector<4x32xf32>
    %c24_331 = arith.constant 24 : index
    %c64_332 = arith.constant 64 : index
    %233 = vector.load %arg13[%c24_331, %c64_332] : memref<32x512xf32, #tpu.memory_space<vmem>>, vector<4x32xf32>
    tpu.vector_store %arg13[%c24_331, %c64_332], %232 {strides = array<i32>} : memref<32x512xf32, #tpu.memory_space<vmem>>, vector<4x32xf32>,
    %c143_333 = arith.constant 143 : index
    %c0_334 = arith.constant 0 : index
    %234 = tpu.strided_load %arg12[%c143_333, %c0_334] {strides = array<i32: 2, 1>} : memref<200x32xf32, #tpu.memory_space<vmem>>, vector<4x32xf32>
    %c24_335 = arith.constant 24 : index
    %c96_336 = arith.constant 96 : index
    %235 = vector.load %arg13[%c24_335, %c96_336] : memref<32x512xf32, #tpu.memory_space<vmem>>, vector<4x32xf32>
    tpu.vector_store %arg13[%c24_335, %c96_336], %234 {strides = array<i32>} : memref<32x512xf32, #tpu.memory_space<vmem>>, vector<4x32xf32>,
    %c150_337 = arith.constant 150 : index
    %c0_338 = arith.constant 0 : index
    %236 = tpu.strided_load %arg12[%c150_337, %c0_338] {strides = array<i32: 2, 1>} : memref<200x32xf32, #tpu.memory_space<vmem>>, vector<4x32xf32>
    %c24_339 = arith.constant 24 : index
    %c128_340 = arith.constant 128 : index
    %237 = vector.load %arg13[%c24_339, %c128_340] : memref<32x512xf32, #tpu.memory_space<vmem>>, vector<4x32xf32>
    tpu.vector_store %arg13[%c24_339, %c128_340], %236 {strides = array<i32>} : memref<32x512xf32, #tpu.memory_space<vmem>>, vector<4x32xf32>,
    %c151_341 = arith.constant 151 : index
    %c0_342 = arith.constant 0 : index
    %238 = tpu.strided_load %arg12[%c151_341, %c0_342] {strides = array<i32: 2, 1>} : memref<200x32xf32, #tpu.memory_space<vmem>>, vector<4x32xf32>
    %c24_343 = arith.constant 24 : index
    %c160_344 = arith.constant 160 : index
    %239 = vector.load %arg13[%c24_343, %c160_344] : memref<32x512xf32, #tpu.memory_space<vmem>>, vector<4x32xf32>
    tpu.vector_store %arg13[%c24_343, %c160_344], %238 {strides = array<i32>} : memref<32x512xf32, #tpu.memory_space<vmem>>, vector<4x32xf32>,
    %c152_345 = arith.constant 152 : index
    %c0_346 = arith.constant 0 : index
    %240 = tpu.strided_load %arg12[%c152_345, %c0_346] {strides = array<i32: 2, 1>} : memref<200x32xf32, #tpu.memory_space<vmem>>, vector<4x32xf32>
    %c24_347 = arith.constant 24 : index
    %c192_348 = arith.constant 192 : index
    %241 = vector.load %arg13[%c24_347, %c192_348] : memref<32x512xf32, #tpu.memory_space<vmem>>, vector<4x32xf32>
    tpu.vector_store %arg13[%c24_347, %c192_348], %240 {strides = array<i32>} : memref<32x512xf32, #tpu.memory_space<vmem>>, vector<4x32xf32>,
    %c153_349 = arith.constant 153 : index
    %c0_350 = arith.constant 0 : index
    %242 = tpu.strided_load %arg12[%c153_349, %c0_350] {strides = array<i32: 2, 1>} : memref<200x32xf32, #tpu.memory_space<vmem>>, vector<4x32xf32>
    %c24_351 = arith.constant 24 : index
    %c224_352 = arith.constant 224 : index
    %243 = vector.load %arg13[%c24_351, %c224_352] : memref<32x512xf32, #tpu.memory_space<vmem>>, vector<4x32xf32>
    tpu.vector_store %arg13[%c24_351, %c224_352], %242 {strides = array<i32>} : memref<32x512xf32, #tpu.memory_space<vmem>>, vector<4x32xf32>,
    %c160_353 = arith.constant 160 : index
    %c0_354 = arith.constant 0 : index
    %244 = tpu.strided_load %arg12[%c160_353, %c0_354] {strides = array<i32: 2, 1>} : memref<200x32xf32, #tpu.memory_space<vmem>>, vector<4x32xf32>
    %c24_355 = arith.constant 24 : index
    %c256_356 = arith.constant 256 : index
    %245 = vector.load %arg13[%c24_355, %c256_356] : memref<32x512xf32, #tpu.memory_space<vmem>>, vector<4x32xf32>
    tpu.vector_store %arg13[%c24_355, %c256_356], %244 {strides = array<i32>} : memref<32x512xf32, #tpu.memory_space<vmem>>, vector<4x32xf32>,
    %c161 = arith.constant 161 : index
    %c0_357 = arith.constant 0 : index
    %246 = tpu.strided_load %arg12[%c161, %c0_357] {strides = array<i32: 2, 1>} : memref<200x32xf32, #tpu.memory_space<vmem>>, vector<4x32xf32>
    %c24_358 = arith.constant 24 : index
    %c288_359 = arith.constant 288 : index
    %247 = vector.load %arg13[%c24_358, %c288_359] : memref<32x512xf32, #tpu.memory_space<vmem>>, vector<4x32xf32>
    tpu.vector_store %arg13[%c24_358, %c288_359], %246 {strides = array<i32>} : memref<32x512xf32, #tpu.memory_space<vmem>>, vector<4x32xf32>,
    %c162 = arith.constant 162 : index
    %c0_360 = arith.constant 0 : index
    %248 = tpu.strided_load %arg12[%c162, %c0_360] {strides = array<i32: 2, 1>} : memref<200x32xf32, #tpu.memory_space<vmem>>, vector<4x32xf32>
    %c24_361 = arith.constant 24 : index
    %c320_362 = arith.constant 320 : index
    %249 = vector.load %arg13[%c24_361, %c320_362] : memref<32x512xf32, #tpu.memory_space<vmem>>, vector<4x32xf32>
    tpu.vector_store %arg13[%c24_361, %c320_362], %248 {strides = array<i32>} : memref<32x512xf32, #tpu.memory_space<vmem>>, vector<4x32xf32>,
    %c163 = arith.constant 163 : index
    %c0_363 = arith.constant 0 : index
    %250 = tpu.strided_load %arg12[%c163, %c0_363] {strides = array<i32: 2, 1>} : memref<200x32xf32, #tpu.memory_space<vmem>>, vector<4x32xf32>
    %c24_364 = arith.constant 24 : index
    %c352_365 = arith.constant 352 : index
    %251 = vector.load %arg13[%c24_364, %c352_365] : memref<32x512xf32, #tpu.memory_space<vmem>>, vector<4x32xf32>
    tpu.vector_store %arg13[%c24_364, %c352_365], %250 {strides = array<i32>} : memref<32x512xf32, #tpu.memory_space<vmem>>, vector<4x32xf32>,
    %c170 = arith.constant 170 : index
    %c0_366 = arith.constant 0 : index
    %252 = tpu.strided_load %arg12[%c170, %c0_366] {strides = array<i32: 2, 1>} : memref<200x32xf32, #tpu.memory_space<vmem>>, vector<4x32xf32>
    %c24_367 = arith.constant 24 : index
    %c384_368 = arith.constant 384 : index
    %253 = vector.load %arg13[%c24_367, %c384_368] : memref<32x512xf32, #tpu.memory_space<vmem>>, vector<4x32xf32>
    tpu.vector_store %arg13[%c24_367, %c384_368], %252 {strides = array<i32>} : memref<32x512xf32, #tpu.memory_space<vmem>>, vector<4x32xf32>,
    %c171 = arith.constant 171 : index
    %c0_369 = arith.constant 0 : index
    %254 = tpu.strided_load %arg12[%c171, %c0_369] {strides = array<i32: 2, 1>} : memref<200x32xf32, #tpu.memory_space<vmem>>, vector<4x32xf32>
    %c24_370 = arith.constant 24 : index
    %c416_371 = arith.constant 416 : index
    %255 = vector.load %arg13[%c24_370, %c416_371] : memref<32x512xf32, #tpu.memory_space<vmem>>, vector<4x32xf32>
    tpu.vector_store %arg13[%c24_370, %c416_371], %254 {strides = array<i32>} : memref<32x512xf32, #tpu.memory_space<vmem>>, vector<4x32xf32>,
    %c172 = arith.constant 172 : index
    %c0_372 = arith.constant 0 : index
    %256 = tpu.strided_load %arg12[%c172, %c0_372] {strides = array<i32: 2, 1>} : memref<200x32xf32, #tpu.memory_space<vmem>>, vector<4x32xf32>
    %c24_373 = arith.constant 24 : index
    %c448_374 = arith.constant 448 : index
    %257 = vector.load %arg13[%c24_373, %c448_374] : memref<32x512xf32, #tpu.memory_space<vmem>>, vector<4x32xf32>
    tpu.vector_store %arg13[%c24_373, %c448_374], %256 {strides = array<i32>} : memref<32x512xf32, #tpu.memory_space<vmem>>, vector<4x32xf32>,
    %c173 = arith.constant 173 : index
    %c0_375 = arith.constant 0 : index
    %258 = tpu.strided_load %arg12[%c173, %c0_375] {strides = array<i32: 2, 1>} : memref<200x32xf32, #tpu.memory_space<vmem>>, vector<4x32xf32>
    %c24_376 = arith.constant 24 : index
    %c480_377 = arith.constant 480 : index
    %259 = vector.load %arg13[%c24_376, %c480_377] : memref<32x512xf32, #tpu.memory_space<vmem>>, vector<4x32xf32>
    tpu.vector_store %arg13[%c24_376, %c480_377], %258 {strides = array<i32>} : memref<32x512xf32, #tpu.memory_space<vmem>>, vector<4x32xf32>,
    %c160_378 = arith.constant 160 : index
    %c0_379 = arith.constant 0 : index
    %260 = tpu.strided_load %arg12[%c160_378, %c0_379] {strides = array<i32: 2, 1>} : memref<200x32xf32, #tpu.memory_space<vmem>>, vector<4x32xf32>
    %c28 = arith.constant 28 : index
    %c0_380 = arith.constant 0 : index
    %261 = vector.load %arg13[%c28, %c0_380] : memref<32x512xf32, #tpu.memory_space<vmem>>, vector<4x32xf32>
    tpu.vector_store %arg13[%c28, %c0_380], %260 {strides = array<i32>} : memref<32x512xf32, #tpu.memory_space<vmem>>, vector<4x32xf32>,
    %c161_381 = arith.constant 161 : index
    %c0_382 = arith.constant 0 : index
    %262 = tpu.strided_load %arg12[%c161_381, %c0_382] {strides = array<i32: 2, 1>} : memref<200x32xf32, #tpu.memory_space<vmem>>, vector<4x32xf32>
    %c28_383 = arith.constant 28 : index
    %c32_384 = arith.constant 32 : index
    %263 = vector.load %arg13[%c28_383, %c32_384] : memref<32x512xf32, #tpu.memory_space<vmem>>, vector<4x32xf32>
    tpu.vector_store %arg13[%c28_383, %c32_384], %262 {strides = array<i32>} : memref<32x512xf32, #tpu.memory_space<vmem>>, vector<4x32xf32>,
    %c162_385 = arith.constant 162 : index
    %c0_386 = arith.constant 0 : index
    %264 = tpu.strided_load %arg12[%c162_385, %c0_386] {strides = array<i32: 2, 1>} : memref<200x32xf32, #tpu.memory_space<vmem>>, vector<4x32xf32>
    %c28_387 = arith.constant 28 : index
    %c64_388 = arith.constant 64 : index
    %265 = vector.load %arg13[%c28_387, %c64_388] : memref<32x512xf32, #tpu.memory_space<vmem>>, vector<4x32xf32>
    tpu.vector_store %arg13[%c28_387, %c64_388], %264 {strides = array<i32>} : memref<32x512xf32, #tpu.memory_space<vmem>>, vector<4x32xf32>,
    %c163_389 = arith.constant 163 : index
    %c0_390 = arith.constant 0 : index
    %266 = tpu.strided_load %arg12[%c163_389, %c0_390] {strides = array<i32: 2, 1>} : memref<200x32xf32, #tpu.memory_space<vmem>>, vector<4x32xf32>
    %c28_391 = arith.constant 28 : index
    %c96_392 = arith.constant 96 : index
    %267 = vector.load %arg13[%c28_391, %c96_392] : memref<32x512xf32, #tpu.memory_space<vmem>>, vector<4x32xf32>
    tpu.vector_store %arg13[%c28_391, %c96_392], %266 {strides = array<i32>} : memref<32x512xf32, #tpu.memory_space<vmem>>, vector<4x32xf32>,
    %c170_393 = arith.constant 170 : index
    %c0_394 = arith.constant 0 : index
    %268 = tpu.strided_load %arg12[%c170_393, %c0_394] {strides = array<i32: 2, 1>} : memref<200x32xf32, #tpu.memory_space<vmem>>, vector<4x32xf32>
    %c28_395 = arith.constant 28 : index
    %c128_396 = arith.constant 128 : index
    %269 = vector.load %arg13[%c28_395, %c128_396] : memref<32x512xf32, #tpu.memory_space<vmem>>, vector<4x32xf32>
    tpu.vector_store %arg13[%c28_395, %c128_396], %268 {strides = array<i32>} : memref<32x512xf32, #tpu.memory_space<vmem>>, vector<4x32xf32>,
    %c171_397 = arith.constant 171 : index
    %c0_398 = arith.constant 0 : index
    %270 = tpu.strided_load %arg12[%c171_397, %c0_398] {strides = array<i32: 2, 1>} : memref<200x32xf32, #tpu.memory_space<vmem>>, vector<4x32xf32>
    %c28_399 = arith.constant 28 : index
    %c160_400 = arith.constant 160 : index
    %271 = vector.load %arg13[%c28_399, %c160_400] : memref<32x512xf32, #tpu.memory_space<vmem>>, vector<4x32xf32>
    tpu.vector_store %arg13[%c28_399, %c160_400], %270 {strides = array<i32>} : memref<32x512xf32, #tpu.memory_space<vmem>>, vector<4x32xf32>,
    %c172_401 = arith.constant 172 : index
    %c0_402 = arith.constant 0 : index
    %272 = tpu.strided_load %arg12[%c172_401, %c0_402] {strides = array<i32: 2, 1>} : memref<200x32xf32, #tpu.memory_space<vmem>>, vector<4x32xf32>
    %c28_403 = arith.constant 28 : index
    %c192_404 = arith.constant 192 : index
    %273 = vector.load %arg13[%c28_403, %c192_404] : memref<32x512xf32, #tpu.memory_space<vmem>>, vector<4x32xf32>
    tpu.vector_store %arg13[%c28_403, %c192_404], %272 {strides = array<i32>} : memref<32x512xf32, #tpu.memory_space<vmem>>, vector<4x32xf32>,
    %c173_405 = arith.constant 173 : index
    %c0_406 = arith.constant 0 : index
    %274 = tpu.strided_load %arg12[%c173_405, %c0_406] {strides = array<i32: 2, 1>} : memref<200x32xf32, #tpu.memory_space<vmem>>, vector<4x32xf32>
    %c28_407 = arith.constant 28 : index
    %c224_408 = arith.constant 224 : index
    %275 = vector.load %arg13[%c28_407, %c224_408] : memref<32x512xf32, #tpu.memory_space<vmem>>, vector<4x32xf32>
    tpu.vector_store %arg13[%c28_407, %c224_408], %274 {strides = array<i32>} : memref<32x512xf32, #tpu.memory_space<vmem>>, vector<4x32xf32>,
    %c180 = arith.constant 180 : index
    %c0_409 = arith.constant 0 : index
    %276 = tpu.strided_load %arg12[%c180, %c0_409] {strides = array<i32: 2, 1>} : memref<200x32xf32, #tpu.memory_space<vmem>>, vector<4x32xf32>
    %c28_410 = arith.constant 28 : index
    %c256_411 = arith.constant 256 : index
    %277 = vector.load %arg13[%c28_410, %c256_411] : memref<32x512xf32, #tpu.memory_space<vmem>>, vector<4x32xf32>
    tpu.vector_store %arg13[%c28_410, %c256_411], %276 {strides = array<i32>} : memref<32x512xf32, #tpu.memory_space<vmem>>, vector<4x32xf32>,
    %c181 = arith.constant 181 : index
    %c0_412 = arith.constant 0 : index
    %278 = tpu.strided_load %arg12[%c181, %c0_412] {strides = array<i32: 2, 1>} : memref<200x32xf32, #tpu.memory_space<vmem>>, vector<4x32xf32>
    %c28_413 = arith.constant 28 : index
    %c288_414 = arith.constant 288 : index
    %279 = vector.load %arg13[%c28_413, %c288_414] : memref<32x512xf32, #tpu.memory_space<vmem>>, vector<4x32xf32>
    tpu.vector_store %arg13[%c28_413, %c288_414], %278 {strides = array<i32>} : memref<32x512xf32, #tpu.memory_space<vmem>>, vector<4x32xf32>,
    %c182 = arith.constant 182 : index
    %c0_415 = arith.constant 0 : index
    %280 = tpu.strided_load %arg12[%c182, %c0_415] {strides = array<i32: 2, 1>} : memref<200x32xf32, #tpu.memory_space<vmem>>, vector<4x32xf32>
    %c28_416 = arith.constant 28 : index
    %c320_417 = arith.constant 320 : index
    %281 = vector.load %arg13[%c28_416, %c320_417] : memref<32x512xf32, #tpu.memory_space<vmem>>, vector<4x32xf32>
    tpu.vector_store %arg13[%c28_416, %c320_417], %280 {strides = array<i32>} : memref<32x512xf32, #tpu.memory_space<vmem>>, vector<4x32xf32>,
    %c183 = arith.constant 183 : index
    %c0_418 = arith.constant 0 : index
    %282 = tpu.strided_load %arg12[%c183, %c0_418] {strides = array<i32: 2, 1>} : memref<200x32xf32, #tpu.memory_space<vmem>>, vector<4x32xf32>
    %c28_419 = arith.constant 28 : index
    %c352_420 = arith.constant 352 : index
    %283 = vector.load %arg13[%c28_419, %c352_420] : memref<32x512xf32, #tpu.memory_space<vmem>>, vector<4x32xf32>
    tpu.vector_store %arg13[%c28_419, %c352_420], %282 {strides = array<i32>} : memref<32x512xf32, #tpu.memory_space<vmem>>, vector<4x32xf32>,
    %c190 = arith.constant 190 : index
    %c0_421 = arith.constant 0 : index
    %284 = tpu.strided_load %arg12[%c190, %c0_421] {strides = array<i32: 2, 1>} : memref<200x32xf32, #tpu.memory_space<vmem>>, vector<4x32xf32>
    %c28_422 = arith.constant 28 : index
    %c384_423 = arith.constant 384 : index
    %285 = vector.load %arg13[%c28_422, %c384_423] : memref<32x512xf32, #tpu.memory_space<vmem>>, vector<4x32xf32>
    tpu.vector_store %arg13[%c28_422, %c384_423], %284 {strides = array<i32>} : memref<32x512xf32, #tpu.memory_space<vmem>>, vector<4x32xf32>,
    %c191 = arith.constant 191 : index
    %c0_424 = arith.constant 0 : index
    %286 = tpu.strided_load %arg12[%c191, %c0_424] {strides = array<i32: 2, 1>} : memref<200x32xf32, #tpu.memory_space<vmem>>, vector<4x32xf32>
    %c28_425 = arith.constant 28 : index
    %c416_426 = arith.constant 416 : index
    %287 = vector.load %arg13[%c28_425, %c416_426] : memref<32x512xf32, #tpu.memory_space<vmem>>, vector<4x32xf32>
    tpu.vector_store %arg13[%c28_425, %c416_426], %286 {strides = array<i32>} : memref<32x512xf32, #tpu.memory_space<vmem>>, vector<4x32xf32>,
    %c192_427 = arith.constant 192 : index
    %c0_428 = arith.constant 0 : index
    %288 = tpu.strided_load %arg12[%c192_427, %c0_428] {strides = array<i32: 2, 1>} : memref<200x32xf32, #tpu.memory_space<vmem>>, vector<4x32xf32>
    %c28_429 = arith.constant 28 : index
    %c448_430 = arith.constant 448 : index
    %289 = vector.load %arg13[%c28_429, %c448_430] : memref<32x512xf32, #tpu.memory_space<vmem>>, vector<4x32xf32>
    tpu.vector_store %arg13[%c28_429, %c448_430], %288 {strides = array<i32>} : memref<32x512xf32, #tpu.memory_space<vmem>>, vector<4x32xf32>,
    %c193 = arith.constant 193 : index
    %c0_431 = arith.constant 0 : index
    %290 = tpu.strided_load %arg12[%c193, %c0_431] {strides = array<i32: 2, 1>} : memref<200x32xf32, #tpu.memory_space<vmem>>, vector<4x32xf32>
    %c28_432 = arith.constant 28 : index
    %c480_433 = arith.constant 480 : index
    %291 = vector.load %arg13[%c28_432, %c480_433] : memref<32x512xf32, #tpu.memory_space<vmem>>, vector<4x32xf32>
    tpu.vector_store %arg13[%c28_432, %c480_433], %290 {strides = array<i32>} : memref<32x512xf32, #tpu.memory_space<vmem>>, vector<4x32xf32>,
    %c0_434 = arith.constant 0 : index
    %c0_435 = arith.constant 0 : index
    %292 = vector.load %arg13[%c0_434, %c0_435] : memref<32x512xf32, #tpu.memory_space<vmem>>, vector<32x512xf32>
    %293 = arith.truncf %292 : vector<32x512xf32> to vector<32x512xbf16>
    %c0_436 = arith.constant 0 : index
    %c0_437 = arith.constant 0 : index
    %294 = vector.load %arg5[%c0_436, %c0_437] : memref<512x64xbf16, #tpu.memory_space<vmem>>, vector<512x64xbf16>
    %cst_438 = arith.constant dense<0.000000e+00> : vector<32x64xf32>
    %295 = tpu.matmul %293, %294, %cst_438 {dimension_numbers = #tpu.dot_dimension_numbers<[1], [0], [0], [1], [0, 0, 1, 1], [], []>} : vector<32x512xbf16>, vector<512x64xbf16>, vector<32x64xf32> -> vector<32x64xf32>
    %c0_439 = arith.constant 0 : index
    %c0_440 = arith.constant 0 : index
    %296 = vector.load %arg6[%c0_439, %c0_440] : memref<1x64xf32, #tpu.memory_space<vmem>>, vector<1x64xf32>
    %297 = vector.broadcast %296 : vector<1x64xf32> to vector<32x64xf32>
    %298 = arith.addf %295, %297 : vector<32x64xf32>
    %c0_441 = arith.constant 0 : index
    %c0_442 = arith.constant 0 : index
    %299 = vector.load %arg7[%c0_441, %c0_442] : memref<1x64xf32, #tpu.memory_space<vmem>>, vector<1x64xf32>
    %c0_443 = arith.constant 0 : index
    %c0_444 = arith.constant 0 : index
    %300 = vector.load %arg8[%c0_443, %c0_444] : memref<1x64xf32, #tpu.memory_space<vmem>>, vector<1x64xf32>
    %cst_445 = arith.constant dense<0.000000e+00> : vector<64xf32>
    %301 = vector.multi_reduction <add>, %298, %cst_445 [0] : vector<32x64xf32> to vector<64xf32>
    %302 = vector.shape_cast %301 : vector<64xf32> to vector<1x64xf32>
    %cst_446 = arith.constant 3.200000e+01 : f32
    %303 = vector.broadcast %cst_446 : f32 to vector<1x64xf32>
    %304 = arith.divf %302, %303 : vector<1x64xf32>
    %305 = vector.broadcast %304 : vector<1x64xf32> to vector<32x64xf32>
    %306 = arith.subf %298, %305 : vector<32x64xf32>
    %307 = arith.mulf %306, %306 : vector<32x64xf32>
    %cst_447 = arith.constant dense<0.000000e+00> : vector<64xf32>
    %308 = vector.multi_reduction <add>, %307, %cst_447 [0] : vector<32x64xf32> to vector<64xf32>
    %309 = vector.shape_cast %308 : vector<64xf32> to vector<1x64xf32>
    %cst_448 = arith.constant 3.200000e+01 : f32
    %310 = vector.broadcast %cst_448 : f32 to vector<1x64xf32>
    %311 = arith.divf %309, %310 : vector<1x64xf32>
    %312 = vector.broadcast %304 : vector<1x64xf32> to vector<32x64xf32>
    %313 = arith.subf %298, %312 : vector<32x64xf32>
    %cst_449 = arith.constant 9.99999974E-6 : f32
    %314 = vector.broadcast %cst_449 : f32 to vector<1x64xf32>
    %315 = arith.addf %311, %314 : vector<1x64xf32>
    %316 = math.rsqrt %315 : vector<1x64xf32>
    %317 = vector.broadcast %316 : vector<1x64xf32> to vector<32x64xf32>
    %318 = arith.mulf %313, %317 : vector<32x64xf32>
    %319 = vector.broadcast %299 : vector<1x64xf32> to vector<32x64xf32>
    %320 = arith.mulf %318, %319 : vector<32x64xf32>
    %321 = vector.broadcast %300 : vector<1x64xf32> to vector<32x64xf32>
    %322 = arith.addf %320, %321 : vector<32x64xf32>
    %cst_450 = arith.constant 0.000000e+00 : f32
    %323 = vector.broadcast %cst_450 : f32 to vector<32x64xf32>
    %324 = arith.cmpf ogt, %322, %323 : vector<32x64xf32>
    %cst_451 = arith.constant 2.000000e-01 : f32
    %325 = vector.broadcast %cst_451 : f32 to vector<32x64xf32>
    %326 = arith.mulf %325, %322 : vector<32x64xf32>
    %327 = arith.select %324, %322, %326 : vector<32x64xi1>, vector<32x64xf32>
    %c0_452 = arith.constant 0 : index
    %c0_453 = arith.constant 0 : index
    %328 = vector.load %arg14[%c0_452, %c0_453] : memref<32x64xf32, #tpu.memory_space<vmem>>, vector<32x64xf32>
    tpu.vector_store %arg14[%c0_452, %c0_453], %327 {strides = array<i32>} : memref<32x64xf32, #tpu.memory_space<vmem>>, vector<32x64xf32>,
    %cst_454 = arith.constant 0.000000e+00 : f32
    %329 = vector.broadcast %cst_454 : f32 to vector<6x1024xf32>
    %c2_455 = arith.constant 2 : index
    %c0_456 = arith.constant 0 : index
    %330 = vector.load %arg15[%c2_455, %c0_456] : memref<8x1024xf32, #tpu.memory_space<vmem>>, vector<6x1024xf32>
    tpu.vector_store %arg15[%c2_455, %c0_456], %329 {strides = array<i32>} : memref<8x1024xf32, #tpu.memory_space<vmem>>, vector<6x1024xf32>,
    %c0_457 = arith.constant 0 : index
    %c0_458 = arith.constant 0 : index
    %331 = vector.load %arg14[%c0_457, %c0_458] : memref<32x64xf32, #tpu.memory_space<vmem>>, vector<1x64xf32>
    %c0_459 = arith.constant 0 : index
    %c0_460 = arith.constant 0 : index
    %332 = vector.load %arg15[%c0_459, %c0_460] : memref<8x1024xf32, #tpu.memory_space<vmem>>, vector<1x64xf32>
    tpu.vector_store %arg15[%c0_459, %c0_460], %331 {strides = array<i32>} : memref<8x1024xf32, #tpu.memory_space<vmem>>, vector<1x64xf32>,
    %c1_461 = arith.constant 1 : index
    %c0_462 = arith.constant 0 : index
    %333 = vector.load %arg14[%c1_461, %c0_462] : memref<32x64xf32, #tpu.memory_space<vmem>>, vector<1x64xf32>
    %c0_463 = arith.constant 0 : index
    %c64_464 = arith.constant 64 : index
    %334 = vector.load %arg15[%c0_463, %c64_464] : memref<8x1024xf32, #tpu.memory_space<vmem>>, vector<1x64xf32>
    tpu.vector_store %arg15[%c0_463, %c64_464], %333 {strides = array<i32>} : memref<8x1024xf32, #tpu.memory_space<vmem>>, vector<1x64xf32>,
    %c2_465 = arith.constant 2 : index
    %c0_466 = arith.constant 0 : index
    %335 = vector.load %arg14[%c2_465, %c0_466] : memref<32x64xf32, #tpu.memory_space<vmem>>, vector<1x64xf32>
    %c0_467 = arith.constant 0 : index
    %c128_468 = arith.constant 128 : index
    %336 = vector.load %arg15[%c0_467, %c128_468] : memref<8x1024xf32, #tpu.memory_space<vmem>>, vector<1x64xf32>
    tpu.vector_store %arg15[%c0_467, %c128_468], %335 {strides = array<i32>} : memref<8x1024xf32, #tpu.memory_space<vmem>>, vector<1x64xf32>,
    %c3_469 = arith.constant 3 : index
    %c0_470 = arith.constant 0 : index
    %337 = vector.load %arg14[%c3_469, %c0_470] : memref<32x64xf32, #tpu.memory_space<vmem>>, vector<1x64xf32>
    %c0_471 = arith.constant 0 : index
    %c192_472 = arith.constant 192 : index
    %338 = vector.load %arg15[%c0_471, %c192_472] : memref<8x1024xf32, #tpu.memory_space<vmem>>, vector<1x64xf32>
    tpu.vector_store %arg15[%c0_471, %c192_472], %337 {strides = array<i32>} : memref<8x1024xf32, #tpu.memory_space<vmem>>, vector<1x64xf32>,
    %c4_473 = arith.constant 4 : index
    %c0_474 = arith.constant 0 : index
    %339 = vector.load %arg14[%c4_473, %c0_474] : memref<32x64xf32, #tpu.memory_space<vmem>>, vector<1x64xf32>
    %c0_475 = arith.constant 0 : index
    %c256_476 = arith.constant 256 : index
    %340 = vector.load %arg15[%c0_475, %c256_476] : memref<8x1024xf32, #tpu.memory_space<vmem>>, vector<1x64xf32>
    tpu.vector_store %arg15[%c0_475, %c256_476], %339 {strides = array<i32>} : memref<8x1024xf32, #tpu.memory_space<vmem>>, vector<1x64xf32>,
    %c5 = arith.constant 5 : index
    %c0_477 = arith.constant 0 : index
    %341 = vector.load %arg14[%c5, %c0_477] : memref<32x64xf32, #tpu.memory_space<vmem>>, vector<1x64xf32>
    %c0_478 = arith.constant 0 : index
    %c320_479 = arith.constant 320 : index
    %342 = vector.load %arg15[%c0_478, %c320_479] : memref<8x1024xf32, #tpu.memory_space<vmem>>, vector<1x64xf32>
    tpu.vector_store %arg15[%c0_478, %c320_479], %341 {strides = array<i32>} : memref<8x1024xf32, #tpu.memory_space<vmem>>, vector<1x64xf32>,
    %c6 = arith.constant 6 : index
    %c0_480 = arith.constant 0 : index
    %343 = vector.load %arg14[%c6, %c0_480] : memref<32x64xf32, #tpu.memory_space<vmem>>, vector<1x64xf32>
    %c0_481 = arith.constant 0 : index
    %c384_482 = arith.constant 384 : index
    %344 = vector.load %arg15[%c0_481, %c384_482] : memref<8x1024xf32, #tpu.memory_space<vmem>>, vector<1x64xf32>
    tpu.vector_store %arg15[%c0_481, %c384_482], %343 {strides = array<i32>} : memref<8x1024xf32, #tpu.memory_space<vmem>>, vector<1x64xf32>,
    %c7 = arith.constant 7 : index
    %c0_483 = arith.constant 0 : index
    %345 = vector.load %arg14[%c7, %c0_483] : memref<32x64xf32, #tpu.memory_space<vmem>>, vector<1x64xf32>
    %c0_484 = arith.constant 0 : index
    %c448_485 = arith.constant 448 : index
    %346 = vector.load %arg15[%c0_484, %c448_485] : memref<8x1024xf32, #tpu.memory_space<vmem>>, vector<1x64xf32>
    tpu.vector_store %arg15[%c0_484, %c448_485], %345 {strides = array<i32>} : memref<8x1024xf32, #tpu.memory_space<vmem>>, vector<1x64xf32>,
    %c8_486 = arith.constant 8 : index
    %c0_487 = arith.constant 0 : index
    %347 = vector.load %arg14[%c8_486, %c0_487] : memref<32x64xf32, #tpu.memory_space<vmem>>, vector<1x64xf32>
    %c0_488 = arith.constant 0 : index
    %c512 = arith.constant 512 : index
    %348 = vector.load %arg15[%c0_488, %c512] : memref<8x1024xf32, #tpu.memory_space<vmem>>, vector<1x64xf32>
    tpu.vector_store %arg15[%c0_488, %c512], %347 {strides = array<i32>} : memref<8x1024xf32, #tpu.memory_space<vmem>>, vector<1x64xf32>,
    %c9 = arith.constant 9 : index
    %c0_489 = arith.constant 0 : index
    %349 = vector.load %arg14[%c9, %c0_489] : memref<32x64xf32, #tpu.memory_space<vmem>>, vector<1x64xf32>
    %c0_490 = arith.constant 0 : index
    %c576 = arith.constant 576 : index
    %350 = vector.load %arg15[%c0_490, %c576] : memref<8x1024xf32, #tpu.memory_space<vmem>>, vector<1x64xf32>
    tpu.vector_store %arg15[%c0_490, %c576], %349 {strides = array<i32>} : memref<8x1024xf32, #tpu.memory_space<vmem>>, vector<1x64xf32>,
    %c10_491 = arith.constant 10 : index
    %c0_492 = arith.constant 0 : index
    %351 = vector.load %arg14[%c10_491, %c0_492] : memref<32x64xf32, #tpu.memory_space<vmem>>, vector<1x64xf32>
    %c0_493 = arith.constant 0 : index
    %c640 = arith.constant 640 : index
    %352 = vector.load %arg15[%c0_493, %c640] : memref<8x1024xf32, #tpu.memory_space<vmem>>, vector<1x64xf32>
    tpu.vector_store %arg15[%c0_493, %c640], %351 {strides = array<i32>} : memref<8x1024xf32, #tpu.memory_space<vmem>>, vector<1x64xf32>,
    %c11_494 = arith.constant 11 : index
    %c0_495 = arith.constant 0 : index
    %353 = vector.load %arg14[%c11_494, %c0_495] : memref<32x64xf32, #tpu.memory_space<vmem>>, vector<1x64xf32>
    %c0_496 = arith.constant 0 : index
    %c704 = arith.constant 704 : index
    %354 = vector.load %arg15[%c0_496, %c704] : memref<8x1024xf32, #tpu.memory_space<vmem>>, vector<1x64xf32>
    tpu.vector_store %arg15[%c0_496, %c704], %353 {strides = array<i32>} : memref<8x1024xf32, #tpu.memory_space<vmem>>, vector<1x64xf32>,
    %c12_497 = arith.constant 12 : index
    %c0_498 = arith.constant 0 : index
    %355 = vector.load %arg14[%c12_497, %c0_498] : memref<32x64xf32, #tpu.memory_space<vmem>>, vector<1x64xf32>
    %c0_499 = arith.constant 0 : index
    %c768 = arith.constant 768 : index
    %356 = vector.load %arg15[%c0_499, %c768] : memref<8x1024xf32, #tpu.memory_space<vmem>>, vector<1x64xf32>
    tpu.vector_store %arg15[%c0_499, %c768], %355 {strides = array<i32>} : memref<8x1024xf32, #tpu.memory_space<vmem>>, vector<1x64xf32>,
    %c13_500 = arith.constant 13 : index
    %c0_501 = arith.constant 0 : index
    %357 = vector.load %arg14[%c13_500, %c0_501] : memref<32x64xf32, #tpu.memory_space<vmem>>, vector<1x64xf32>
    %c0_502 = arith.constant 0 : index
    %c832 = arith.constant 832 : index
    %358 = vector.load %arg15[%c0_502, %c832] : memref<8x1024xf32, #tpu.memory_space<vmem>>, vector<1x64xf32>
    tpu.vector_store %arg15[%c0_502, %c832], %357 {strides = array<i32>} : memref<8x1024xf32, #tpu.memory_space<vmem>>, vector<1x64xf32>,
    %c14 = arith.constant 14 : index
    %c0_503 = arith.constant 0 : index
    %359 = vector.load %arg14[%c14, %c0_503] : memref<32x64xf32, #tpu.memory_space<vmem>>, vector<1x64xf32>
    %c0_504 = arith.constant 0 : index
    %c896 = arith.constant 896 : index
    %360 = vector.load %arg15[%c0_504, %c896] : memref<8x1024xf32, #tpu.memory_space<vmem>>, vector<1x64xf32>
    tpu.vector_store %arg15[%c0_504, %c896], %359 {strides = array<i32>} : memref<8x1024xf32, #tpu.memory_space<vmem>>, vector<1x64xf32>,
    %c15 = arith.constant 15 : index
    %c0_505 = arith.constant 0 : index
    %361 = vector.load %arg14[%c15, %c0_505] : memref<32x64xf32, #tpu.memory_space<vmem>>, vector<1x64xf32>
    %c0_506 = arith.constant 0 : index
    %c960 = arith.constant 960 : index
    %362 = vector.load %arg15[%c0_506, %c960] : memref<8x1024xf32, #tpu.memory_space<vmem>>, vector<1x64xf32>
    tpu.vector_store %arg15[%c0_506, %c960], %361 {strides = array<i32>} : memref<8x1024xf32, #tpu.memory_space<vmem>>, vector<1x64xf32>,
    %c16_507 = arith.constant 16 : index
    %c0_508 = arith.constant 0 : index
    %363 = vector.load %arg14[%c16_507, %c0_508] : memref<32x64xf32, #tpu.memory_space<vmem>>, vector<1x64xf32>
    %c1_509 = arith.constant 1 : index
    %c0_510 = arith.constant 0 : index
    %364 = vector.load %arg15[%c1_509, %c0_510] : memref<8x1024xf32, #tpu.memory_space<vmem>>, vector<1x64xf32>
    tpu.vector_store %arg15[%c1_509, %c0_510], %363 {strides = array<i32>} : memref<8x1024xf32, #tpu.memory_space<vmem>>, vector<1x64xf32>,
    %c17 = arith.constant 17 : index
    %c0_511 = arith.constant 0 : index
    %365 = vector.load %arg14[%c17, %c0_511] : memref<32x64xf32, #tpu.memory_space<vmem>>, vector<1x64xf32>
    %c1_512 = arith.constant 1 : index
    %c64_513 = arith.constant 64 : index
    %366 = vector.load %arg15[%c1_512, %c64_513] : memref<8x1024xf32, #tpu.memory_space<vmem>>, vector<1x64xf32>
    tpu.vector_store %arg15[%c1_512, %c64_513], %365 {strides = array<i32>} : memref<8x1024xf32, #tpu.memory_space<vmem>>, vector<1x64xf32>,
    %c18 = arith.constant 18 : index
    %c0_514 = arith.constant 0 : index
    %367 = vector.load %arg14[%c18, %c0_514] : memref<32x64xf32, #tpu.memory_space<vmem>>, vector<1x64xf32>
    %c1_515 = arith.constant 1 : index
    %c128_516 = arith.constant 128 : index
    %368 = vector.load %arg15[%c1_515, %c128_516] : memref<8x1024xf32, #tpu.memory_space<vmem>>, vector<1x64xf32>
    tpu.vector_store %arg15[%c1_515, %c128_516], %367 {strides = array<i32>} : memref<8x1024xf32, #tpu.memory_space<vmem>>, vector<1x64xf32>,
    %c19 = arith.constant 19 : index
    %c0_517 = arith.constant 0 : index
    %369 = vector.load %arg14[%c19, %c0_517] : memref<32x64xf32, #tpu.memory_space<vmem>>, vector<1x64xf32>
    %c1_518 = arith.constant 1 : index
    %c192_519 = arith.constant 192 : index
    %370 = vector.load %arg15[%c1_518, %c192_519] : memref<8x1024xf32, #tpu.memory_space<vmem>>, vector<1x64xf32>
    tpu.vector_store %arg15[%c1_518, %c192_519], %369 {strides = array<i32>} : memref<8x1024xf32, #tpu.memory_space<vmem>>, vector<1x64xf32>,
    %c20_520 = arith.constant 20 : index
    %c0_521 = arith.constant 0 : index
    %371 = vector.load %arg14[%c20_520, %c0_521] : memref<32x64xf32, #tpu.memory_space<vmem>>, vector<1x64xf32>
    %c1_522 = arith.constant 1 : index
    %c256_523 = arith.constant 256 : index
    %372 = vector.load %arg15[%c1_522, %c256_523] : memref<8x1024xf32, #tpu.memory_space<vmem>>, vector<1x64xf32>
    tpu.vector_store %arg15[%c1_522, %c256_523], %371 {strides = array<i32>} : memref<8x1024xf32, #tpu.memory_space<vmem>>, vector<1x64xf32>,
    %c21_524 = arith.constant 21 : index
    %c0_525 = arith.constant 0 : index
    %373 = vector.load %arg14[%c21_524, %c0_525] : memref<32x64xf32, #tpu.memory_space<vmem>>, vector<1x64xf32>
    %c1_526 = arith.constant 1 : index
    %c320_527 = arith.constant 320 : index
    %374 = vector.load %arg15[%c1_526, %c320_527] : memref<8x1024xf32, #tpu.memory_space<vmem>>, vector<1x64xf32>
    tpu.vector_store %arg15[%c1_526, %c320_527], %373 {strides = array<i32>} : memref<8x1024xf32, #tpu.memory_space<vmem>>, vector<1x64xf32>,
    %c22_528 = arith.constant 22 : index
    %c0_529 = arith.constant 0 : index
    %375 = vector.load %arg14[%c22_528, %c0_529] : memref<32x64xf32, #tpu.memory_space<vmem>>, vector<1x64xf32>
    %c1_530 = arith.constant 1 : index
    %c384_531 = arith.constant 384 : index
    %376 = vector.load %arg15[%c1_530, %c384_531] : memref<8x1024xf32, #tpu.memory_space<vmem>>, vector<1x64xf32>
    tpu.vector_store %arg15[%c1_530, %c384_531], %375 {strides = array<i32>} : memref<8x1024xf32, #tpu.memory_space<vmem>>, vector<1x64xf32>,
    %c23_532 = arith.constant 23 : index
    %c0_533 = arith.constant 0 : index
    %377 = vector.load %arg14[%c23_532, %c0_533] : memref<32x64xf32, #tpu.memory_space<vmem>>, vector<1x64xf32>
    %c1_534 = arith.constant 1 : index
    %c448_535 = arith.constant 448 : index
    %378 = vector.load %arg15[%c1_534, %c448_535] : memref<8x1024xf32, #tpu.memory_space<vmem>>, vector<1x64xf32>
    tpu.vector_store %arg15[%c1_534, %c448_535], %377 {strides = array<i32>} : memref<8x1024xf32, #tpu.memory_space<vmem>>, vector<1x64xf32>,
    %c24_536 = arith.constant 24 : index
    %c0_537 = arith.constant 0 : index
    %379 = vector.load %arg14[%c24_536, %c0_537] : memref<32x64xf32, #tpu.memory_space<vmem>>, vector<1x64xf32>
    %c1_538 = arith.constant 1 : index
    %c512_539 = arith.constant 512 : index
    %380 = vector.load %arg15[%c1_538, %c512_539] : memref<8x1024xf32, #tpu.memory_space<vmem>>, vector<1x64xf32>
    tpu.vector_store %arg15[%c1_538, %c512_539], %379 {strides = array<i32>} : memref<8x1024xf32, #tpu.memory_space<vmem>>, vector<1x64xf32>,
    %c25 = arith.constant 25 : index
    %c0_540 = arith.constant 0 : index
    %381 = vector.load %arg14[%c25, %c0_540] : memref<32x64xf32, #tpu.memory_space<vmem>>, vector<1x64xf32>
    %c1_541 = arith.constant 1 : index
    %c576_542 = arith.constant 576 : index
    %382 = vector.load %arg15[%c1_541, %c576_542] : memref<8x1024xf32, #tpu.memory_space<vmem>>, vector<1x64xf32>
    tpu.vector_store %arg15[%c1_541, %c576_542], %381 {strides = array<i32>} : memref<8x1024xf32, #tpu.memory_space<vmem>>, vector<1x64xf32>,
    %c26 = arith.constant 26 : index
    %c0_543 = arith.constant 0 : index
    %383 = vector.load %arg14[%c26, %c0_543] : memref<32x64xf32, #tpu.memory_space<vmem>>, vector<1x64xf32>
    %c1_544 = arith.constant 1 : index
    %c640_545 = arith.constant 640 : index
    %384 = vector.load %arg15[%c1_544, %c640_545] : memref<8x1024xf32, #tpu.memory_space<vmem>>, vector<1x64xf32>
    tpu.vector_store %arg15[%c1_544, %c640_545], %383 {strides = array<i32>} : memref<8x1024xf32, #tpu.memory_space<vmem>>, vector<1x64xf32>,
    %c27 = arith.constant 27 : index
    %c0_546 = arith.constant 0 : index
    %385 = vector.load %arg14[%c27, %c0_546] : memref<32x64xf32, #tpu.memory_space<vmem>>, vector<1x64xf32>
    %c1_547 = arith.constant 1 : index
    %c704_548 = arith.constant 704 : index
    %386 = vector.load %arg15[%c1_547, %c704_548] : memref<8x1024xf32, #tpu.memory_space<vmem>>, vector<1x64xf32>
    tpu.vector_store %arg15[%c1_547, %c704_548], %385 {strides = array<i32>} : memref<8x1024xf32, #tpu.memory_space<vmem>>, vector<1x64xf32>,
    %c28_549 = arith.constant 28 : index
    %c0_550 = arith.constant 0 : index
    %387 = vector.load %arg14[%c28_549, %c0_550] : memref<32x64xf32, #tpu.memory_space<vmem>>, vector<1x64xf32>
    %c1_551 = arith.constant 1 : index
    %c768_552 = arith.constant 768 : index
    %388 = vector.load %arg15[%c1_551, %c768_552] : memref<8x1024xf32, #tpu.memory_space<vmem>>, vector<1x64xf32>
    tpu.vector_store %arg15[%c1_551, %c768_552], %387 {strides = array<i32>} : memref<8x1024xf32, #tpu.memory_space<vmem>>, vector<1x64xf32>,
    %c29 = arith.constant 29 : index
    %c0_553 = arith.constant 0 : index
    %389 = vector.load %arg14[%c29, %c0_553] : memref<32x64xf32, #tpu.memory_space<vmem>>, vector<1x64xf32>
    %c1_554 = arith.constant 1 : index
    %c832_555 = arith.constant 832 : index
    %390 = vector.load %arg15[%c1_554, %c832_555] : memref<8x1024xf32, #tpu.memory_space<vmem>>, vector<1x64xf32>
    tpu.vector_store %arg15[%c1_554, %c832_555], %389 {strides = array<i32>} : memref<8x1024xf32, #tpu.memory_space<vmem>>, vector<1x64xf32>,
    %c30_556 = arith.constant 30 : index
    %c0_557 = arith.constant 0 : index
    %391 = vector.load %arg14[%c30_556, %c0_557] : memref<32x64xf32, #tpu.memory_space<vmem>>, vector<1x64xf32>
    %c1_558 = arith.constant 1 : index
    %c896_559 = arith.constant 896 : index
    %392 = vector.load %arg15[%c1_558, %c896_559] : memref<8x1024xf32, #tpu.memory_space<vmem>>, vector<1x64xf32>
    tpu.vector_store %arg15[%c1_558, %c896_559], %391 {strides = array<i32>} : memref<8x1024xf32, #tpu.memory_space<vmem>>, vector<1x64xf32>,
    %c31_560 = arith.constant 31 : index
    %c0_561 = arith.constant 0 : index
    %393 = vector.load %arg14[%c31_560, %c0_561] : memref<32x64xf32, #tpu.memory_space<vmem>>, vector<1x64xf32>
    %c1_562 = arith.constant 1 : index
    %c960_563 = arith.constant 960 : index
    %394 = vector.load %arg15[%c1_562, %c960_563] : memref<8x1024xf32, #tpu.memory_space<vmem>>, vector<1x64xf32>
    tpu.vector_store %arg15[%c1_562, %c960_563], %393 {strides = array<i32>} : memref<8x1024xf32, #tpu.memory_space<vmem>>, vector<1x64xf32>,
    %c0_564 = arith.constant 0 : index
    %c0_565 = arith.constant 0 : index
    %395 = vector.load %arg15[%c0_564, %c0_565] : memref<8x1024xf32, #tpu.memory_space<vmem>>, vector<8x1024xf32>
    %396 = arith.truncf %395 : vector<8x1024xf32> to vector<8x1024xbf16>
    %c0_566 = arith.constant 0 : index
    %c0_567 = arith.constant 0 : index
    %397 = vector.load %arg9[%c0_566, %c0_567] : memref<1024x128xbf16, #tpu.memory_space<vmem>>, vector<1024x128xbf16>
    %cst_568 = arith.constant dense<0.000000e+00> : vector<8x128xf32>
    %398 = tpu.matmul %396, %397, %cst_568 {dimension_numbers = #tpu.dot_dimension_numbers<[1], [0], [0], [1], [0, 0, 1, 1], [], []>} : vector<8x1024xbf16>, vector<1024x128xbf16>, vector<8x128xf32> -> vector<8x128xf32>
    %c0_569 = arith.constant 0 : index
    %c0_570 = arith.constant 0 : index
    %399 = vector.load %arg10[%c0_569, %c0_570] : memref<1x128xf32, #tpu.memory_space<vmem>>, vector<1x128xf32>
    %400 = vector.broadcast %399 : vector<1x128xf32> to vector<8x128xf32>
    %401 = arith.addf %398, %400 : vector<8x128xf32>
    %c0_571 = arith.constant 0 : index
    %c0_572 = arith.constant 0 : index
    %402 = vector.load %arg11[%c0_571, %c0_572] : memref<8x128xf32, #tpu.memory_space<vmem>>, vector<8x128xf32>
    tpu.vector_store %arg11[%c0_571, %c0_572], %401 {strides = array<i32>} : memref<8x128xf32, #tpu.memory_space<vmem>>, vector<8x128xf32>,
    return
  }
}

</mosaic_0001>

<bundles_post_ra>
// kernel: critic_forward.1
= control target key start
LH: loop header
LB: loop body
LE: loop exit
PB: predicated region body
PF: predicated region fallthrough
CT: control target
= control target key end

     0   :  { %v3262_v0 = vmov 0.0   ;;  %vm3263_vm0 = vmmov 0   ;;  %vm142_vm1 = vcmask 130048   ;;  %vm320_vm2 = vcmask 261120   ;;  %s3265_s27 = smov 64   ;;  %s3266_s28 = smov 96   ;;  %s4433_s1 = inlined_call_operand.vmem [shape: bf16[16,32], index: 1, kind: input, shape index: {}]   ;;  %s4434_s0 = inlined_call_operand.vmem [shape: bf16[200,16], index: 0, kind: input, shape index: {}]   ;;  %s4435_s2 = inlined_call_operand.vmem [shape: f32[1,32], index: 2, kind: input, shape index: {}]   ;;  %s4436_s3 = inlined_call_operand.vmem [shape: f32[1,32], index: 3, kind: input, shape index: {}]   ;;  %s4437_s4 = inlined_call_operand.vmem [shape: f32[1,32], index: 4, kind: input, shape index: {}]   ;;  %s4438_s5 = inlined_call_operand.vmem [shape: bf16[512,64], index: 5, kind: input, shape index: {}]   ;;  %s4439_s6 = inlined_call_operand.vmem [shape: f32[1,64], index: 6, kind: input, shape index: {}]   ;;  %s4440_s9 = inlined_call_operand.vmem [shape: bf16[1024,128], index: 9, kind: input, shape index: {}]   ;;  %s4441_s7 = inlined_call_operand.vmem [shape: f32[1,64], index: 7, kind: input, shape index: {}]   ;;  %s4442_s8 = inlined_call_operand.vmem [shape: f32[1,64], index: 8, kind: input, shape index: {}]   ;;  %s4443_s10 = inlined_call_operand.vmem [shape: f32[1,128], index: 10, kind: input, shape index: {}]   ;;  %s4444_s11 = inlined_call_operand.vmem [shape: f32[8,128], index: 11, kind: output, shape index: {}]  }
   0x1   :  { %3089 = vmatprep.subr.bf16.mxu0 %v3262_v0  ;;  %1963 = vst [vmem:[#allocation5] sm:$0xfc] %v3262_v0  ;;  %1964 = vst [vmem:[#allocation5 + $0x8] sm:$0xfc] %v3262_v0  ;;  %v3148_v1 = vld [vmem:[%s4433_s1] sm:$0xff]   ;;  %3091 = vmatprep.mubr.msk.bf16.mxu0 %vm3263_vm0, %v3262_v0  ;;  %v3150_v3 = vld [vmem:[%s4434_s0 + $0x8] sm:$0xff]  }
   0x2   :  { %1965 = vst [vmem:[#allocation5 + $0x10] sm:$0xfc] %v3262_v0  ;;  %1966 = vst [vmem:[#allocation5 + $0x18] sm:$0xfc] %v3262_v0  ;;  %v3149_v2 = vld [vmem:[%s4434_s0] sm:$0xff]   ;;  %3090 = vmatpush3.bf16.msra.mxu0 %v3148_v1  ;;  %v3151_v4 = vld [vmem:[%s4434_s0 + $0x10] sm:$0xff]  }
   0x3   :  { %1967 = vst [vmem:[#allocation5 + $0x20] sm:$0xfc] %v3262_v0  ;;  %1968 = vst [vmem:[#allocation5 + $0x28] sm:$0xfc] %v3262_v0  ;;  %v3152_v5 = vld [vmem:[%s4434_s0 + $0x18] sm:$0xff]   ;;  %v3153_v6 = vld [vmem:[%s4434_s0 + $0x20] sm:$0xff]  }
   0x4   :  { %1969 = vst [vmem:[#allocation5 + $0x30] sm:$0xfc] %v3262_v0  ;;  %1970 = vst [vmem:[#allocation5 + $0x38] sm:$0xfc] %v3262_v0  ;;  %v3154_v7 = vld [vmem:[%s4434_s0 + $0x28] sm:$0xff]   ;;  %v3155_v8 = vld [vmem:[%s4434_s0 + $0x30] sm:$0xff]  }
   0x5   :  { %3092 = vmatmul.mubr.msk.bf16.vlgmr.msra.gmra.mrb[0].mxu0 %vm142_vm1, %v3149_v2  ;;  %v3156_v9 = vld [vmem:[%s4434_s0 + $0x38] sm:$0xff]   ;;  %v3157_v10 = vld [vmem:[%s4434_s0 + $0x40] sm:$0xff]   ;;  %v3158_v11 = vld [vmem:[%s4434_s0 + $0x48] sm:$0xff]  }
   0x6   :  { %3095 = vmatprep.mubr.msk.bf16.mxu0 %vm3263_vm0, %v3262_v0  ;;  %v3159_v12 = vld [vmem:[%s4434_s0 + $0x50] sm:$0xff]   ;;  %v3160_v13 = vld [vmem:[%s4434_s0 + $0x58] sm:$0xff]   ;;  %v3161_v14 = vld [vmem:[%s4434_s0 + $0x60] ss:$0 sps:$4 sm:$0xff]  }
   0x7   :  { %v3398_v15 = vld [vmem:[%s4435_s2] ss:$0 sm:$0xff] }
   0xd   :  { %3096 = vmatmul.mubr.msk.bf16.gmra.mrb[4].mxu0 %vm142_vm1, %v3150_v3 }
   0xe   :  { %3099 = vmatprep.mubr.msk.bf16.mxu0 %vm3263_vm0, %v3262_v0 }
  0x15   :  { %3100 = vmatmul.mubr.msk.bf16.gmra.mrb[8].mxu0 %vm142_vm1, %v3151_v4 }
  0x16   :  { %3103 = vmatprep.mubr.msk.bf16.mxu0 %vm3263_vm0, %v3262_v0 }
  0x1d   :  { %3104 = vmatmul.mubr.msk.bf16.gmra.mrb[12].mxu0 %vm142_vm1, %v3152_v5 }
  0x1e   :  { %3107 = vmatprep.mubr.msk.bf16.mxu0 %vm3263_vm0, %v3262_v0 }
  0x25   :  { %3108 = vmatmul.mubr.msk.bf16.gmra.mrb[16].mxu0 %vm142_vm1, %v3153_v6 }
  0x26   :  { %3111 = vmatprep.mubr.msk.bf16.mxu0 %vm3263_vm0, %v3262_v0 }
  0x2d   :  { %3112 = vmatmul.mubr.msk.bf16.gmra.mrb[20].mxu0 %vm142_vm1, %v3154_v7 }
  0x2e   :  { %3115 = vmatprep.mubr.msk.bf16.mxu0 %vm3263_vm0, %v3262_v0 }
  0x35   :  { %3116 = vmatmul.mubr.msk.bf16.gmra.mrb[24].mxu0 %vm142_vm1, %v3155_v8 }
  0x36   :  { %3119 = vmatprep.mubr.msk.bf16.mxu0 %vm3263_vm0, %v3262_v0 }
  0x3d   :  { %3120 = vmatmul.mubr.msk.bf16.gmra.mrb[28].mxu0 %vm142_vm1, %v3156_v9 }
  0x3e   :  { %3123 = vmatprep.mubr.msk.bf16.mxu0 %vm3263_vm0, %v3262_v0 }
  0x45   :  { %3124 = vmatmul.mubr.msk.bf16.gmra.mrb[32].mxu0 %vm142_vm1, %v3157_v10 }
  0x46   :  { %3127 = vmatprep.mubr.msk.bf16.mxu0 %vm3263_vm0, %v3262_v0 }
  0x4d   :  { %3128 = vmatmul.mubr.msk.bf16.gmra.mrb[36].mxu0 %vm142_vm1, %v3158_v11 }
  0x4e   :  { %3131 = vmatprep.mubr.msk.bf16.mxu0 %vm3263_vm0, %v3262_v0 }
  0x55   :  { %3132 = vmatmul.mubr.msk.bf16.gmra.mrb[40].mxu0 %vm142_vm1, %v3159_v12 }
  0x56   :  { %3135 = vmatprep.mubr.msk.bf16.mxu0 %vm3263_vm0, %v3262_v0 }
  0x5d   :  { %3136 = vmatmul.mubr.msk.bf16.gmra.mrb[44].mxu0 %vm142_vm1, %v3160_v13 }
  0x5e   :  { %3139 = vmatprep.mubr.msk.bf16.mxu0 %vm3263_vm0, %v3262_v0 }
  0x65   :  { %3140 = vmatmul.mubr.msk.bf16.gmra.mrb[48].mxu0 %vm142_vm1, %v3161_v14 }
  0xd8   :  { %v216_v16 = vpop.f32.mrb[0].mxu0 }
  0xd9   :  { %v3401_v17 = vadd.f32 %v3398_v15, %v216_v16  ;;  %v3093_v18 = vpop.f32.mrb[1].mxu0 }
  0xda   :  { %v219_v19 = vpop.f32.mrb[2].mxu0 }
  0xdb   :  { %v3404_v20 = vadd.f32 %v3398_v15, %v219_v19  ;;  %v3094_v21 = vpop.f32.mrb[3].mxu0  ;;  %v321_v22 = vsel %vm320_vm2, %v3401_v17, 0.0 }
  0xdd   :  { %v322_v23 = vsel %vm320_vm2, %v3404_v20, 0.0 }
  0xde   :  { %v323_v24 = vadd.f32 %v322_v23, %v321_v22 }
  0xe0   :  { %v224_v25 = vpop.f32.mrb[4].mxu0 }
  0xe1   :  { %v3411_v26 = vadd.f32 %v3398_v15, %v224_v25  ;;  %v3097_v27 = vpop.f32.mrb[5].mxu0 }
  0xe2   :  { %v227_v28 = vpop.f32.mrb[6].mxu0 }
  0xe3   :  { %v324_v29 = vsel %vm320_vm2, %v3411_v26, 0.0  ;;  %v3416_v30 = vadd.f32 %v3398_v15, %v227_v28  ;;  %v3098_v31 = vpop.f32.mrb[7].mxu0 }
  0xe4   :  { %v325_v32 = vadd.f32 %v324_v29, %v323_v24 }
  0xe5   :  { %v326_v33 = vsel %vm320_vm2, %v3416_v30, 0.0 }
  0xe6   :  { %v327_v34 = vadd.f32 %v326_v33, %v325_v32 }
  0xe8   :  { %v232_v35 = vpop.f32.mrb[8].mxu0 }
  0xe9   :  { %v3421_v36 = vadd.f32 %v3398_v15, %v232_v35  ;;  %v3101_v37 = vpop.f32.mrb[9].mxu0 }
  0xea   :  { %v235_v38 = vpop.f32.mrb[10].mxu0 }
  0xeb   :  { %v328_v39 = vsel %vm320_vm2, %v3421_v36, 0.0  ;;  %v3426_v40 = vadd.f32 %v3398_v15, %v235_v38  ;;  %v3102_v41 = vpop.f32.mrb[11].mxu0 }
  0xec   :  { %v329_v42 = vadd.f32 %v328_v39, %v327_v34 }
  0xed   :  { %v330_v43 = vsel %vm320_vm2, %v3426_v40, 0.0 }
  0xee   :  { %v331_v44 = vadd.f32 %v330_v43, %v329_v42 }
  0xf0   :  { %v240_v45 = vpop.f32.mrb[12].mxu0 }
  0xf1   :  { %v3431_v46 = vadd.f32 %v3398_v15, %v240_v45  ;;  %v3105_v47 = vpop.f32.mrb[13].mxu0 }
  0xf2   :  { %v243_v48 = vpop.f32.mrb[14].mxu0 }
  0xf3   :  { %v332_v49 = vsel %vm320_vm2, %v3431_v46, 0.0  ;;  %v3436_v50 = vadd.f32 %v3398_v15, %v243_v48  ;;  %v3106_v51 = vpop.f32.mrb[15].mxu0 }
  0xf4   :  { %v333_v52 = vadd.f32 %v332_v49, %v331_v44 }
  0xf5   :  { %v334_v53 = vsel %vm320_vm2, %v3436_v50, 0.0 }
  0xf6   :  { %v335_v54 = vadd.f32 %v334_v53, %v333_v52 }
  0xf8   :  { %v248_v55 = vpop.f32.mrb[16].mxu0 }
  0xf9   :  { %v3441_v56 = vadd.f32 %v3398_v15, %v248_v55  ;;  %v3109_v57 = vpop.f32.mrb[17].mxu0 }
  0xfa   :  { %v251_v58 = vpop.f32.mrb[18].mxu0 }
  0xfb   :  { %v336_v59 = vsel %vm320_vm2, %v3441_v56, 0.0  ;;  %v3446_v60 = vadd.f32 %v3398_v15, %v251_v58  ;;  %v3110_v61 = vpop.f32.mrb[19].mxu0 }
  0xfc   :  { %v337_v62 = vadd.f32 %v336_v59, %v335_v54 }
  0xfd   :  { %v338_v63 = vsel %vm320_vm2, %v3446_v60, 0.0 }
  0xfe   :  { %v339_v0 = vadd.f32 %v338_v63, %v337_v62 }
 0x100   :  { %v256_v1 = vpop.f32.mrb[20].mxu0 }
 0x101   :  { %v3451_v2 = vadd.f32 %v3398_v15, %v256_v1  ;;  %v3113_v3 = vpop.f32.mrb[21].mxu0 }
 0x102   :  { %v259_v4 = vpop.f32.mrb[22].mxu0 }
 0x103   :  { %v340_v5 = vsel %vm320_vm2, %v3451_v2, 0.0  ;;  %v3456_v6 = vadd.f32 %v3398_v15, %v259_v4  ;;  %v3114_v7 = vpop.f32.mrb[23].mxu0 }
 0x104   :  { %v341_v8 = vadd.f32 %v340_v5, %v339_v0 }
 0x105   :  { %v342_v9 = vsel %vm320_vm2, %v3456_v6, 0.0 }
 0x106   :  { %v343_v10 = vadd.f32 %v342_v9, %v341_v8 }
 0x108   :  { %v264_v11 = vpop.f32.mrb[24].mxu0 }
 0x109   :  { %v3461_v12 = vadd.f32 %v3398_v15, %v264_v11  ;;  %v3117_v13 = vpop.f32.mrb[25].mxu0 }
 0x10a   :  { %v267_v14 = vpop.f32.mrb[26].mxu0 }
 0x10b   :  { %v344_v16 = vsel %vm320_vm2, %v3461_v12, 0.0  ;;  %v3466_v18 = vadd.f32 %v3398_v15, %v267_v14  ;;  %v3118_v19 = vpop.f32.mrb[27].mxu0 }
 0x10c   :  { %v345_v21 = vadd.f32 %v344_v16, %v343_v10 }
 0x10d   :  { %v346_v22 = vsel %vm320_vm2, %v3466_v18, 0.0 }
 0x10e   :  { %v347_v23 = vadd.f32 %v346_v22, %v345_v21 }
 0x110   :  { %v272_v24 = vpop.f32.mrb[28].mxu0 }
 0x111   :  { %v3471_v25 = vadd.f32 %v3398_v15, %v272_v24  ;;  %v3121_v27 = vpop.f32.mrb[29].mxu0 }
 0x112   :  { %v275_v28 = vpop.f32.mrb[30].mxu0 }
 0x113   :  { %v348_v29 = vsel %vm320_vm2, %v3471_v25, 0.0  ;;  %v3476_v31 = vadd.f32 %v3398_v15, %v275_v28  ;;  %v3122_v32 = vpop.f32.mrb[31].mxu0 }
 0x114   :  { %v349_v33 = vadd.f32 %v348_v29, %v347_v23 }
 0x115   :  { %v350_v34 = vsel %vm320_vm2, %v3476_v31, 0.0 }
 0x116   :  { %v351_v35 = vadd.f32 %v350_v34, %v349_v33 }
 0x118   :  { %v280_v37 = vpop.f32.mrb[32].mxu0 }
 0x119   :  { %v3481_v38 = vadd.f32 %v3398_v15, %v280_v37  ;;  %v3125_v39 = vpop.f32.mrb[33].mxu0 }
 0x11a   :  { %v283_v41 = vpop.f32.mrb[34].mxu0 }
 0x11b   :  { %v352_v42 = vsel %vm320_vm2, %v3481_v38, 0.0  ;;  %v3486_v43 = vadd.f32 %v3398_v15, %v283_v41  ;;  %v3126_v44 = vpop.f32.mrb[35].mxu0 }
 0x11c   :  { %v353_v45 = vadd.f32 %v352_v42, %v351_v35 }
 0x11d   :  { %v354_v47 = vsel %vm320_vm2, %v3486_v43, 0.0 }
 0x11e   :  { %v355_v48 = vadd.f32 %v354_v47, %v353_v45 }
 0x120   :  { %v288_v49 = vpop.f32.mrb[36].mxu0 }
 0x121   :  { %v289_v51 = vadd.f32 %v3398_v15, %v288_v49  ;;  %v3129_v52 = vpop.f32.mrb[37].mxu0 }
 0x122   :  { %v291_v53 = vpop.f32.mrb[38].mxu0 }
 0x123   :  { %v356_v54 = vsel %vm320_vm2, %v289_v51, 0.0  ;;  %v292_v55 = vadd.f32 %v3398_v15, %v291_v53  ;;  %v3130_v57 = vpop.f32.mrb[39].mxu0 }
 0x124   :  { %v357_v58 = vadd.f32 %v356_v54, %v355_v48 }
 0x125   :  { %v358_v59 = vsel %vm320_vm2, %v292_v55, 0.0 }
 0x126   :  { %v359_v61 = vadd.f32 %v358_v59, %v357_v58 }
 0x128   :  { %v296_v62 = vpop.f32.mrb[40].mxu0 }
 0x129   :  { %v297_v63 = vadd.f32 %v3398_v15, %v296_v62  ;;  %v3133_v0 = vpop.f32.mrb[41].mxu0 }
 0x12a   :  { %v299_v1 = vpop.f32.mrb[42].mxu0 }
 0x12b   :  { %v360_v3 = vsel %vm320_vm2, %v297_v63, 0.0  ;;  %v300_v4 = vadd.f32 %v3398_v15, %v299_v1  ;;  %v3134_v5 = vpop.f32.mrb[43].mxu0 }
 0x12c   :  { %v361_v7 = vadd.f32 %v360_v3, %v359_v61 }
 0x12d   :  { %v362_v8 = vsel %vm320_vm2, %v300_v4, 0.0 }
 0x12e   :  { %v363_v9 = vadd.f32 %v362_v8, %v361_v7 }
 0x130   :  { %v304_v10 = vpop.f32.mrb[44].mxu0 }
 0x131   :  { %v305_v11 = vadd.f32 %v3398_v15, %v304_v10  ;;  %v3137_v13 = vpop.f32.mrb[45].mxu0 }
 0x132   :  { %v307_v14 = vpop.f32.mrb[46].mxu0 }
 0x133   :  { %v364_v16 = vsel %vm320_vm2, %v305_v11, 0.0  ;;  %v308_v19 = vadd.f32 %v3398_v15, %v307_v14  ;;  %v3138_v21 = vpop.f32.mrb[47].mxu0 }
 0x134   :  { %v365_v22 = vadd.f32 %v364_v16, %v363_v9 }
 0x135   :  { %v366_v23 = vsel %vm320_vm2, %v308_v19, 0.0 }
 0x136   :  { %v367_v24 = vadd.f32 %v366_v23, %v365_v22 }
 0x138   :  { %v312_v27 = vpop.f32.mrb[48].mxu0 }
 0x139   :  { %v313_v28 = vadd.f32 %v3398_v15, %v312_v27  ;;  %v3141_v29 = vpop.f32.mrb[49].mxu0 }
 0x13a   :  { %v315_v32 = vpop.f32.mrb[50].mxu0 }
 0x13b   :  { %v368_v33 = vsel %vm320_vm2, %v313_v28, 0.0  ;;  %v3142_v34 = vpop.f32.mrb[51].mxu0 }
 0x13c   :  { %v369_v35 = vadd.f32 %v368_v33, %v367_v24 }
 0x13e   :  { %v370_v37 = vrot.slane %v369_v35, 4 }
 0x140   :  { %v371_v39 = vadd.f32 %v370_v37, %v369_v35 }
 0x142   :  { %v372_v41 = vrot.slane %v371_v39, 2 }
 0x144   :  { %v373_v42 = vadd.f32 %v372_v41, %v371_v39 }
 0x146   :  { %v374_v44 = vrot.slane %v373_v42, 1 }
 0x148   :  { %v375_v45 = vadd.f32 %v374_v44, %v373_v42 }
 0x14a   :  { %v377_v47 = vmul.f32 0.005, %v375_v45 }
 0x14c   :  { %v3505_v48 = vsub.f32 %v3401_v17, %v377_v47  ;;  %v3508_v49 = vsub.f32 %v3404_v20, %v377_v47  ;;  %v3511_v15 = vsub.f32 %v3411_v26, %v377_v47  ;;  %v3514_v52 = vsub.f32 %v3416_v30, %v377_v47 }
 0x14d   :  { %v3517_v53 = vsub.f32 %v3421_v36, %v377_v47  ;;  %v3520_v54 = vsub.f32 %v3426_v40, %v377_v47  ;;  %v3523_v57 = vsub.f32 %v3431_v46, %v377_v47  ;;  %v3526_v17 = vsub.f32 %v3436_v50, %v377_v47 }
 0x14e   :  { %v3529_v20 = vsub.f32 %v3441_v56, %v377_v47  ;;  %v3532_v26 = vsub.f32 %v3446_v60, %v377_v47  ;;  %v3535_v30 = vsub.f32 %v3451_v2, %v377_v47  ;;  %v3538_v36 = vsub.f32 %v3456_v6, %v377_v47 }
 0x14f   :  { %v3541_v40 = vsub.f32 %v3461_v12, %v377_v47  ;;  %v3544_v46 = vsub.f32 %v3466_v18, %v377_v47  ;;  %v3547_v50 = vsub.f32 %v3471_v25, %v377_v47  ;;  %v3550_v56 = vsub.f32 %v3476_v31, %v377_v47 }
 0x150   :  { %v3553_v60 = vsub.f32 %v3481_v38, %v377_v47  ;;  %v3556_v2 = vsub.f32 %v3486_v43, %v377_v47  ;;  %v3558_v6 = vsub.f32 %v289_v51, %v377_v47  ;;  %v3560_v58 = vsub.f32 %v292_v55, %v377_v47 }
 0x151   :  { %v3562_v12 = vsub.f32 %v297_v63, %v377_v47  ;;  %v3564_v18 = vsub.f32 %v300_v4, %v377_v47  ;;  %v3566_v59 = vsub.f32 %v305_v11, %v377_v47  ;;  %v3568_v25 = vsub.f32 %v308_v19, %v377_v47 }
 0x152   :  { %v3570_v31 = vsub.f32 %v313_v28, %v377_v47  ;;  %v403_v38 = vmul.f32 %v3505_v48, %v3505_v48  ;;  %v404_v43 = vmul.f32 %v3508_v49, %v3508_v49  ;;  %v405_v51 = vmul.f32 %v3511_v15, %v3511_v15 }
 0x153   :  { %v406_v55 = vmul.f32 %v3514_v52, %v3514_v52  ;;  %v407_v0 = vmul.f32 %v3517_v53, %v3517_v53  ;;  %v408_v4 = vmul.f32 %v3520_v54, %v3520_v54  ;;  %v409_v8 = vmul.f32 %v3523_v57, %v3523_v57 }
 0x154   :  { %v428_v61 = vsel %vm320_vm2, %v403_v38, 0.0  ;;  %v429_v62 = vsel %vm320_vm2, %v404_v43, 0.0  ;;  %v431_v1 = vsel %vm320_vm2, %v405_v51, 0.0  ;;  %v410_v11 = vmul.f32 %v3526_v17, %v3526_v17 }
 0x155   :  { %v430_v63 = vadd.f32 %v429_v62, %v428_v61  ;;  %v433_v5 = vsel %vm320_vm2, %v406_v55, 0.0  ;;  %v435_v9 = vsel %vm320_vm2, %v407_v0, 0.0  ;;  %v437_v13 = vsel %vm320_vm2, %v408_v4, 0.0 }
 0x156   :  { %v411_v16 = vmul.f32 %v3529_v20, %v3529_v20  ;;  %v439_v19 = vsel %vm320_vm2, %v409_v8, 0.0  ;;  %v412_v22 = vmul.f32 %v3532_v26, %v3532_v26  ;;  %v441_v23 = vsel %vm320_vm2, %v410_v11, 0.0 }
 0x157   :  { %v432_v3 = vadd.f32 %v431_v1, %v430_v63  ;;  %v413_v27 = vmul.f32 %v3535_v30, %v3535_v30  ;;  %v414_v32 = vmul.f32 %v3538_v36, %v3538_v36  ;;  %v415_v35 = vmul.f32 %v3541_v40, %v3541_v40 }
 0x158   :  { %v443_v28 = vsel %vm320_vm2, %v411_v16, 0.0  ;;  %v445_v33 = vsel %vm320_vm2, %v412_v22, 0.0  ;;  %v416_v41 = vmul.f32 %v3544_v46, %v3544_v46  ;;  %v417_v45 = vmul.f32 %v3547_v50, %v3547_v50 }
 0x159   :  { %v434_v7 = vadd.f32 %v433_v5, %v432_v3  ;;  %v447_v37 = vsel %vm320_vm2, %v413_v27, 0.0  ;;  %v449_v42 = vsel %vm320_vm2, %v414_v32, 0.0  ;;  %v451_v47 = vsel %vm320_vm2, %v415_v35, 0.0 }
 0x15a   :  { %v418_v43 = vmul.f32 %v3550_v56, %v3550_v56  ;;  %v453_v51 = vsel %vm320_vm2, %v416_v41, 0.0  ;;  %v419_v61 = vmul.f32 %v3553_v60, %v3553_v60  ;;  %v455_v62 = vsel %vm320_vm2, %v417_v45, 0.0 }
 0x15b   :  { %v436_v10 = vadd.f32 %v435_v9, %v434_v7  ;;  %v420_v0 = vmul.f32 %v3556_v2, %v3556_v2  ;;  %v421_v4 = vmul.f32 %v3558_v6, %v3558_v6  ;;  %v422_v8 = vmul.f32 %v3560_v58, %v3560_v58 }
 0x15c   :  { %v457_v1 = vsel %vm320_vm2, %v418_v43, 0.0  ;;  %v459_v5 = vsel %vm320_vm2, %v419_v61, 0.0  ;;  %v423_v11 = vmul.f32 %v3562_v12, %v3562_v12  ;;  %v424_v16 = vmul.f32 %v3564_v18, %v3564_v18 }
 0x15d   :  { %v438_v14 = vadd.f32 %v437_v13, %v436_v10  ;;  %v461_v9 = vsel %vm320_vm2, %v420_v0, 0.0  ;;  %v463_v13 = vsel %vm320_vm2, %v421_v4, 0.0  ;;  %v425_v22 = vmul.f32 %v3566_v59, %v3566_v59 }
 0x15e   :  { %v426_v27 = vmul.f32 %v3568_v25, %v3568_v25  ;;  %v427_v32 = vmul.f32 %v3570_v31, %v3570_v31 }
 0x15f   :  { %v440_v21 = vadd.f32 %v439_v19, %v438_v14  ;;  %v465_v19 = vsel %vm320_vm2, %v422_v8, 0.0 }
 0x160   :  { %v473_v35 = vsel %vm320_vm2, %v426_v27, 0.0 }
 0x161   :  { %v442_v24 = vadd.f32 %v441_v23, %v440_v21  ;;  %v467_v23 = vsel %vm320_vm2, %v423_v11, 0.0 }
 0x163   :  { %v444_v29 = vadd.f32 %v443_v28, %v442_v24  ;;  %v469_v28 = vsel %vm320_vm2, %v424_v16, 0.0 }
 0x165   :  { %v446_v34 = vadd.f32 %v445_v33, %v444_v29  ;;  %v471_v33 = vsel %vm320_vm2, %v425_v22, 0.0 }
 0x167   :  { %v448_v39 = vadd.f32 %v447_v37, %v446_v34 }
 0x169   :  { %v450_v44 = vadd.f32 %v449_v42, %v448_v39  ;;  %v475_v39 = vsel %vm320_vm2, %v427_v32, 0.0 }
 0x16b   :  { %v452_v38 = vadd.f32 %v451_v47, %v450_v44 }
 0x16d   :  { %v454_v55 = vadd.f32 %v453_v51, %v452_v38 }
 0x16f   :  { %v456_v63 = vadd.f32 %v455_v62, %v454_v55  ;;  %v3652_v62 = vld [vmem:[%s4436_s3] ss:$0 sm:$0xff] }
 0x171   :  { %v458_v3 = vadd.f32 %v457_v1, %v456_v63 }
 0x173   :  { %v460_v7 = vadd.f32 %v459_v5, %v458_v3 }
 0x175   :  { %v462_v10 = vadd.f32 %v461_v9, %v460_v7 }
 0x177   :  { %v464_v14 = vadd.f32 %v463_v13, %v462_v10 }
 0x179   :  { %v466_v21 = vadd.f32 %v465_v19, %v464_v14 }
 0x17b   :  { %v468_v24 = vadd.f32 %v467_v23, %v466_v21 }
 0x17d   :  { %v470_v29 = vadd.f32 %v469_v28, %v468_v24 }
 0x17f   :  { %v472_v34 = vadd.f32 %v471_v33, %v470_v29 }
 0x181   :  { %v474_v37 = vadd.f32 %v473_v35, %v472_v34 }
 0x183   :  { %v476_v41 = vadd.f32 %v475_v39, %v474_v37 }
 0x185   :  { %v477_v42 = vrot.slane %v476_v41, 4 }
 0x187   :  { %v478_v44 = vadd.f32 %v477_v42, %v476_v41 }
 0x189   :  { %v479_v45 = vrot.slane %v478_v44, 2 }
 0x18b   :  { %v480_v47 = vadd.f32 %v479_v45, %v478_v44 }
 0x18d   :  { %v481_v38 = vrot.slane %v480_v47, 1 }
 0x18f   :  { %v482_v43 = vadd.f32 %v481_v38, %v480_v47 }
 0x191   :  { %v483_v51 = vmul.f32 0.005, %v482_v43 }
 0x193   :  { %v484_v55 = vadd.f32 1e-05, %v483_v51 }
 0x195   :  { %3258 = vrsqrt.f32 %v484_v55 }
 0x19f   :  { %v3647_v61 = vpop.eup %3258 }
 0x1a0   :  { %v498_v63 = vmul.f32 %v3647_v61, %v3541_v40  ;;  %v500_v0 = vmul.f32 %v3647_v61, %v3547_v50  ;;  %v502_v1 = vmul.f32 %v3647_v61, %v3553_v60  ;;  %v503_v3 = vmul.f32 %v3647_v61, %v3556_v2 }
 0x1a1   :  { %v504_v4 = vmul.f32 %v3647_v61, %v3558_v6  ;;  %v505_v5 = vmul.f32 %v3647_v61, %v3560_v58  ;;  %v506_v7 = vmul.f32 %v3647_v61, %v3562_v12  ;;  %v507_v40 = vmul.f32 %v3647_v61, %v3564_v18  ;;  %v3681_v58 = vld [vmem:[%s4437_s4] ss:$0 sm:$0xff]  ;;  %s3264_s4 = smov 32  }
 0x1a2   :  { %v499_v50 = vmul.f32 %v3647_v61, %v3544_v46  ;;  %v508_v60 = vmul.f32 %v3647_v61, %v3566_v59  ;;  %v509_v2 = vmul.f32 %v3647_v61, %v3568_v25  ;;  %v510_v6 = vmul.f32 %v3647_v61, %v3570_v31 }
 0x1a3   :  { %v531_v12 = vmul.f32 %v3652_v62, %v500_v0  ;;  %v533_v18 = vmul.f32 %v3652_v62, %v502_v1  ;;  %v534_v46 = vmul.f32 %v3652_v62, %v503_v3  ;;  %v535_v8 = vmul.f32 %v3652_v62, %v504_v4 }
 0x1a4   :  { %v536_v59 = vmul.f32 %v3652_v62, %v505_v5  ;;  %v537_v25 = vmul.f32 %v3652_v62, %v506_v7  ;;  %v538_v9 = vmul.f32 %v3652_v62, %v507_v40  ;;  %v539_v31 = vmul.f32 %v3652_v62, %v508_v60 }
 0x1a5   :  { %v540_v10 = vmul.f32 %v3652_v62, %v509_v2  ;;  %v3693_v11 = vmul.f32 %v3652_v62, %v498_v63  ;;  %v3696_v13 = vmul.f32 %v3652_v62, %v499_v50  ;;  %v541_v14 = vmul.f32 %v3652_v62, %v510_v6 }
 0x1a6   :  { %v3700_v16 = vadd.f32 %v3681_v58, %v533_v18  ;;  %v3703_v19 = vadd.f32 %v3681_v58, %v534_v46  ;;  %v3706_v21 = vadd.f32 %v3681_v58, %v535_v8  ;;  %v567_v22 = vadd.f32 %v3681_v58, %v536_v59 }
 0x1a7   :  { %v568_v23 = vadd.f32 %v3681_v58, %v537_v25  ;;  %v569_v24 = vadd.f32 %v3681_v58, %v538_v9  ;;  %v570_v27 = vadd.f32 %v3681_v58, %v539_v31  ;;  %v571_v28 = vadd.f32 %v3681_v58, %v540_v10 }
 0x1a8   :  { %v572_v29 = vadd.f32 %v3681_v58, %v541_v14  ;;  %v562_v32 = vadd.f32 %v3681_v58, %v531_v12  ;;  %vm592_vm3 = vcmp.gt.f32.partialorder %v567_v22, 0.0  ;;  %v3716_v33 = vmul.f32 0.2, %v3700_v16 }
 0x1a9   :  { %vm593_vm4 = vcmp.gt.f32.partialorder %v568_v23, 0.0  ;;  %vm594_vm5 = vcmp.gt.f32.partialorder %v569_v24, 0.0  ;;  %vm595_vm6 = vcmp.gt.f32.partialorder %v570_v27, 0.0  ;;  %vm596_vm7 = vcmp.gt.f32.partialorder %v571_v28, 0.0 }
 0x1aa   :  { %vm597_vm8 = vcmp.gt.f32.partialorder %v572_v29, 0.0  ;;  %v3719_v34 = vmul.f32 0.2, %v3703_v19  ;;  %v3722_v35 = vmul.f32 0.2, %v3706_v21  ;;  %v492_v39 = vmul.f32 %v3647_v61, %v3523_v57 }
 0x1ab   :  { %v617_v37 = vmul.f32 0.2, %v567_v22  ;;  %v618_v41 = vmul.f32 0.2, %v568_v23  ;;  %v619_v42 = vmul.f32 0.2, %v569_v24  ;;  %v493_v45 = vmul.f32 %v3647_v61, %v3526_v17 }
 0x1ac   :  { %v620_v44 = vmul.f32 0.2, %v570_v27  ;;  %vm591_vm9 = vcmp.gt.f32.partialorder %v3706_v21, 0.0  ;;  %v621_v47 = vmul.f32 0.2, %v571_v28  ;;  %v523_v51 = vmul.f32 %v3652_v62, %v492_v39 }
 0x1ad   :  { %v622_v38 = vmul.f32 0.2, %v572_v29  ;;  %v642_v43 = vsel %vm592_vm3, %v567_v22, %v617_v37  ;;  %v643_v55 = vsel %vm593_vm4, %v568_v23, %v618_v41  ;;  %v644_v63 = vsel %vm594_vm5, %v569_v24, %v619_v42 }
 0x1ae   :  { %v645_v57 = vsel %vm595_vm6, %v570_v27, %v620_v44  ;;  %667 = vst.msk [vmem:[#allocation2 + $0x98] sm:$0xff] %vm320_vm2, %v642_v43  ;;  %v524_v0 = vmul.f32 %v3652_v62, %v493_v45  ;;  %v646_v17 = vsel %vm596_vm7, %v571_v28, %v621_v47  ;;  %668 = vst.msk [vmem:[#allocation2 + $0xa0] sm:$0xff] %vm320_vm2, %v643_v55  ;;  %vm587_vm11 = vcmp.gt.f32.partialorder %v562_v32, 0.0 }
 0x1af   :  { %v647_v1 = vsel %vm597_vm8, %v572_v29, %v622_v38  ;;  %669 = vst.msk [vmem:[#allocation2 + $0xa8] sm:$0xff] %vm320_vm2, %v644_v63  ;;  %670 = vst.msk [vmem:[#allocation2 + $0xb0] sm:$0xff] %vm320_vm2, %v645_v57  ;;  %v554_v3 = vadd.f32 %v3681_v58, %v523_v51  ;;  %v487_v4 = vmul.f32 %v3647_v61, %v3508_v49  ;;  %vm590_vm3 = vcmp.gt.f32.partialorder %v3703_v19, 0.0 }
 0x1b0   :  { %671 = vst.msk [vmem:[#allocation2 + $0xb8] sm:$0xff] %vm320_vm2, %v646_v17  ;;  %672 = vst.msk [vmem:[#allocation2 + $0xc0] sm:$0xff] %vm320_vm2, %v647_v1  ;;  %v555_v5 = vadd.f32 %v3681_v58, %v524_v0  ;;  %v488_v7 = vmul.f32 %v3647_v61, %v3511_v15  ;;  %v486_v40 = vmul.f32 %v3647_v61, %v3505_v48  ;;  %v612_v48 = vmul.f32 0.2, %v562_v32 }
 0x1b1   :  { %v491_v50 = vmul.f32 %v3647_v61, %v3520_v54  ;;  %vm579_vm10 = vcmp.gt.f32.partialorder %v554_v3, 0.0  ;;  %v604_v60 = vmul.f32 0.2, %v554_v3  ;;  %v518_v2 = vmul.f32 %v3652_v62, %v487_v4 }
 0x1b2   :  { %vm580_vm12 = vcmp.gt.f32.partialorder %v555_v5, 0.0  ;;  %v605_v49 = vmul.f32 0.2, %v555_v5  ;;  %v519_v6 = vmul.f32 %v3652_v62, %v488_v7  ;;  %v517_v12 = vmul.f32 %v3652_v62, %v486_v40 }
 0x1b3   :  { %v629_v18 = vsel %vm579_vm10, %v554_v3, %v604_v60  ;;  %v549_v15 = vadd.f32 %v3681_v58, %v518_v2  ;;  %v522_v46 = vmul.f32 %v3652_v62, %v491_v50  ;;  %v561_v25 = vadd.f32 %v3681_v58, %v3696_v13 }
 0x1b4   :  { %v630_v8 = vsel %vm580_vm12, %v555_v5, %v605_v49  ;;  %654 = vst.msk [vmem:[#allocation2 + $0x30] sm:$0xff] %vm320_vm2, %v629_v18  ;;  %v550_v54 = vadd.f32 %v3681_v58, %v519_v6  ;;  %v548_v59 = vadd.f32 %v3681_v58, %v517_v12  ;;  %v637_v10 = vsel %vm587_vm11, %v562_v32, %v612_v48 }
 0x1b5   :  { %655 = vst.msk [vmem:[#allocation2 + $0x38] sm:$0xff] %vm320_vm2, %v630_v8  ;;  %vm574_vm13 = vcmp.gt.f32.partialorder %v549_v15, 0.0  ;;  %v599_v9 = vmul.f32 0.2, %v549_v15  ;;  %v553_v31 = vadd.f32 %v3681_v58, %v522_v46  ;;  %662 = vst.msk [vmem:[#allocation2 + $0x70] sm:$0xff] %vm320_vm2, %v637_v10  ;;  %vm586_vm1 = vcmp.gt.f32.partialorder %v561_v25, 0.0 }
 0x1b6   :  { %vm575_vm14 = vcmp.gt.f32.partialorder %v550_v54, 0.0  ;;  %v600_v14 = vmul.f32 0.2, %v550_v54  ;;  %vm573_vm15 = vcmp.gt.f32.partialorder %v548_v59, 0.0  ;;  %v598_v22 = vmul.f32 0.2, %v548_v59 }
 0x1b7   :  { %v624_v23 = vsel %vm574_vm13, %v549_v15, %v599_v9  ;;  %vm578_vm0 = vcmp.gt.f32.partialorder %v553_v31, 0.0  ;;  %v603_v24 = vmul.f32 0.2, %v553_v31  ;;  %v611_v28 = vmul.f32 0.2, %v561_v25 }
 0x1b8   :  { %v625_v27 = vsel %vm575_vm14, %v550_v54, %v600_v14  ;;  %649 = vst.msk [vmem:[#allocation2 + $0x8] sm:$0xff] %vm320_vm2, %v624_v23  ;;  %v623_v13 = vsel %vm573_vm15, %v548_v59, %v598_v22  ;;  %v641_v29 = vsel %vm591_vm9, %v3706_v21, %v3722_v35  ;;  %v490_v37 = vmul.f32 %v3647_v61, %v3517_v53  ;;  %v1330_v23 = vld [vmem:[#allocation2 + $0x99] ss:$2 sm:$0xf] }
 0x1b9   :  { %650 = vst.msk [vmem:[#allocation2 + $0x10] sm:$0xff] %vm320_vm2, %v625_v27  ;;  %648 = vst.msk [vmem:[#allocation2] sm:$0xff] %vm320_vm2, %v623_v13  ;;  %v628_v32 = vsel %vm578_vm0, %v553_v31, %v603_v24  ;;  %v560_v39 = vadd.f32 %v3681_v58, %v3693_v11  ;;  %v495_v41 = vmul.f32 %v3647_v61, %v3532_v26  ;;  %vm589_vm4 = vcmp.gt.f32.partialorder %v3700_v16, 0.0 }
 0x1ba   :  { %666 = vst.msk [vmem:[#allocation2 + $0x90] sm:$0xff] %vm320_vm2, %v641_v29  ;;  %653 = vst.msk [vmem:[#allocation2 + $0x28] sm:$0xff] %vm320_vm2, %v628_v32  ;;  %v636_v42 = vsel %vm586_vm1, %v561_v25, %v611_v28  ;;  %v521_v21 = vmul.f32 %v3652_v62, %v490_v37  ;;  %v640_v11 = vsel %vm590_vm3, %v3703_v19, %v3719_v34  ;;  %vm674_vm13 = vcmask 257024  }
 0x1bb   :  { %661 = vst.msk [vmem:[#allocation2 + $0x68] sm:$0xff] %vm320_vm2, %v636_v42  ;;  %vm585_vm5 = vcmp.gt.f32.partialorder %v560_v39, 0.0  ;;  %v610_v35 = vmul.f32 0.2, %v560_v39  ;;  %v526_v53 = vmul.f32 %v3652_v62, %v495_v41  ;;  %v639_v26 = vsel %vm589_vm4, %v3700_v16, %v3716_v33  ;;  %665 = vst.msk [vmem:[#allocation2 + $0x88] sm:$0xff] %vm320_vm2, %v640_v11 }
 0x1bc   :  { %v910_v44 = vld [vmem:[#allocation2 + $0x33] ss:$2 sm:$0xf]  ;;  %v552_v45 = vadd.f32 %v3681_v58, %v521_v21  ;;  %664 = vst.msk [vmem:[#allocation2 + $0x80] sm:$0xff] %vm320_vm2, %v639_v26  ;;  %v501_v43 = vmul.f32 %v3647_v61, %v3550_v56  ;;  %v489_v16 = vmul.f32 %v3647_v61, %v3514_v52  ;;  %v494_v55 = vmul.f32 %v3647_v61, %v3529_v20 }
 0x1bd   :  { %912 = vrot.lane.b32.xlu1 %v910_v44, %s3264_s4  ;;  %v635_v47 = vsel %vm585_vm5, %v560_v39, %v610_v35  ;;  %v557_v38 = vadd.f32 %v3681_v58, %v526_v53  ;;  %v497_v52 = vmul.f32 %v3647_v61, %v3538_v36  ;;  %v916_v20 = vld [vmem:[#allocation2 + $0x34] ss:$2 sm:$0xf]  ;;  %v496_v50 = vmul.f32 %v3647_v61, %v3535_v30  ;;  %v922_v60 = vld [vmem:[#allocation2 + $0x35] ss:$2 sm:$0xf] }
 0x1be   :  { %660 = vst.msk [vmem:[#allocation2 + $0x60] sm:$0xff] %vm320_vm2, %v635_v47  ;;  %vm577_vm6 = vcmp.gt.f32.partialorder %v552_v45, 0.0  ;;  %v602_v19 = vmul.f32 0.2, %v552_v45  ;;  %v532_v57 = vmul.f32 %v3652_v62, %v501_v43  ;;  %v520_v0 = vmul.f32 %v3652_v62, %v489_v16 }
 0x1bf   :  { %vm582_vm7 = vcmp.gt.f32.partialorder %v557_v38, 0.0  ;;  %v607_v33 = vmul.f32 0.2, %v557_v38  ;;  %v525_v1 = vmul.f32 %v3652_v62, %v494_v55  ;;  %v528_v3 = vmul.f32 %v3652_v62, %v497_v52  ;;  %v1123_v61 = vld [vmem:[#allocation2 + $0x70] ss:$2 sm:$0xf] }
 0x1c0   :  { %v704_v34 = vld [vmem:[#allocation2 + $0xb] ss:$2 sm:$0xf]  ;;  %v711_v51 = vld [vmem:[#allocation2 + $0xc] ss:$2 sm:$0xf]  ;;  %v627_v56 = vsel %vm577_vm6, %v552_v45, %v602_v19  ;;  %v563_v4 = vadd.f32 %v3681_v58, %v532_v57  ;;  %v551_v5 = vadd.f32 %v3681_v58, %v520_v0  ;;  %v527_v30 = vmul.f32 %v3652_v62, %v496_v50 }
 0x1c1   :  { %706 = vrot.lane.b32.xlu0 %v704_v34, %s3264_s4  ;;  %713 = vrot.lane.b32.xlu1 %v711_v51, %s3265_s27  ;;  %v632_v63 = vsel %vm582_vm7, %v557_v38, %v607_v33  ;;  %652 = vst.msk [vmem:[#allocation2 + $0x20] sm:$0xff] %vm320_vm2, %v627_v56  ;;  %v677_v17 = vld [vmem:[#allocation2 + $0x1] ss:$2 sm:$0xf]  ;;  %v556_v40 = vadd.f32 %v3681_v58, %v525_v1  ;;  %vm682_vm14 = vcmask 519424   ;;  %vm690_vm15 = vcmask 781824  }
 0x1c2   :  { %657 = vst.msk [vmem:[#allocation2 + $0x48] sm:$0xff] %vm320_vm2, %v632_v63  ;;  %v890_v7 = vld [vmem:[#allocation2 + $0x29] ss:$2 sm:$0xf]  ;;  %vm576_vm8 = vcmp.gt.f32.partialorder %v551_v5, 0.0  ;;  %vm588_vm9 = vcmp.gt.f32.partialorder %v563_v4, 0.0  ;;  %v559_v49 = vadd.f32 %v3681_v58, %v528_v3  ;;  %v558_v25 = vadd.f32 %v3681_v58, %v527_v30 }
 0x1c3   :  { %v718_v36 = vld [vmem:[#allocation2 + $0xd] ss:$2 sm:$0xf]  ;;  %v601_v2 = vmul.f32 0.2, %v551_v5  ;;  %vm581_vm10 = vcmp.gt.f32.partialorder %v556_v40, 0.0 }
 0x1c4   :  { %v685_v6 = vld [vmem:[#allocation2 + $0x2] ss:$2 sm:$0xf]  ;;  %v606_v12 = vmul.f32 0.2, %v556_v40  ;;  %vm584_vm11 = vcmp.gt.f32.partialorder %v559_v49, 0.0 }
 0x1c5   :  { %679 = vrot.lane.b32.xlu0 %v677_v17, %s3264_s4  ;;  %918 = vrot.lane.b32.xlu1 %v916_v20, %s3265_s27  ;;  %v626_v18 = vsel %vm576_vm8, %v551_v5, %v601_v2  ;;  %v613_v15 = vmul.f32 0.2, %v563_v4  ;;  %v896_v8 = vld [vmem:[#allocation2 + $0x2a] ss:$2 sm:$0xf]  ;;  %vm583_vm12 = vcmp.gt.f32.partialorder %v558_v25, 0.0 }
 0x1c6   :  { %651 = vst.msk [vmem:[#allocation2 + $0x18] sm:$0xff] %vm320_vm2, %v626_v18  ;;  %v631_v46 = vsel %vm581_vm10, %v556_v40, %v606_v12  ;;  %v609_v54 = vmul.f32 0.2, %v559_v49  ;;  %v693_v9 = vld [vmem:[#allocation2 + $0x3] ss:$2 sm:$0xf] }
 0x1c7   :  { %656 = vst.msk [vmem:[#allocation2 + $0x40] sm:$0xff] %vm320_vm2, %v631_v46  ;;  %v638_v48 = vsel %vm588_vm9, %v563_v4, %v613_v15  ;;  %v1324_v62 = vld [vmem:[#allocation2 + $0x98] ss:$2 sm:$0xf]  ;;  %v608_v31 = vmul.f32 0.2, %v558_v25 }
 0x1c8   :  { %663 = vst.msk [vmem:[#allocation2 + $0x78] sm:$0xff] %vm320_vm2, %v638_v48  ;;  %v634_v59 = vsel %vm584_vm11, %v559_v49, %v609_v54  ;;  %v902_v10 = vld [vmem:[#allocation2 + $0x2b] ss:$2 sm:$0xf]  ;;  %vm698_vm0 = vcmask 1044224   ;;  %vm784_vm1 = vcmask 523524  }
 0x1c9   :  { %892 = vrot.lane.b32.xlu0 %v890_v7, %s3264_s4  ;;  %720 = vrot.lane.b32.xlu1 %v718_v36, %s3266_s28  ;;  %659 = vst.msk [vmem:[#allocation2 + $0x58] sm:$0xff] %vm320_vm2, %v634_v59  ;;  %v1130_v14 = vld [vmem:[#allocation2 + $0x71] ss:$2 sm:$0xf]  ;;  %v633_v22 = vsel %vm583_vm12, %v558_v25, %v608_v31  ;;  %vm792_vm3 = vcmask 785924   ;;  %vm800_vm4 = vcmask 1048324  }
 0x1ca   :  { %658 = vst.msk [vmem:[#allocation2 + $0x50] sm:$0xff] %vm320_vm2, %v633_v22  ;;  %v1116_v58 = vld [vmem:[#allocation2 + $0x6f] ss:$2 sm:$0xf]  ;;  %vm776_vm2 = vcmask 261124   ;;  %vm1883_vm5 = vcmask 523264  }
 0x1cb   :  { %v908_v24 = vld [vmem:[#allocation2 + $0x32] ss:$2 sm:$0xf]  ;;  %v701_v27 = vld [vmem:[#allocation2 + $0xa] ss:$2 sm:$0xf] }
 0x1cc   :  { %909 = vst.msk [vmem:[#allocation3 + $0x28] sm:$0xf] %vm674_vm13, %v908_v24  ;;  %702 = vst.msk [vmem:[#allocation3 + $0x8] sm:$0xf] %vm674_vm13, %v701_v27  ;;  %vm1972_vm10 = vcmask 516096   ;;  %vm1979_vm11 = vcmask 1040896  }
 0x1cd   :  { %687 = vrot.lane.b32.xlu0 %v685_v6, %s3265_s27  ;;  %924 = vrot.lane.b32.xlu1 %v922_v60, %s3266_s28  ;;  %v673_v13 = vld [vmem:[#allocation2] ss:$2 sm:$0xf]  ;;  %v1318_v28 = vld [vmem:[#allocation2 + $0x97] ss:$2 sm:$0xf] }
 0x1ce   :  { %v759_v29 = vld [vmem:[#allocation2 + $0x20] ss:$2 sm:$0xf]  ;;  %675 = vst.msk [vmem:[#allocation3] sm:$0xf] %vm674_vm13, %v673_v13 }
 0x1cf   :  { %v888_v32 = vld [vmem:[#allocation2 + $0x28] ss:$2 sm:$0xf]  ;;  %v1092_v37 = vld [vmem:[#allocation2 + $0x65] ss:$2 sm:$0xf] }
 0x1d0   :  { %889 = vst.msk [vmem:[#allocation3 + $0x20] sm:$0xf] %vm674_vm13, %v888_v32  ;;  %v963_v39 = vld [vmem:[#allocation2 + $0x48] ss:$2 sm:$0xf] }
 0x1d1   :  { %898 = vrot.lane.b32.xlu0 %v896_v8, %s3265_s27  ;;  %1125 = vrot.lane.b32.xlu1 %v1123_v61, %s3265_s27  ;;  %v1298_v41 = vld [vmem:[#allocation2 + $0x8d] ss:$2 sm:$0xf]  ;;  %v766_v42 = vld [vmem:[#allocation2 + $0x21] ss:$2 sm:$0xf] }
 0x1d2   :  { %v1113_v21 = vld [vmem:[#allocation2 + $0x6e] ss:$2 sm:$0xf]  ;;  %v1099_v35 = vld [vmem:[#allocation2 + $0x66] ss:$2 sm:$0xf] }
 0x1d3   :  { %v970_v53 = vld [vmem:[#allocation2 + $0x49] ss:$2 sm:$0xf]  ;;  %1114 = vst.msk [vmem:[#allocation3 + $0x48] sm:$0xf] %vm674_vm13, %v1113_v21 }
 0x1d4   :  { %v1316_v44 = vld [vmem:[#allocation2 + $0x96] ss:$2 sm:$0xf]  ;;  %v1089_v11 = vld [vmem:[#allocation2 + $0x64] ss:$2 sm:$0xf] }
 0x1d5   :  { %695 = vrot.lane.b32.xlu0 %v693_v9, %s3266_s28  ;;  %1326 = vrot.lane.b32.xlu1 %v1324_v62, %s3265_s27  ;;  %1317 = vst.msk [vmem:[#allocation3 + $0x68] sm:$0xf] %vm674_vm13, %v1316_v44  ;;  %v1304_v26 = vld [vmem:[#allocation2 + $0x8e] ss:$2 sm:$0xf] }
 0x1d6   :  { %v1171_v45 = vld [vmem:[#allocation2 + $0x84] ss:$2 sm:$0xf]  ;;  %1090 = vst.msk [vmem:[#allocation3 + $0x40] sm:$0xf] %vm674_vm13, %v1089_v11 }
 0x1d7   :  { %v1296_v47 = vld [vmem:[#allocation2 + $0x8c] ss:$2 sm:$0xf]  ;;  %v1106_v38 = vld [vmem:[#allocation2 + $0x67] ss:$2 sm:$0xf] }
 0x1d8   :  { %1297 = vst.msk [vmem:[#allocation3 + $0x60] sm:$0xf] %vm674_vm13, %v1296_v47  ;;  %v1371_v43 = vld [vmem:[#allocation2 + $0xac] ss:$2 sm:$0xf] }
 0x1d9   :  { %904 = vrot.lane.b32.xlu0 %v902_v10, %s3266_s28  ;;  %1132 = vrot.lane.b32.xlu1 %v1130_v14, %s3266_s28  ;;  %v1310_v16 = vld [vmem:[#allocation2 + $0x8f] ss:$2 sm:$0xf]  ;;  %v1178_v19 = vld [vmem:[#allocation2 + $0x85] ss:$2 sm:$0xf] }
 0x1da   :  { %v1378_v33 = vld [vmem:[#allocation2 + $0xad] ss:$2 sm:$0xf]  ;;  %v749_v34 = vld [vmem:[#allocation2 + $0x1e] ss:$2 sm:$0xf] }
 0x1db   :  { %v752_v51 = vld [vmem:[#allocation2 + $0x1f] ss:$2 sm:$0xf]  ;;  %v1007_v55 = vld [vmem:[#allocation2 + $0x47] ss:$2 sm:$0xf] }
 0x1dc   :  { %750 = vst.msk [vmem:[#allocation3 + $0x18] sm:$0xf] %vm674_vm13, %v749_v34  ;;  %v953_v56 = vld [vmem:[#allocation2 + $0x46] ss:$2 sm:$0xf]  ;;  %v1009_v57 = vrot.slane %v1007_v55, 4 }
 0x1dd   :  { %1118 = vrot.lane.b32.xlu0 %v1116_v58, %s3264_s4  ;;  %1332 = vrot.lane.b32.xlu1 %v1330_v23, %s3266_s28  ;;  %v956_v63 = vld [vmem:[#allocation2 + $0x47] ss:$2 sm:$0xf]  ;;  %v814_v52 = vld [vmem:[#allocation2 + $0x20] ss:$2 sm:$0xf] }
 0x1de   :  { %954 = vst.msk [vmem:[#allocation3 + $0x38] sm:$0xf] %vm674_vm13, %v953_v56  ;;  %v1002_v0 = vld [vmem:[#allocation2 + $0x46] ss:$2 sm:$0xf]  ;;  %v816_v3 = vrot.slane %v814_v52, 4 }
 0x1df   :  { %v1004_v17 = vrot.slane %v1002_v0, 4  ;;  %v725_v20 = vld [vmem:[#allocation2 + $0x14] ss:$2 sm:$0xf] }
 0x1e0   :  { %726 = vst.msk [vmem:[#allocation3 + $0x10] sm:$0xf] %vm674_vm13, %v725_v20  ;;  %v929_v1 = vld [vmem:[#allocation2 + $0x3c] ss:$2 sm:$0xf] }
 0x1e1   :  { %1320 = vrot.lane.b32.xlu0 %v1318_v28, %s3264_s4  ;;  %761 = vrot.lane.b32.xlu1 %v759_v29, %s3265_s27  ;;  %1006 = vst.msk [vmem:[#allocation3 + $0x28] sm:$0xf0] %vm776_vm2, %v1004_v17  ;;  %v1014_v4 = vld [vmem:[#allocation2 + $0x48] ss:$2 sm:$0xf] }
 0x1e2   :  { %930 = vst.msk [vmem:[#allocation3 + $0x30] sm:$0xf] %vm674_vm13, %v929_v1  ;;  %v728_v5 = vld [vmem:[#allocation2 + $0x15] ss:$2 sm:$0xf]  ;;  %v1016_v6 = vrot.slane %v1014_v4, 4 }
 0x1e3   :  { %v1161_v7 = vld [vmem:[#allocation2 + $0x82] ss:$2 sm:$0xf]  ;;  %v1361_v40 = vld [vmem:[#allocation2 + $0xaa] ss:$2 sm:$0xf] }
 0x1e4   :  { %1162 = vst.msk [vmem:[#allocation3 + $0x58] sm:$0xf] %vm674_vm13, %v1161_v7  ;;  %v1210_v36 = vld [vmem:[#allocation2 + $0x82] ss:$2 sm:$0xf] }
 0x1e5   :  { %1094 = vrot.lane.b32.xlu0 %v1092_v37, %s3264_s4  ;;  %965 = vrot.lane.b32.xlu1 %v963_v39, %s3265_s27  ;;  %v932_v50 = vld [vmem:[#allocation2 + $0x3d] ss:$2 sm:$0xf]  ;;  %v1212_v2 = vrot.slane %v1210_v36, 4  ;;  %1362 = vst.msk [vmem:[#allocation3 + $0x78] sm:$0xf] %vm674_vm13, %v1361_v40 }
 0x1e6   :  { %v821_v60 = vld [vmem:[#allocation2 + $0x21] ss:$2 sm:$0xf]  ;;  %v1410_v49 = vld [vmem:[#allocation2 + $0xaa] ss:$2 sm:$0xf] }
 0x1e7   :  { %v1412_v12 = vrot.slane %v1410_v49, 4  ;;  %v1137_v18 = vld [vmem:[#allocation2 + $0x78] ss:$2 sm:$0xf]  ;;  %1214 = vst.msk [vmem:[#allocation3 + $0x48] sm:$0xf0] %vm776_vm2, %v1212_v2 }
 0x1e8   :  { %1138 = vst.msk [vmem:[#allocation3 + $0x50] sm:$0xf] %vm674_vm13, %v1137_v18  ;;  %v1337_v15 = vld [vmem:[#allocation2 + $0xa0] ss:$2 sm:$0xf]  ;;  %v823_v25 = vrot.slane %v821_v60, 4 }
 0x1e9   :  { %1300 = vrot.lane.b32.xlu0 %v1298_v41, %s3264_s4  ;;  %768 = vrot.lane.b32.xlu1 %v766_v42, %s3266_s28  ;;  %v802_v46 = vld [vmem:[#allocation2 + $0x1e] ss:$2 sm:$0xf]  ;;  %1414 = vst.msk [vmem:[#allocation3 + $0x68] sm:$0xf0] %vm776_vm2, %v1412_v12  ;;  %v3165_v49 = vld [vmem:[%s4438_s5 + $0x8] sm:$0xff]  }
 0x1ea   :  { %1338 = vst.msk [vmem:[#allocation3 + $0x70] sm:$0xf] %vm674_vm13, %v1337_v15  ;;  %v804_v30 = vrot.slane %v802_v46, 4  ;;  %v772_v61 = vld [vmem:[#allocation2 + $0x14] ss:$2 sm:$0xf] }
 0x1eb   :  { %v735_v48 = vld [vmem:[#allocation2 + $0x16] ss:$2 sm:$0xf]  ;;  %v1021_v8 = vld [vmem:[#allocation2 + $0x49] ss:$2 sm:$0xf] }
 0x1ec   :  { %v774_v54 = vrot.slane %v772_v61, 4  ;;  %v859_v59 = vld [vmem:[#allocation2 + $0x32] ss:$2 sm:$0xf]  ;;  %806 = vst.msk [vmem:[#allocation3 + $0x8] sm:$0xf0] %vm776_vm2, %v804_v30 }
 0x1ed   :  { %1101 = vrot.lane.b32.xlu0 %v1099_v35, %s3265_s27  ;;  %972 = vrot.lane.b32.xlu1 %v970_v53, %s3266_s28  ;;  %v861_v9 = vrot.slane %v859_v59, 4  ;;  %v976_v62 = vld [vmem:[#allocation2 + $0x3c] ss:$2 sm:$0xf]  ;;  %v1023_v13 = vrot.slane %v1021_v8, 4  ;;  %v3167_v30 = vld [vmem:[%s4438_s5 + $0x10] sm:$0xff]  }
 0x1ee   :  { %777 = vst.msk [vmem:[#allocation3] sm:$0xf0] %vm776_vm2, %v774_v54  ;;  %v978_v31 = vrot.slane %v976_v62, 4  ;;  %v1059_v10 = vld [vmem:[#allocation2 + $0x5a] ss:$2 sm:$0xf] }
 0x1ef   :  { %863 = vst.msk [vmem:[#allocation3 + $0x18] sm:$0xf0] %vm776_vm2, %v861_v9  ;;  %v1061_v14 = vrot.slane %v1059_v10, 4  ;;  %v1184_v22 = vld [vmem:[#allocation2 + $0x78] ss:$2 sm:$0xf] }
 0x1f0   :  { %v939_v58 = vld [vmem:[#allocation2 + $0x3e] ss:$2 sm:$0xf]  ;;  %v794_v23 = vld [vmem:[#allocation2 + $0x17] ss:$2 sm:$0xf] }
 0x1f1   :  { %1306 = vrot.lane.b32.xlu0 %v1304_v26, %s3265_s27  ;;  %1173 = vrot.lane.b32.xlu1 %v1171_v45, %s3265_s27  ;;  %980 = vst.msk [vmem:[#allocation3 + $0x20] sm:$0xf0] %vm776_vm2, %v978_v31  ;;  %v1186_v24 = vrot.slane %v1184_v22, 4  ;;  %v1384_v27 = vld [vmem:[#allocation2 + $0xa0] ss:$2 sm:$0xf] }
 0x1f2   :  { %1063 = vst.msk [vmem:[#allocation3 + $0x38] sm:$0xf0] %vm776_vm2, %v1061_v14  ;;  %v1386_v28 = vrot.slane %v1384_v27, 4  ;;  %v829_v29 = vld [vmem:[#allocation2 + $0x28] ss:$2 sm:$0xf] }
 0x1f3   :  { %1188 = vst.msk [vmem:[#allocation3 + $0x40] sm:$0xf0] %vm776_vm2, %v1186_v24  ;;  %v831_v32 = vrot.slane %v829_v29, 4  ;;  %v1267_v37 = vld [vmem:[#allocation2 + $0x96] ss:$2 sm:$0xf] }
 0x1f4   :  { %1388 = vst.msk [vmem:[#allocation3 + $0x60] sm:$0xf0] %vm776_vm2, %v1386_v28  ;;  %v1269_v39 = vrot.slane %v1267_v37, 4  ;;  %v1029_v41 = vld [vmem:[#allocation2 + $0x50] ss:$2 sm:$0xf] }
 0x1f5   :  { %1108 = vrot.lane.b32.xlu0 %v1106_v38, %s3266_s28  ;;  %1373 = vrot.lane.b32.xlu1 %v1371_v43, %s3265_s27  ;;  %v742_v42 = vld [vmem:[#allocation2 + $0x17] ss:$2 sm:$0xf]  ;;  %v995_v21 = vld [vmem:[#allocation2 + $0x3f] ss:$2 sm:$0xf] }
 0x1f6   :  { %833 = vst.msk [vmem:[#allocation3 + $0x10] sm:$0xf0] %vm776_vm2, %v831_v32  ;;  %v1031_v35 = vrot.slane %v1029_v41, 4  ;;  %v1467_v53 = vld [vmem:[#allocation2 + $0xbe] ss:$2 sm:$0xf] }
 0x1f7   :  { %v796_v44 = vrot.slane %v794_v23, 4  ;;  %1271 = vst.msk [vmem:[#allocation3 + $0x58] sm:$0xf0] %vm776_vm2, %v1269_v39  ;;  %v1469_v11 = vrot.slane %v1467_v53, 4  ;;  %v997_v43 = vrot.slane %v995_v21, 4  ;;  %v3163_v4 = vld [vmem:[%s4438_s5] sm:$0xff]  }
 0x1f8   :  { %v1237_v26 = vld [vmem:[#allocation2 + $0x8c] ss:$2 sm:$0xf]  ;;  %1033 = vst.msk [vmem:[#allocation3 + $0x30] sm:$0xf0] %vm776_vm2, %v1031_v35  ;;  %v3168_v61 = vld [vmem:[%s4438_s5 + $0x58] sm:$0xff]  }
 0x1f9   :  { %1312 = vrot.lane.b32.xlu0 %v1310_v16, %s3266_s28  ;;  %1180 = vrot.lane.b32.xlu1 %v1178_v19, %s3266_s28  ;;  %v1239_v45 = vrot.slane %v1237_v26, 4  ;;  %v1437_v47 = vld [vmem:[#allocation2 + $0xb4] ss:$2 sm:$0xf]  ;;  %1471 = vst.msk [vmem:[#allocation3 + $0x78] sm:$0xf0] %vm776_vm2, %v1469_v11 }
 0x1fa   :  { %v1439_v38 = vrot.slane %v1437_v47, 4  ;;  %v946_v16 = vld [vmem:[#allocation2 + $0x3f] ss:$2 sm:$0xf]  ;;  %v3172_v28 = vld [vmem:[%s4438_s5 + $0x68] sm:$0xff]   ;;  %v3175_v11 = vld [vmem:[%s4438_s5 + $0x30] sm:$0xff]  }
 0x1fb   :  { %1241 = vst.msk [vmem:[#allocation3 + $0x50] sm:$0xf0] %vm776_vm2, %v1239_v45  ;;  %v1215_v19 = vld [vmem:[#allocation2 + $0x83] ss:$2 sm:$0xf]  ;;  %v3169_v62 = vld [vmem:[%s4438_s5 + $0x18] sm:$0xff]  }
 0x1fc   :  { %1441 = vst.msk [vmem:[#allocation3 + $0x70] sm:$0xf0] %vm776_vm2, %v1439_v38  ;;  %v1164_v34 = vld [vmem:[#allocation2 + $0x83] ss:$2 sm:$0xf]  ;;  %v3176_v26 = vld [vmem:[%s4438_s5 + $0x78] sm:$0xff]  }
 0x1fd   :  { %754 = vrot.lane.b32.xlu0 %v752_v51, %s3264_s4  ;;  %1380 = vrot.lane.b32.xlu1 %v1378_v33, %s3266_s28  ;;  %v1217_v33 = vrot.slane %v1215_v19, 4  ;;  %v1415_v51 = vld [vmem:[#allocation2 + $0xab] ss:$2 sm:$0xf]  ;;  %v3170_v31 = vld [vmem:[%s4438_s5 + $0x60] sm:$0xff]  }
 0x1fe   :  { %v1417_v55 = vrot.slane %v1415_v51, 4  ;;  %v1364_v56 = vld [vmem:[#allocation2 + $0xab] ss:$2 sm:$0xf] }
 0x1ff   :  { %v1140_v0 = vld [vmem:[#allocation2 + $0x79] ss:$2 sm:$0xf]  ;;  %v1229_v17 = vld [vmem:[#allocation2 + $0x85] ss:$2 sm:$0xf] }
 0x200   :  { %v1340_v20 = vld [vmem:[#allocation2 + $0xa1] ss:$2 sm:$0xf]  ;;  %v1231_v7 = vrot.slane %v1229_v17, 4  ;;  %v3173_v41 = vld [vmem:[%s4438_s5 + $0x28] sm:$0xff]  }
 0x201   :  { %958 = vrot.lane.b32.xlu0 %v956_v63, %s3264_s4  ;;  %1010 = vrot.lane.b32.xlu1 %v1009_v57, %s3264_s4  ;;  %v1222_v63 = vld [vmem:[#allocation2 + $0x84] ss:$2 sm:$0xf]  ;;  %v1422_v57 = vld [vmem:[#allocation2 + $0xac] ss:$2 sm:$0xf] }
 0x202   :  { %v1224_v52 = vrot.slane %v1222_v63, 4  ;;  %v1424_v1 = vrot.slane %v1422_v57, 4  ;;  %v1429_v36 = vld [vmem:[#allocation2 + $0xad] ss:$2 sm:$0xf] }
 0x203   :  { %v1147_v40 = vld [vmem:[#allocation2 + $0x7a] ss:$2 sm:$0xf]  ;;  %v1347_v60 = vld [vmem:[#allocation2 + $0xa2] ss:$2 sm:$0xf] }
 0x204   :  { %v1431_v2 = vrot.slane %v1429_v36, 4  ;;  %v807_v18 = vld [vmem:[#allocation2 + $0x1f] ss:$2 sm:$0xf] }
 0x205   :  { %730 = vrot.lane.b32.xlu0 %v728_v5, %s3264_s4  ;;  %817 = vrot.lane.b32.xlu1 %v816_v3, %s3265_s27  ;;  %v3162_v3 = vld [vmem:[%s4438_s5 + $0x40] sm:$0xff]   ;;  %v3164_v5 = vld [vmem:[%s4438_s5 + $0x48] sm:$0xff]   ;;  %v778_v46 = vld [vmem:[#allocation2 + $0x15] ss:$2 sm:$0xf] }
 0x206   :  { %2945 = vmatprep.subr.bf16.mxu1 %v3162_v3  ;;  %v1403_v15 = vld [vmem:[#allocation2 + $0xa3] ss:$2 sm:$0xf]  ;;  %v1154_v8 = vld [vmem:[#allocation2 + $0x7b] ss:$2 sm:$0xf] }
 0x207   :  { %2946 = vmatpush3.bf16.msra.mxu1 %v3163_v4  ;;  %v865_v9 = vld [vmem:[#allocation2 + $0x33] ss:$2 sm:$0xf]  ;;  %v1405_v10 = vrot.slane %v1403_v15, 4  ;;  %v780_v14 = vrot.slane %v778_v46, 4 }
 0x208   :  { %2947 = vmatprep.subr.bf16.mxu1 %v3164_v5  ;;  %v981_v23 = vld [vmem:[#allocation2 + $0x3d] ss:$2 sm:$0xf]  ;;  %v867_v24 = vrot.slane %v865_v9, 4 }
 0x209   :  { %934 = vrot.lane.b32.xlu0 %v932_v50, %s3264_s4  ;;  %1017 = vrot.lane.b32.xlu1 %v1016_v6, %s3265_s27  ;;  %v1203_v50 = vld [vmem:[#allocation2 + $0x7b] ss:$2 sm:$0xf]  ;;  %v3166_v6 = vld [vmem:[%s4438_s5 + $0x50] sm:$0xff]   ;;  %v983_v37 = vrot.slane %v981_v23, 4 }
 0x20a   :  { %v1065_v27 = vld [vmem:[#allocation2 + $0x5b] ss:$2 sm:$0xf]  ;;  %v786_v21 = vld [vmem:[#allocation2 + $0x16] ss:$2 sm:$0xf] }
 0x20b   :  { %2948 = vmatpush3.bf16.msra.mxu1 %v3165_v49  ;;  %v1067_v39 = vrot.slane %v1065_v27, 4  ;;  %v788_v47 = vrot.slane %v786_v21, 4  ;;  %v1073_v19 = vld [vmem:[#allocation2 + $0x5c] ss:$2 sm:$0xf] }
 0x20c   :  { %2949 = vmatprep.subr.bf16.mxu1 %v3166_v6  ;;  %v1075_v63 = vrot.slane %v1073_v19, 4  ;;  %v881_v57 = vld [vmem:[#allocation2 + $0x35] ss:$2 sm:$0xf] }
 0x20d   :  { %737 = vrot.lane.b32.xlu0 %v735_v48, %s3265_s27  ;;  %824 = vrot.lane.b32.xlu1 %v823_v25, %s3266_s28  ;;  %v1205_v48 = vrot.slane %v1203_v50, 4  ;;  %v809_v25 = vrot.slane %v807_v18, 4  ;;  %v1389_v3 = vld [vmem:[#allocation2 + $0xa1] ss:$2 sm:$0xf] }
 0x20e   :  { %v1081_v4 = vld [vmem:[#allocation2 + $0x5d] ss:$2 sm:$0xf]  ;;  %v1196_v50 = vld [vmem:[#allocation2 + $0x7a] ss:$2 sm:$0xf] }
 0x20f   :  { %2950 = vmatpush3.bf16.msra.mxu1 %v3167_v30  ;;  %v1198_v49 = vrot.slane %v1196_v50, 4  ;;  %v1396_v18 = vld [vmem:[#allocation2 + $0xa2] ss:$2 sm:$0xf] }
 0x210   :  { %2951 = vmatprep.subr.bf16.mxu1 %v3168_v61  ;;  %v1051_v15 = vld [vmem:[#allocation2 + $0x53] ss:$2 sm:$0xf]  ;;  %v1398_v30 = vrot.slane %v1396_v18, 4 }
 0x211   :  { %941 = vrot.lane.b32.xlu0 %v939_v58, %s3265_s27  ;;  %1024 = vrot.lane.b32.xlu1 %v1023_v13, %s3266_s28  ;;  %v3171_v13 = vld [vmem:[%s4438_s5 + $0x20] sm:$0xff]   ;;  %v1281_v27 = vld [vmem:[#allocation2 + $0x98] ss:$2 sm:$0xf] }
 0x213   :  { %2952 = vmatpush3.bf16.msra.mxu1 %v3169_v62 }
 0x214   :  { %2953 = vmatprep.subr.bf16.mxu1 %v3170_v31  ;;  %v1035_v31 = vld [vmem:[#allocation2 + $0x51] ss:$2 sm:$0xf] }
 0x215   :  { %744 = vrot.lane.b32.xlu0 %v742_v42, %s3266_s28  ;;  %797 = vrot.lane.b32.xlu1 %v796_v44, %s3266_s28  ;;  %v3174_v42 = vld [vmem:[%s4438_s5 + $0x70] sm:$0xff]  }
 0x216   :  { %v873_v44 = vld [vmem:[#allocation2 + $0x34] ss:$2 sm:$0xf] }
 0x217   :  { %2954 = vmatpush3.bf16.msra.mxu1 %v3171_v13 }
 0x218   :  { %2955 = vmatprep.subr.bf16.mxu1 %v3172_v28 }
 0x219   :  { %948 = vrot.lane.b32.xlu0 %v946_v16, %s3266_s28  ;;  %998 = vrot.lane.b32.xlu1 %v997_v43, %s3266_s28  ;;  %v875_v43 = vrot.slane %v873_v44, 4  ;;  %v988_v16 = vld [vmem:[#allocation2 + $0x3e] ss:$2 sm:$0xf] }
 0x21a   :  { %v1289_v44 = vld [vmem:[#allocation2 + $0x99] ss:$2 sm:$0xf] }
 0x21b   :  { %2956 = vmatpush3.bf16.msra.mxu1 %v3173_v41 }
 0x21c   :  { %2957 = vmatprep.subr.bf16.mxu1 %v3174_v42 }
 0x21d   :  { %1166 = vrot.lane.b32.xlu0 %v1164_v34, %s3264_s4  ;;  %1218 = vrot.lane.b32.xlu1 %v1217_v33, %s3264_s4  ;;  %v3177_v33 = vld [vmem:[%s4438_s5 + $0x38] sm:$0xff]   ;;  %v3178_v34 = vld [vmem:[%s4438_s5 + $0xc0] sm:$0xff]  }
 0x21f   :  { %2958 = vmatpush3.bf16.msra.mxu1 %v3175_v11 }
 0x220   :  { %2959 = vmatprep.subr.bf16.mxu1 %v3176_v26 }
 0x221   :  { %1366 = vrot.lane.b32.xlu0 %v1364_v56, %s3264_s4  ;;  %1418 = vrot.lane.b32.xlu1 %v1417_v55, %s3264_s4  ;;  %v990_v55 = vrot.slane %v988_v16, 4 }
 0x223   :  { %2960 = vmatpush3.bf16.msra.mxu1 %v3177_v33 }
 0x224   :  { %2973 = vmatprep.subr.bf16.mxu1 %v3178_v34 }
 0x225   :  { %1142 = vrot.lane.b32.xlu0 %v1140_v0, %s3264_s4  ;;  %1225 = vrot.lane.b32.xlu1 %v1224_v52, %s3265_s27  ;;  %v1189_v52 = vld [vmem:[#allocation2 + $0x79] ss:$2 sm:$0xf] }
 0x226   :  { %v1191_v17 = vrot.slane %v1189_v52, 4 }
 0x229   :  { %1342 = vrot.lane.b32.xlu0 %v1340_v20, %s3264_s4  ;;  %1425 = vrot.lane.b32.xlu1 %v1424_v1, %s3265_s27  ;;  %v883_v1 = vrot.slane %v881_v57, 4 }
 0x22d   :  { %1149 = vrot.lane.b32.xlu0 %v1147_v40, %s3265_s27  ;;  %1232 = vrot.lane.b32.xlu1 %v1231_v7, %s3266_s28  ;;  %v1391_v7 = vrot.slane %v1389_v3, 4  ;;  %v1083_v40 = vrot.slane %v1081_v4, 4 }
 0x22f   :  { %v913_v12 = vpop.permute.xlu1 %912 }
 0x230   :  { %915 = vst.msk [vmem:[#allocation3 + $0x28] sm:$0xf] %vm682_vm14, %v913_v12 }
 0x231   :  { %1349 = vrot.lane.b32.xlu0 %v1347_v60, %s3265_s27  ;;  %1432 = vrot.lane.b32.xlu1 %v1431_v2, %s3266_s28  ;;  %v851_v60 = vld [vmem:[#allocation2 + $0x2b] ss:$2 sm:$0xf] }
 0x232   :  { %v853_v12 = vrot.slane %v851_v60, 4 }
 0x233   :  { %v707_v54 = vpop.permute.xlu0 %706  ;;  %v714_v59 = vpop.permute.xlu1 %713 }
 0x234   :  { %709 = vst.msk [vmem:[#allocation3 + $0x8] sm:$0xf] %vm682_vm14, %v707_v54  ;;  %v1273_v54 = vld [vmem:[#allocation2 + $0x97] ss:$2 sm:$0xf] }
 0x235   :  { %1156 = vrot.lane.b32.xlu0 %v1154_v8, %s3266_s28  ;;  %716 = vst.msk [vmem:[#allocation3 + $0x8] sm:$0xf] %vm690_vm15, %v714_v59  ;;  %1206 = vrot.lane.b32.xlu1 %v1205_v48, %s3266_s28  ;;  %v1053_v48 = vrot.slane %v1051_v15, 4  ;;  %v835_v8 = vld [vmem:[#allocation2 + $0x29] ss:$2 sm:$0xf] }
 0x236   :  { %v1275_v62 = vrot.slane %v1273_v54, 4 }
 0x237   :  { %v680_v22 = vpop.permute.xlu0 %679  ;;  %v919_v58 = vpop.permute.xlu1 %918 }
 0x238   :  { %683 = vst.msk [vmem:[#allocation3] sm:$0xf] %vm682_vm14, %v680_v22  ;;  %v1037_v22 = vrot.slane %v1035_v31, 4 }
 0x239   :  { %921 = vst.msk [vmem:[#allocation3 + $0x28] sm:$0xf] %vm690_vm15, %v919_v58  ;;  %810 = vrot.lane.b32.xlu0 %v809_v25, %s3264_s4  ;;  %1406 = vrot.lane.b32.xlu1 %v1405_v10, %s3266_s28  ;;  %v837_v25 = vrot.slane %v835_v8, 4  ;;  %v1473_v10 = vld [vmem:[#allocation2 + $0xbf] ss:$2 sm:$0xf] }
 0x23a   :  { %v1475_v23 = vrot.slane %v1473_v10, 4 }
 0x23b   :  { %v893_v29 = vpop.permute.xlu0 %892  ;;  %v721_v32 = vpop.permute.xlu1 %720 }
 0x23c   :  { %895 = vst.msk [vmem:[#allocation3 + $0x20] sm:$0xf] %vm682_vm14, %v893_v29 }
 0x23d   :  { %723 = vst.msk [vmem:[#allocation3 + $0x8] sm:$0xf] %vm698_vm0, %v721_v32  ;;  %781 = vrot.lane.b32.xlu0 %v780_v14, %s3264_s4  ;;  %868 = vrot.lane.b32.xlu1 %v867_v24, %s3264_s4  ;;  %v843_v24 = vld [vmem:[#allocation2 + $0x2a] ss:$2 sm:$0xf]  ;;  %v1283_v32 = vrot.slane %v1281_v27, 4 }
 0x23e   :  { %v845_v28 = vrot.slane %v843_v24, 4 }
 0x23f   :  { %v688_v35 = vpop.permute.xlu0 %687  ;;  %v925_v53 = vpop.permute.xlu1 %924 }
 0x240   :  { %691 = vst.msk [vmem:[#allocation3] sm:$0xf] %vm690_vm15, %v688_v35 }
 0x241   :  { %927 = vst.msk [vmem:[#allocation3 + $0x28] sm:$0xf] %vm698_vm0, %v925_v53  ;;  %984 = vrot.lane.b32.xlu0 %v983_v37, %s3264_s4  ;;  %1068 = vrot.lane.b32.xlu1 %v1067_v39, %s3264_s4  ;;  %v1043_v37 = vld [vmem:[#allocation2 + $0x52] ss:$2 sm:$0xf] }
 0x242   :  { %v1481_v39 = vld [vmem:[#allocation2 + $0xc0] ss:$2 sm:$0xf]  ;;  %v1045_v42 = vrot.slane %v1043_v37, 4 }
 0x243   :  { %v899_v45 = vpop.permute.xlu0 %898  ;;  %v1126_v38 = vpop.permute.xlu1 %1125  ;;  %v1483_v35 = vrot.slane %v1481_v39, 4  ;;  %v1243_v53 = vld [vmem:[#allocation2 + $0x8d] ss:$2 sm:$0xf] }
 0x244   :  { %901 = vst.msk [vmem:[#allocation3 + $0x20] sm:$0xf] %vm690_vm15, %v899_v45  ;;  %v1245_v26 = vrot.slane %v1243_v53, 4 }
 0x245   :  { %789 = vrot.lane.b32.xlu0 %v788_v47, %s3265_s27  ;;  %876 = vrot.lane.b32.xlu1 %v875_v43, %s3265_s27  ;;  %v1291_v47 = vrot.slane %v1289_v44, 4  ;;  %v1489_v43 = vld [vmem:[#allocation2 + $0xc1] ss:$2 sm:$0xf] }
 0x246   :  { %v1491_v34 = vrot.slane %v1489_v43, 4 }
 0x247   :  { %v696_v51 = vpop.permute.xlu0 %695  ;;  %v1327_v56 = vpop.permute.xlu1 %1326 }
 0x248   :  { %699 = vst.msk [vmem:[#allocation3] sm:$0xf] %vm698_vm0, %v696_v51  ;;  %v1251_v51 = vld [vmem:[#allocation2 + $0x8e] ss:$2 sm:$0xf] }
 0x249   :  { %991 = vrot.lane.b32.xlu0 %v990_v55, %s3265_s27  ;;  %1076 = vrot.lane.b32.xlu1 %v1075_v63, %s3265_s27  ;;  %v1259_v55 = vld [vmem:[#allocation2 + $0x8f] ss:$2 sm:$0xf]  ;;  %v1253_v63 = vrot.slane %v1251_v51, 4 }
 0x24a   :  { %v1261_v57 = vrot.slane %v1259_v55, 4  ;;  %v3181_v51 = vld [vmem:[%s4438_s5 + $0x88] sm:$0xff]   ;;  %v3182_v55 = vld [vmem:[%s4438_s5 + $0xd0] sm:$0xff]  }
 0x24b   :  { %v905_v0 = vpop.permute.xlu0 %904  ;;  %v1133_v20 = vpop.permute.xlu1 %1132 }
 0x24c   :  { %907 = vst.msk [vmem:[#allocation3 + $0x20] sm:$0xf] %vm698_vm0, %v905_v0  ;;  %v1451_v0 = vld [vmem:[#allocation2 + $0xb6] ss:$2 sm:$0xf] }
 0x24d   :  { %1192 = vrot.lane.b32.xlu0 %v1191_v17, %s3264_s4  ;;  %884 = vrot.lane.b32.xlu1 %v883_v1, %s3266_s28  ;;  %v1459_v17 = vld [vmem:[#allocation2 + $0xb7] ss:$2 sm:$0xf]  ;;  %v1453_v1 = vrot.slane %v1451_v0, 4 }
 0x24e   :  { %v1461_v4 = vrot.slane %v1459_v17, 4 }
 0x24f   :  { %v1119_v5 = vpop.permute.xlu0 %1118  ;;  %v1333_v36 = vpop.permute.xlu1 %1332 }
 0x250   :  { %1121 = vst.msk [vmem:[#allocation3 + $0x48] sm:$0xf] %vm682_vm14, %v1119_v5 }
 0x251   :  { %1128 = vst.msk [vmem:[#allocation3 + $0x48] sm:$0xf] %vm690_vm15, %v1126_v38  ;;  %1392 = vrot.lane.b32.xlu0 %v1391_v7, %s3264_s4  ;;  %1084 = vrot.lane.b32.xlu1 %v1083_v40, %s3266_s28  ;;  %v1443_v38 = vld [vmem:[#allocation2 + $0xb5] ss:$2 sm:$0xf] }
 0x252   :  { %1135 = vst.msk [vmem:[#allocation3 + $0x48] sm:$0xf] %vm698_vm0, %v1133_v20  ;;  %v1445_v19 = vrot.slane %v1443_v38, 4 }
 0x253   :  { %v1321_v2 = vpop.permute.xlu0 %1320  ;;  %v3996_v6 = vpop.permute.xlu1 %761 }
 0x254   :  { %1323 = vst.msk [vmem:[#allocation3 + $0x68] sm:$0xf] %vm682_vm14, %v1321_v2 }
 0x255   :  { %1329 = vst.msk [vmem:[#allocation3 + $0x68] sm:$0xf] %vm690_vm15, %v1327_v56  ;;  %1199 = vrot.lane.b32.xlu0 %v1198_v49, %s3265_s27  ;;  %854 = vrot.lane.b32.xlu1 %v853_v12, %s3266_s28 }
 0x256   :  { %1335 = vst.msk [vmem:[#allocation3 + $0x68] sm:$0xf] %vm698_vm0, %v1333_v36  ;;  %v1354_v36 = vld [vmem:[#allocation2 + $0xa3] ss:$2 sm:$0xf] }
 0x257   :  { %v1095_v46 = vpop.permute.xlu0 %1094  ;;  %v4003_v61 = vpop.permute.xlu1 %965 }
 0x258   :  { %1097 = vst.msk [vmem:[#allocation3 + $0x40] sm:$0xf] %vm682_vm14, %v1095_v46 }
 0x259   :  { %1399 = vrot.lane.b32.xlu0 %v1398_v30, %s3265_s27  ;;  %1054 = vrot.lane.b32.xlu1 %v1053_v48, %s3266_s28 }
 0x25b   :  { %v1301_v59 = vpop.permute.xlu0 %1300  ;;  %v769_v9 = vpop.permute.xlu1 %768 }
 0x25c   :  { %1303 = vst.msk [vmem:[#allocation3 + $0x60] sm:$0xf] %vm682_vm14, %v1301_v59 }
 0x25d   :  { %838 = vrot.lane.b32.xlu0 %v837_v25, %s3264_s4  ;;  %1276 = vrot.lane.b32.xlu1 %v1275_v62, %s3264_s4 }
 0x25f   :  { %v1102_v14 = vpop.permute.xlu0 %1101  ;;  %v973_v58 = vpop.permute.xlu1 %972 }
 0x260   :  { %1104 = vst.msk [vmem:[#allocation3 + $0x40] sm:$0xf] %vm690_vm15, %v1102_v14 }
 0x261   :  { %1038 = vrot.lane.b32.xlu0 %v1037_v22, %s3264_s4  ;;  %1476 = vrot.lane.b32.xlu1 %v1475_v23, %s3264_s4 }
 0x263   :  { %v1307_v13 = vpop.permute.xlu0 %1306  ;;  %v4014_v29 = vpop.permute.xlu1 %1173 }
 0x264   :  { %1309 = vst.msk [vmem:[#allocation3 + $0x60] sm:$0xf] %vm690_vm15, %v1307_v13 }
 0x265   :  { %846 = vrot.lane.b32.xlu0 %v845_v28, %s3265_s27  ;;  %1284 = vrot.lane.b32.xlu1 %v1283_v32, %s3265_s27 }
 0x267   :  { %v1109_v41 = vpop.permute.xlu0 %1108  ;;  %v4019_v21 = vpop.permute.xlu1 %1373 }
 0x268   :  { %1111 = vst.msk [vmem:[#allocation3 + $0x40] sm:$0xf] %vm698_vm0, %v1109_v41 }
 0x269   :  { %1046 = vrot.lane.b32.xlu0 %v1045_v42, %s3265_s27  ;;  %1484 = vrot.lane.b32.xlu1 %v1483_v35, %s3265_s27 }
 0x26b   :  { %v1313_v11 = vpop.permute.xlu0 %1312  ;;  %v4024_v45 = vpop.permute.xlu1 %1180 }
 0x26c   :  { %1315 = vst.msk [vmem:[#allocation3 + $0x60] sm:$0xf] %vm698_vm0, %v1313_v11 }
 0x26d   :  { %1246 = vrot.lane.b32.xlu0 %v1245_v26, %s3264_s4  ;;  %1292 = vrot.lane.b32.xlu1 %v1291_v47, %s3266_s28  ;;  %v3179_v47 = vld [vmem:[%s4438_s5 + $0x80] sm:$0xff]  }
 0x26f   :  { %v755_v16 = vpop.permute.xlu0 %754  ;;  %v1381_v33 = vpop.permute.xlu1 %1380 }
 0x270   :  { %757 = vst.msk [vmem:[#allocation3 + $0x18] sm:$0xf] %vm682_vm14, %v755_v16  ;;  %v3180_v16 = vld [vmem:[%s4438_s5 + $0xc8] sm:$0xff]  }
 0x271   :  { %764 = vst.msk [vmem:[#allocation3 + $0x18] sm:$0xf] %vm690_vm15, %v3996_v6  ;;  %1446 = vrot.lane.b32.xlu0 %v1445_v19, %s3264_s4  ;;  %1492 = vrot.lane.b32.xlu1 %v1491_v34, %s3266_s28 }
 0x272   :  { %771 = vst.msk [vmem:[#allocation3 + $0x18] sm:$0xf] %vm698_vm0, %v769_v9 }
 0x273   :  { %v959_v56 = vpop.permute.xlu0 %958  ;;  %v1011_v52 = vpop.permute.xlu1 %1010 }
 0x274   :  { %961 = vst.msk [vmem:[#allocation3 + $0x38] sm:$0xf] %vm682_vm14, %v959_v56 }
 0x275   :  { %1013 = vst.msk [vmem:[#allocation3 + $0x28] sm:$0xf0] %vm784_vm1, %v1011_v52  ;;  %1254 = vrot.lane.b32.xlu0 %v1253_v63, %s3265_s27  ;;  %1262 = vrot.lane.b32.xlu1 %v1261_v57, %s3266_s28  ;;  %v3183_v52 = vld [vmem:[%s4438_s5 + $0x90] sm:$0xff]   ;;  %v3184_v57 = vld [vmem:[%s4438_s5 + $0xd8] sm:$0xff]  }
 0x276   :  { %968 = vst.msk [vmem:[#allocation3 + $0x38] sm:$0xf] %vm690_vm15, %v4003_v61 }
 0x277   :  { %975 = vst.msk [vmem:[#allocation3 + $0x38] sm:$0xf] %vm698_vm0, %v973_v58  ;;  %v731_v20 = vpop.permute.xlu0 %730  ;;  %v818_v3 = vpop.permute.xlu1 %817 }
 0x278   :  { %733 = vst.msk [vmem:[#allocation3 + $0x10] sm:$0xf] %vm682_vm14, %v731_v20  ;;  %v3185_v20 = vld [vmem:[%s4438_s5 + $0x98] sm:$0xff]  }
 0x279   :  { %1454 = vrot.lane.b32.xlu0 %v1453_v1, %s3265_s27  ;;  %1462 = vrot.lane.b32.xlu1 %v1461_v4, %s3266_s28  ;;  %v3186_v1 = vld [vmem:[%s4438_s5 + $0xe0] sm:$0xff]  }
 0x27b   :  { %v935_v5 = vpop.permute.xlu0 %934  ;;  %v1018_v7 = vpop.permute.xlu1 %1017 }
 0x27c   :  { %937 = vst.msk [vmem:[#allocation3 + $0x30] sm:$0xf] %vm682_vm14, %v935_v5 }
 0x27d   :  { %1020 = vst.msk [vmem:[#allocation3 + $0x28] sm:$0xf0] %vm792_vm3, %v1018_v7  ;;  %1356 = vrot.lane.b32.xlu0 %v1354_v36, %s3266_s28 }
 0x27f   :  { %v738_v40 = vpop.permute.xlu0 %737  ;;  %v825_v50 = vpop.permute.xlu1 %824 }
 0x280   :  { %740 = vst.msk [vmem:[#allocation3 + $0x10] sm:$0xf] %vm690_vm15, %v738_v40  ;;  %v3187_v40 = vld [vmem:[%s4438_s5 + $0xa0] sm:$0xff]  }
 0x283   :  { %v942_v60 = vpop.permute.xlu0 %941  ;;  %v1025_v2 = vpop.permute.xlu1 %1024 }
 0x284   :  { %944 = vst.msk [vmem:[#allocation3 + $0x30] sm:$0xf] %vm690_vm15, %v942_v60 }
 0x285   :  { %1027 = vst.msk [vmem:[#allocation3 + $0x28] sm:$0xf0] %vm800_vm4, %v1025_v2  ;;  %v3188_v2 = vld [vmem:[%s4438_s5 + $0xe8] sm:$0xff]  }
 0x287   :  { %v745_v49 = vpop.permute.xlu0 %744  ;;  %v798_v6 = vpop.permute.xlu1 %797 }
 0x288   :  { %747 = vst.msk [vmem:[#allocation3 + $0x10] sm:$0xf] %vm698_vm0, %v745_v49 }
 0x28b   :  { %v949_v12 = vpop.permute.xlu0 %948  ;;  %v999_v18 = vpop.permute.xlu1 %998 }
 0x28c   :  { %951 = vst.msk [vmem:[#allocation3 + $0x30] sm:$0xf] %vm698_vm0, %v949_v12 }
 0x28f   :  { %v1167_v15 = vpop.permute.xlu0 %1166  ;;  %v1219_v46 = vpop.permute.xlu1 %1218 }
 0x290   :  { %1169 = vst.msk [vmem:[#allocation3 + $0x58] sm:$0xf] %vm682_vm14, %v1167_v15  ;;  %v3190_v15 = vld [vmem:[%s4438_s5 + $0xf0] sm:$0xff]  }
 0x291   :  { %1221 = vst.msk [vmem:[#allocation3 + $0x48] sm:$0xf0] %vm784_vm1, %v1219_v46 }
 0x292   :  { %1176 = vst.msk [vmem:[#allocation3 + $0x58] sm:$0xf] %vm690_vm15, %v4014_v29  ;;  %v1501_v29 = vld [vmem:[#allocation3 + $0x28] sm:$0xff] }
 0x293   :  { %1183 = vst.msk [vmem:[#allocation3 + $0x58] sm:$0xf] %vm698_vm0, %v4024_v45  ;;  %v1367_v30 = vpop.permute.xlu0 %1366  ;;  %v1419_v61 = vpop.permute.xlu1 %1418 }
 0x294   :  { %1369 = vst.msk [vmem:[#allocation3 + $0x78] sm:$0xf] %vm682_vm14, %v1367_v30 }
 0x295   :  { %1421 = vst.msk [vmem:[#allocation3 + $0x68] sm:$0xf0] %vm784_vm1, %v1419_v61  ;;  %v3191_v61 = vld [vmem:[%s4438_s5 + $0xb0] sm:$0xff]  }
 0x296   :  { %1376 = vst.msk [vmem:[#allocation3 + $0x78] sm:$0xf] %vm690_vm15, %v4019_v21 }
 0x297   :  { %1383 = vst.msk [vmem:[#allocation3 + $0x78] sm:$0xf] %vm698_vm0, %v1381_v33  ;;  %v1143_v48 = vpop.permute.xlu0 %1142  ;;  %v1226_v8 = vpop.permute.xlu1 %1225 }
 0x298   :  { %1145 = vst.msk [vmem:[#allocation3 + $0x50] sm:$0xf] %vm682_vm14, %v1143_v48  ;;  %v3192_v48 = vld [vmem:[%s4438_s5 + $0xf8] sm:$0xff]  }
 0x299   :  { %1228 = vst.msk [vmem:[#allocation3 + $0x48] sm:$0xf0] %vm792_vm3, %v1226_v8 }
 0x29b   :  { %v1343_v54 = vpop.permute.xlu0 %1342  ;;  %v1426_v59 = vpop.permute.xlu1 %1425 }
 0x29c   :  { %1345 = vst.msk [vmem:[#allocation3 + $0x70] sm:$0xf] %vm682_vm14, %v1343_v54 }
 0x29d   :  { %1428 = vst.msk [vmem:[#allocation3 + $0x68] sm:$0xf0] %vm792_vm3, %v1426_v59  ;;  %v3193_v59 = vld [vmem:[%s4438_s5 + $0xb8] sm:$0xff]  }
 0x29f   :  { %v1150_v25 = vpop.permute.xlu0 %1149  ;;  %v1233_v9 = vpop.permute.xlu1 %1232 }
 0x2a0   :  { %1152 = vst.msk [vmem:[#allocation3 + $0x50] sm:$0xf] %vm690_vm15, %v1150_v25 }
 0x2a1   :  { %1235 = vst.msk [vmem:[#allocation3 + $0x48] sm:$0xf0] %vm800_vm4, %v1233_v9 }
 0x2a3   :  { %v1350_v62 = vpop.permute.xlu0 %1349  ;;  %v1433_v31 = vpop.permute.xlu1 %1432 }
 0x2a4   :  { %1352 = vst.msk [vmem:[#allocation3 + $0x70] sm:$0xf] %vm690_vm15, %v1350_v62 }
 0x2a5   :  { %1435 = vst.msk [vmem:[#allocation3 + $0x68] sm:$0xf0] %vm800_vm4, %v1433_v31 }
 0x2a7   :  { %v1157_v10 = vpop.permute.xlu0 %1156  ;;  %v1207_v14 = vpop.permute.xlu1 %1206 }
 0x2a8   :  { %1159 = vst.msk [vmem:[#allocation3 + $0x50] sm:$0xf] %vm698_vm0, %v1157_v10  ;;  %v1505_v43 = vld [vmem:[#allocation3 + $0x48] sm:$0xff] }
 0x2ab   :  { %v811_v22 = vpop.permute.xlu0 %810  ;;  %v1407_v58 = vpop.permute.xlu1 %1406 }
 0x2ac   :  { %813 = vst.msk [vmem:[#allocation3 + $0x8] sm:$0xf0] %vm784_vm1, %v811_v22  ;;  %v1509_v11 = vld [vmem:[#allocation3 + $0x68] sm:$0xff] }
 0x2ad   :  { %820 = vst.msk [vmem:[#allocation3 + $0x8] sm:$0xf0] %vm792_vm3, %v818_v3  ;;  %v1517_v19 = vpack.c.bf16 %v1509_v11, %v1505_v43  ;;  %v2831_v43 = vld [vmem:[%s4439_s6] ss:$0 sm:$0xff] }
 0x2ae   :  { %827 = vst.msk [vmem:[#allocation3 + $0x8] sm:$0xf0] %vm800_vm4, %v825_v50 }
 0x2af   :  { %v782_v23 = vpop.permute.xlu0 %781  ;;  %v869_v24 = vpop.permute.xlu1 %868 }
 0x2b0   :  { %785 = vst.msk [vmem:[#allocation3] sm:$0xf0] %vm784_vm1, %v782_v23  ;;  %871 = vst.msk [vmem:[#allocation3 + $0x18] sm:$0xf0] %vm784_vm1, %v869_v24 }
 0x2b3   :  { %v985_v27 = vpop.permute.xlu0 %984  ;;  %v1069_v13 = vpop.permute.xlu1 %1068 }
 0x2b4   :  { %987 = vst.msk [vmem:[#allocation3 + $0x20] sm:$0xf0] %vm784_vm1, %v985_v27  ;;  %1071 = vst.msk [vmem:[#allocation3 + $0x38] sm:$0xf0] %vm784_vm1, %v1069_v13 }
 0x2b5   :  { %v1497_v28 = vld [vmem:[#allocation3 + $0x8] sm:$0xff] }
 0x2b6   :  { %v1513_v32 = vpack.c.bf16 %v1501_v29, %v1497_v28 }
 0x2b7   :  { %v790_v37 = vpop.permute.xlu0 %789  ;;  %v877_v39 = vpop.permute.xlu1 %876 }
 0x2b8   :  { %793 = vst.msk [vmem:[#allocation3] sm:$0xf0] %vm792_vm3, %v790_v37  ;;  %1815 = vmatprep.mubr.bf16.mxu1 %v1513_v32  ;;  %879 = vst.msk [vmem:[#allocation3 + $0x18] sm:$0xf0] %vm792_vm3, %v877_v39 }
 0x2b9   :  { %801 = vst.msk [vmem:[#allocation3] sm:$0xf0] %vm800_vm4, %v798_v6 }
 0x2bb   :  { %v992_v41 = vpop.permute.xlu0 %991  ;;  %v1077_v42 = vpop.permute.xlu1 %1076 }
 0x2bc   :  { %994 = vst.msk [vmem:[#allocation3 + $0x20] sm:$0xf0] %vm792_vm3, %v992_v41  ;;  %1079 = vst.msk [vmem:[#allocation3 + $0x38] sm:$0xf0] %vm792_vm3, %v1077_v42 }
 0x2bd   :  { %1001 = vst.msk [vmem:[#allocation3 + $0x20] sm:$0xf0] %vm800_vm4, %v999_v18  ;;  %v3189_v18 = vld [vmem:[%s4438_s5 + $0xa8] sm:$0xff]  }
 0x2bf   :  { %v1193_v21 = vpop.permute.xlu0 %1192  ;;  %v885_v35 = vpop.permute.xlu1 %884 }
 0x2c0   :  { %1195 = vst.msk [vmem:[#allocation3 + $0x40] sm:$0xf0] %vm784_vm1, %v1193_v21  ;;  %v1496_v26 = vld [vmem:[#allocation3] sm:$0xff] }
 0x2c1   :  { %887 = vst.msk [vmem:[#allocation3 + $0x18] sm:$0xf0] %vm800_vm4, %v885_v35 }
 0x2c3   :  { %v1393_v53 = vpop.permute.xlu0 %1392  ;;  %v1085_v44 = vpop.permute.xlu1 %1084 }
 0x2c4   :  { %1395 = vst.msk [vmem:[#allocation3 + $0x60] sm:$0xf0] %vm784_vm1, %v1393_v53  ;;  %v1500_v45 = vld [vmem:[#allocation3 + $0x20] sm:$0xff] }
 0x2c5   :  { %1087 = vst.msk [vmem:[#allocation3 + $0x38] sm:$0xf0] %vm800_vm4, %v1085_v44  ;;  %v1512_v38 = vpack.c.bf16 %v1500_v45, %v1496_v26 }
 0x2c7   :  { %v1200_v33 = vpop.permute.xlu0 %1199  ;;  %1816 = vmatmul.mubr.bf16.vlgmr.msra.gmra.mrb[0].mxu1 %v1512_v38  ;;  %v855_v34 = vpop.permute.xlu1 %854 }
 0x2c8   :  { %1202 = vst.msk [vmem:[#allocation3 + $0x40] sm:$0xf0] %vm792_vm3, %v1200_v33  ;;  %1823 = vmatprep.mubr.bf16.mxu1 %v1517_v19  ;;  %2974 = vmatpush3.bf16.msra.mxu1 %v3179_v47  ;;  %v1499_v60 = vld [vmem:[#allocation3 + $0x18] sm:$0xff] }
 0x2c9   :  { %1209 = vst.msk [vmem:[#allocation3 + $0x40] sm:$0xf0] %vm800_vm4, %v1207_v14  ;;  %2975 = vmatprep.subr.bf16.mxu1 %v3180_v16  ;;  %v3194_v33 = vld [vmem:[%s4440_s9 + $0xc0] sm:$0xff]  }
 0x2ca   :  { %3023 = vmatprep.subr.bf16.mxu0 %v3194_v33 }
 0x2cb   :  { %v1400_v56 = vpop.permute.xlu0 %1399  ;;  %v1055_v63 = vpop.permute.xlu1 %1054 }
 0x2cc   :  { %1402 = vst.msk [vmem:[#allocation3 + $0x60] sm:$0xf0] %vm792_vm3, %v1400_v56  ;;  %2976 = vmatpush3.bf16.msra.mxu1 %v3181_v51  ;;  %v1503_v5 = vld [vmem:[#allocation3 + $0x38] sm:$0xff] }
 0x2cd   :  { %1409 = vst.msk [vmem:[#allocation3 + $0x60] sm:$0xf0] %vm800_vm4, %v1407_v58  ;;  %2977 = vmatprep.subr.bf16.mxu1 %v3182_v55  ;;  %v1515_v49 = vpack.c.bf16 %v1503_v5, %v1499_v60  ;;  %v3195_v56 = vld [vmem:[%s4440_s9 + $0x80] sm:$0xff]  }
 0x2ce   :  { %3024 = vmatpush3.bf16.msra.mxu0 %v3195_v56  ;;  %v3204_v60 = vld [vmem:[%s4440_s9 + $0x40] sm:$0xff]  }
 0x2cf   :  { %v839_v0 = vpop.permute.xlu0 %838  ;;  %v1277_v17 = vpop.permute.xlu1 %1276 }
 0x2d0   :  { %841 = vst.msk [vmem:[#allocation3 + $0x10] sm:$0xf0] %vm784_vm1, %v839_v0  ;;  %2978 = vmatpush3.bf16.msra.mxu1 %v3183_v52  ;;  %1279 = vst.msk [vmem:[#allocation3 + $0x58] sm:$0xf0] %vm784_vm1, %v1277_v17  ;;  %v1504_v7 = vld [vmem:[#allocation3 + $0x40] sm:$0xff] }
 0x2d1   :  { %2979 = vmatprep.subr.bf16.mxu1 %v3184_v57  ;;  %v3196_v52 = vld [vmem:[%s4440_s9 + $0xc8] sm:$0xff]  }
 0x2d2   :  { %3025 = vmatprep.subr.bf16.mxu0 %v3196_v52 }
 0x2d3   :  { %v1039_v3 = vpop.permute.xlu0 %1038  ;;  %v1477_v4 = vpop.permute.xlu1 %1476 }
 0x2d4   :  { %1041 = vst.msk [vmem:[#allocation3 + $0x30] sm:$0xf0] %vm784_vm1, %v1039_v3  ;;  %2980 = vmatpush3.bf16.msra.mxu1 %v3185_v20  ;;  %1479 = vst.msk [vmem:[#allocation3 + $0x78] sm:$0xf0] %vm784_vm1, %v1477_v4  ;;  %v1508_v36 = vld [vmem:[#allocation3 + $0x60] sm:$0xff] }
 0x2d5   :  { %v1516_v50 = vpack.c.bf16 %v1508_v36, %v1504_v7  ;;  %2981 = vmatprep.subr.bf16.mxu1 %v3186_v1  ;;  %v3197_v20 = vld [vmem:[%s4440_s9 + $0x88] sm:$0xff]   ;;  %v3198_v1 = vld [vmem:[%s4440_s9 + $0xd0] sm:$0xff]  }
 0x2d6   :  { %3026 = vmatpush3.bf16.msra.mxu0 %v3197_v20  ;;  %v3199_v7 = vld [vmem:[%s4440_s9 + $0x90] sm:$0xff]  }
 0x2d7   :  { %v847_v6 = vpop.permute.xlu0 %846  ;;  %1824 = vmatmul.mubr.bf16.gmra.mrb[4].mxu1 %v1516_v50  ;;  %v1285_v12 = vpop.permute.xlu1 %1284  ;;  %3027 = vmatprep.subr.bf16.mxu0 %v3198_v1  ;;  %v3201_v50 = vld [vmem:[%s4440_s9 + $0x98] sm:$0xff]  }
 0x2d8   :  { %849 = vst.msk [vmem:[#allocation3 + $0x10] sm:$0xf0] %vm792_vm3, %v847_v6  ;;  %2982 = vmatpush3.bf16.msra.mxu1 %v3187_v40  ;;  %1864 = vmatprep.mubr.bf16.mxu1 %v1515_v49  ;;  %1287 = vst.msk [vmem:[#allocation3 + $0x58] sm:$0xf0] %vm792_vm3, %v1285_v12  ;;  %v3200_v40 = vld [vmem:[%s4440_s9 + $0xd8] sm:$0xff]   ;;  %v3202_v49 = vld [vmem:[%s4440_s9 + $0xe0] sm:$0xff]  }
 0x2d9   :  { %857 = vst.msk [vmem:[#allocation3 + $0x10] sm:$0xf0] %vm800_vm4, %v855_v34  ;;  %2983 = vmatprep.subr.bf16.mxu1 %v3188_v2  ;;  %v3205_v2 = vld [vmem:[%s4440_s9] sm:$0xff]   ;;  %v3206_v12 = vld [vmem:[%s4440_s9 + $0xe8] sm:$0xff]  }
 0x2da   :  { %3028 = vmatpush3.bf16.msra.mxu0 %v3199_v7  ;;  %v3203_v6 = vld [vmem:[%s4440_s9 + $0xa0] sm:$0xff]  }
 0x2db   :  { %v1047_v46 = vpop.permute.xlu0 %1046  ;;  %v1485_v30 = vpop.permute.xlu1 %1484  ;;  %3029 = vmatprep.subr.bf16.mxu0 %v3200_v40 }
 0x2dc   :  { %1049 = vst.msk [vmem:[#allocation3 + $0x30] sm:$0xf0] %vm792_vm3, %v1047_v46  ;;  %2984 = vmatpush3.bf16.msra.mxu1 %v3189_v18  ;;  %1487 = vst.msk [vmem:[#allocation3 + $0x78] sm:$0xf0] %vm792_vm3, %v1485_v30  ;;  %v3208_v18 = vld [vmem:[%s4440_s9 + $0x48] sm:$0xff]   ;;  %v3210_v46 = vld [vmem:[%s4440_s9 + $0x50] sm:$0xff]  }
 0x2dd   :  { %1057 = vst.msk [vmem:[#allocation3 + $0x30] sm:$0xf0] %vm800_vm4, %v1055_v63  ;;  %2985 = vmatprep.subr.bf16.mxu1 %v3190_v15  ;;  %v3209_v15 = vld [vmem:[%s4440_s9 + $0x8] sm:$0xff]   ;;  %v3211_v30 = vld [vmem:[%s4440_s9 + $0x10] sm:$0xff]  }
 0x2de   :  { %3030 = vmatpush3.bf16.msra.mxu0 %v3201_v50 }
 0x2df   :  { %v1247_v8 = vpop.permute.xlu0 %1246  ;;  %v1293_v54 = vpop.permute.xlu1 %1292  ;;  %3031 = vmatprep.subr.bf16.mxu0 %v3202_v49  ;;  %v2865_v49 = vld [vmem:[%s4442_s8] ss:$0 sm:$0xff] }
 0x2e0   :  { %1249 = vst.msk [vmem:[#allocation3 + $0x50] sm:$0xf0] %vm784_vm1, %v1247_v8  ;;  %2986 = vmatpush3.bf16.msra.mxu1 %v3191_v61  ;;  %v1498_v62 = vld [vmem:[#allocation3 + $0x10] sm:$0xff] }
 0x2e1   :  { %1295 = vst.msk [vmem:[#allocation3 + $0x58] sm:$0xf0] %vm800_vm4, %v1293_v54  ;;  %2987 = vmatprep.subr.bf16.mxu1 %v3192_v48  ;;  %v3212_v48 = vld [vmem:[%s4440_s9 + $0x58] sm:$0xff]   ;;  %v3207_v54 = vld [vmem:[%s4440_s9 + $0xa8] sm:$0xff]  }
 0x2e2   :  { %3032 = vmatpush3.bf16.msra.mxu0 %v3203_v6 }
 0x2e3   :  { %v1447_v25 = vpop.permute.xlu0 %1446  ;;  %v1493_v9 = vpop.permute.xlu1 %1492  ;;  %3033 = vmatprep.subr.bf16.mxu0 %v3206_v12 }
 0x2e4   :  { %1449 = vst.msk [vmem:[#allocation3 + $0x70] sm:$0xf0] %vm784_vm1, %v1447_v25  ;;  %2988 = vmatpush3.bf16.msra.mxu1 %v3193_v59  ;;  %v1502_v31 = vld [vmem:[#allocation3 + $0x30] sm:$0xff] }
 0x2e5   :  { %1495 = vst.msk [vmem:[#allocation3 + $0x78] sm:$0xf0] %vm800_vm4, %v1493_v9  ;;  %v1514_v10 = vpack.c.bf16 %v1502_v31, %v1498_v62  ;;  %3001 = vmatprep.subr.bf16.mxu1 %v3204_v60  ;;  %v3214_v62 = vld [vmem:[%s4440_s9 + $0xf0] sm:$0xff]  }
 0x2e6   :  { %3034 = vmatpush3.bf16.msra.mxu0 %v3207_v54  ;;  %v3219_v54 = vld [vmem:[%s4440_s9 + $0x28] sm:$0xff]  }
 0x2e7   :  { %v1255_v14 = vpop.permute.xlu0 %1254  ;;  %1865 = vmatmul.mubr.bf16.vlgmr.msra.gmra.mrb[8].mxu1 %v1514_v10  ;;  %v1263_v22 = vpop.permute.xlu1 %1262  ;;  %v3213_v10 = vld [vmem:[%s4440_s9 + $0x18] sm:$0xff]   ;;  %3035 = vmatprep.subr.bf16.mxu0 %v3214_v62 }
 0x2e8   :  { %1257 = vst.msk [vmem:[#allocation3 + $0x50] sm:$0xf0] %vm792_vm3, %v1255_v14  ;;  %v1507_v24 = vld [vmem:[#allocation3 + $0x58] sm:$0xff]  ;;  %3002 = vmatpush3.bf16.msra.mxu1 %v3205_v2 }
 0x2e9   :  { %1265 = vst.msk [vmem:[#allocation3 + $0x50] sm:$0xf0] %vm800_vm4, %v1263_v22  ;;  %3003 = vmatprep.subr.bf16.mxu1 %v3208_v18 }
 0x2eb   :  { %v1455_v58 = vpop.permute.xlu0 %1454  ;;  %v1463_v23 = vpop.permute.xlu1 %1462 }
 0x2ec   :  { %v1511_v27 = vld [vmem:[#allocation3 + $0x78] sm:$0xff]  ;;  %1457 = vst.msk [vmem:[#allocation3 + $0x70] sm:$0xf0] %vm792_vm3, %v1455_v58  ;;  %3004 = vmatpush3.bf16.msra.mxu1 %v3209_v15 }
 0x2ed   :  { %v1519_v13 = vpack.c.bf16 %v1511_v27, %v1507_v24  ;;  %1465 = vst.msk [vmem:[#allocation3 + $0x70] sm:$0xf0] %vm800_vm4, %v1463_v23  ;;  %3005 = vmatprep.subr.bf16.mxu1 %v3210_v46  ;;  %v3216_v23 = vld [vmem:[%s4440_s9 + $0x60] sm:$0xff]   ;;  %v3215_v24 = vld [vmem:[%s4440_s9 + $0xb0] sm:$0xff]  }
 0x2ee   :  { %3036 = vmatpush3.bf16.msra.mxu0 %v3215_v24  ;;  %v3222_v24 = vld [vmem:[%s4440_s9 + $0xf8] sm:$0xff]  }
 0x2ef   :  { %1872 = vmatprep.mubr.bf16.mxu1 %v1519_v13  ;;  %v1357_v28 = vpop.permute.xlu0 %1356  ;;  %3037 = vmatprep.subr.bf16.mxu0 %v3222_v24  ;;  %v3234_v24 = vld [vmem:[%s4440_s9 + $0x158] sm:$0xff]  }
 0x2f0   :  { %1359 = vst.msk [vmem:[#allocation3 + $0x70] sm:$0xf] %vm698_vm0, %v1357_v28  ;;  %v1506_v29 = vld [vmem:[#allocation3 + $0x50] sm:$0xff]  ;;  %3006 = vmatpush3.bf16.msra.mxu1 %v3211_v30  ;;  %v3217_v28 = vld [vmem:[%s4440_s9 + $0x20] sm:$0xff]  }
 0x2f1   :  { %3007 = vmatprep.subr.bf16.mxu1 %v3212_v48 }
 0x2f4   :  { %3008 = vmatpush3.bf16.msra.mxu1 %v3213_v10 }
 0x2f5   :  { %3009 = vmatprep.subr.bf16.mxu1 %v3216_v23 }
 0x2f7   :  { %v1510_v32 = vld [vmem:[#allocation3 + $0x70] sm:$0xff] }
 0x2f8   :  { %v1518_v37 = vpack.c.bf16 %v1510_v32, %v1506_v29  ;;  %3010 = vmatpush3.bf16.msra.mxu1 %v3217_v28  ;;  %v3225_v28 = vld [vmem:[%s4440_s9 + $0x38] sm:$0xff]  }
 0x2fa   :  { %1873 = vmatmul.mubr.bf16.gmra.mrb[12].mxu1 %v1518_v37 }
 0x39a   :  { %v2961_v39 = vpop.f32.mrb[0].mxu1 }
 0x39b   :  { %v2962_v41 = vpop.f32.mrb[1].mxu1 }
 0x39c   :  { %v2963_v42 = vadd.f32 %v2962_v41, %v2961_v39  ;;  %v2964_v21 = vpop.f32.mrb[2].mxu1 }
 0x39d   :  { %v2965_v35 = vpop.f32.mrb[3].mxu1 }
 0x39e   :  { %v2966_v53 = vadd.f32 %v2965_v35, %v2964_v21  ;;  %v1818_v34 = vadd.f32 %v2963_v42, %v2831_v43 }
 0x3a0   :  { %v1821_v57 = vadd.f32 %v2966_v53, %v2831_v43 }
 0x3aa   :  { %v2967_v44 = vpop.f32.mrb[4].mxu1 }
 0x3ab   :  { %v2968_v11 = vpop.f32.mrb[5].mxu1 }
 0x3ac   :  { %v2969_v26 = vadd.f32 %v2968_v11, %v2967_v44  ;;  %v2970_v45 = vpop.f32.mrb[6].mxu1 }
 0x3ad   :  { %v2971_v47 = vpop.f32.mrb[7].mxu1 }
 0x3ae   :  { %v2972_v38 = vadd.f32 %v2971_v47, %v2970_v45  ;;  %v1826_v59 = vadd.f32 %v2969_v26, %v2831_v43 }
 0x3b0   :  { %v1829_v14 = vadd.f32 %v2972_v38, %v2831_v43 }
 0x3ba   :  { %v2989_v16 = vpop.f32.mrb[8].mxu1 }
 0x3bb   :  { %v2990_v19 = vpop.f32.mrb[9].mxu1 }
 0x3bc   :  { %v2991_v51 = vadd.f32 %v2990_v19, %v2989_v16  ;;  %v2992_v55 = vpop.f32.mrb[10].mxu1 }
 0x3bd   :  { %v2993_v63 = vpop.f32.mrb[11].mxu1 }
 0x3be   :  { %v4170_v0 = vadd.f32 %v2991_v51, %v1818_v34  ;;  %v2994_v17 = vadd.f32 %v2993_v63, %v2992_v55 }
 0x3c0   :  { %v4178_v3 = vadd.f32 %v2994_v17, %v1821_v57  ;;  %v1884_v4 = vsel %vm1883_vm5, %v4170_v0, 0.0 }
 0x3c2   :  { %v1885_v5 = vsel %vm1883_vm5, %v4178_v3, 0.0 }
 0x3c3   :  { %v1886_v36 = vadd.f32 %v1885_v5, %v1884_v4 }
 0x3cd   :  { %v2995_v61 = vpop.f32.mrb[12].mxu1 }
 0x3ce   :  { %v2996_v8 = vpop.f32.mrb[13].mxu1 }
 0x3cf   :  { %v2997_v25 = vadd.f32 %v2996_v8, %v2995_v61  ;;  %v2998_v9 = vpop.f32.mrb[14].mxu1  ;;  %v3218_v8 = vld [vmem:[%s4440_s9 + $0x68] sm:$0xff]  }
 0x3d0   :  { %v2999_v31 = vpop.f32.mrb[15].mxu1  ;;  %3011 = vmatprep.subr.bf16.mxu1 %v3218_v8 }
 0x3d1   :  { %v1875_v22 = vadd.f32 %v2997_v25, %v1826_v59  ;;  %v3000_v58 = vadd.f32 %v2999_v31, %v2998_v9  ;;  %3012 = vmatpush3.bf16.msra.mxu1 %v3219_v54 }
 0x3d3   :  { %v1887_v27 = vsel %vm1883_vm5, %v1875_v22, 0.0  ;;  %v1878_v13 = vadd.f32 %v3000_v58, %v1829_v14  ;;  %v3221_v58 = vld [vmem:[%s4440_s9 + $0x30] sm:$0xff]  }
 0x3d4   :  { %v1888_v29 = vadd.f32 %v1887_v27, %v1886_v36  ;;  %v2864_v36 = vld [vmem:[%s4441_s7] ss:$0 sm:$0xff]  ;;  %v3223_v27 = vld [vmem:[%s4440_s9 + $0x78] sm:$0xff]  }
 0x3d5   :  { %v1889_v32 = vsel %vm1883_vm5, %v1878_v13, 0.0 }
 0x3d6   :  { %v1890_v37 = vadd.f32 %v1889_v32, %v1888_v29 }
 0x3d8   :  { %v1891_v39 = vrot.slane %v1890_v37, 4 }
 0x3da   :  { %v1892_v41 = vadd.f32 %v1891_v39, %v1890_v37 }
 0x3dc   :  { %v1893_v42 = vrot.slane %v1892_v41, 2 }
 0x3de   :  { %v1894_v21 = vadd.f32 %v1893_v42, %v1892_v41 }
 0x3e0   :  { %v1895_v35 = vrot.slane %v1894_v21, 1 }
 0x3e2   :  { %v1896_v53 = vadd.f32 %v1895_v35, %v1894_v21 }
 0x3e4   :  { %v1898_v44 = vmul.f32 0.03125, %v1896_v53 }
 0x3e6   :  { %v1899_v11 = vsub.f32 %v4170_v0, %v1898_v44  ;;  %v1900_v26 = vsub.f32 %v4178_v3, %v1898_v44  ;;  %v1901_v45 = vsub.f32 %v1875_v22, %v1898_v44  ;;  %v1902_v47 = vsub.f32 %v1878_v13, %v1898_v44  ;;  %v3220_v22 = vld [vmem:[%s4440_s9 + $0x70] sm:$0xff]   ;;  %v3224_v13 = vld [vmem:[%s4440_s9 + $0xb8] sm:$0xff]  }
 0x3e7   :  { %3013 = vmatprep.subr.bf16.mxu1 %v3220_v22  ;;  %3038 = vmatpush3.bf16.msra.mxu0 %v3224_v13  ;;  %v3232_v22 = vld [vmem:[%s4440_s9 + $0x110] sm:$0xff]  }
 0x3e8   :  { %v1903_v38 = vmul.f32 %v1899_v11, %v1899_v11  ;;  %v1904_v43 = vmul.f32 %v1900_v26, %v1900_v26  ;;  %v1905_v16 = vmul.f32 %v1901_v45, %v1901_v45  ;;  %v1906_v19 = vmul.f32 %v1902_v47, %v1902_v47  ;;  %3014 = vmatpush3.bf16.msra.mxu1 %v3221_v58  ;;  %v3233_v58 = vld [vmem:[%s4440_s9 + $0x180] sm:$0xff]  }
 0x3e9   :  { %3015 = vmatprep.subr.bf16.mxu1 %v3223_v27  ;;  %v3235_v27 = vld [vmem:[%s4440_s9 + $0x1c8] sm:$0xff]  }
 0x3ea   :  { %v1907_v33 = vsel %vm1883_vm5, %v1903_v38, 0.0  ;;  %v1908_v34 = vsel %vm1883_vm5, %v1904_v43, 0.0  ;;  %v1910_v51 = vsel %vm1883_vm5, %v1905_v16, 0.0  ;;  %v1912_v55 = vsel %vm1883_vm5, %v1906_v19, 0.0  ;;  %v3226_v38 = vld [vmem:[%s4440_s9 + $0x140] sm:$0xff]  }
 0x3eb   :  { %v1909_v56 = vadd.f32 %v1908_v34, %v1907_v33 }
 0x3ec   :  { %3016 = vmatpush3.bf16.msra.mxu1 %v3225_v28 }
 0x3ed   :  { %v1911_v63 = vadd.f32 %v1910_v51, %v1909_v56  ;;  %3045 = vmatprep.subr.bf16.mxu1 %v3226_v38  ;;  %v3231_v51 = vld [vmem:[%s4440_s9 + $0x1c0] sm:$0xff]  }
 0x3ee   :  { %3067 = vmatprep.subr.bf16.mxu0 %v3231_v51  ;;  %v3250_v51 = vld [vmem:[%s4440_s9 + $0x178] sm:$0xff]  }
 0x3ef   :  { %v1913_v52 = vadd.f32 %v1912_v55, %v1911_v63 }
 0x3f1   :  { %v1914_v57 = vrot.slane %v1913_v52, 4 }
 0x3f3   :  { %v1915_v0 = vadd.f32 %v1914_v57, %v1913_v52 }
 0x3f5   :  { %v1916_v17 = vrot.slane %v1915_v0, 2 }
 0x3f7   :  { %v1917_v20 = vadd.f32 %v1916_v17, %v1915_v0 }
 0x3f9   :  { %v1918_v1 = vrot.slane %v1917_v20, 1 }
 0x3fb   :  { %v1919_v3 = vadd.f32 %v1918_v1, %v1917_v20 }
 0x3fd   :  { %v1920_v4 = vmul.f32 0.03125, %v1919_v3 }
 0x3ff   :  { %v1921_v5 = vadd.f32 1e-05, %v1920_v4 }
 0x401   :  { %3260 = vrsqrt.f32 %v1921_v5 }
 0x40b   :  { %v3261_v7 = vpop.eup %3260 }
 0x40c   :  { %v1923_v40 = vmul.f32 %v3261_v7, %v1899_v11  ;;  %v1924_v50 = vmul.f32 %v3261_v7, %v1900_v26  ;;  %v1925_v60 = vmul.f32 %v3261_v7, %v1901_v45  ;;  %v1926_v2 = vmul.f32 %v3261_v7, %v1902_v47 }
 0x40e   :  { %v1933_v6 = vmul.f32 %v2864_v36, %v1923_v40  ;;  %v1934_v12 = vmul.f32 %v2864_v36, %v1924_v50  ;;  %v1935_v18 = vmul.f32 %v2864_v36, %v1925_v60  ;;  %v1936_v15 = vmul.f32 %v2864_v36, %v1926_v2 }
 0x410   :  { %v1943_v46 = vadd.f32 %v2865_v49, %v1933_v6  ;;  %v1944_v30 = vadd.f32 %v2865_v49, %v1934_v12  ;;  %v1945_v61 = vadd.f32 %v2865_v49, %v1935_v18  ;;  %v1946_v48 = vadd.f32 %v2865_v49, %v1936_v15 }
 0x412   :  { %vm1947_vm6 = vcmp.gt.f32.partialorder %v1943_v46, 0.0  ;;  %vm1948_vm7 = vcmp.gt.f32.partialorder %v1944_v30, 0.0  ;;  %vm1949_vm8 = vcmp.gt.f32.partialorder %v1945_v61, 0.0  ;;  %vm1950_vm9 = vcmp.gt.f32.partialorder %v1946_v48, 0.0 }
 0x413   :  { %v1951_v59 = vmul.f32 0.2, %v1943_v46  ;;  %v1952_v25 = vmul.f32 0.2, %v1944_v30  ;;  %v1953_v9 = vmul.f32 0.2, %v1945_v61 }
 0x414   :  { %v1954_v62 = vmul.f32 0.2, %v1946_v48 }
 0x415   :  { %v1955_v31 = vsel %vm1947_vm6, %v1943_v46, %v1951_v59  ;;  %v1956_v10 = vsel %vm1948_vm7, %v1944_v30, %v1952_v25  ;;  %v1957_v14 = vsel %vm1949_vm8, %v1945_v61, %v1953_v9  ;;  %v3227_v30 = vld [vmem:[%s4440_s9 + $0x100] sm:$0xff]   ;;  %v3229_v25 = vld [vmem:[%s4440_s9 + $0x108] sm:$0xff]  }
 0x416   :  { %v1958_v23 = vsel %vm1950_vm9, %v1946_v48, %v1954_v62  ;;  %1959 = vst.msk [vmem:[#allocation4] sm:$0xff] %vm1883_vm5, %v1955_v31  ;;  %1960 = vst.msk [vmem:[#allocation4 + $0x8] sm:$0xff] %vm1883_vm5, %v1956_v10  ;;  %v3228_v48 = vld [vmem:[%s4440_s9 + $0x148] sm:$0xff]   ;;  %v3230_v62 = vld [vmem:[%s4440_s9 + $0x150] sm:$0xff]  }
 0x417   :  { %1961 = vst.msk [vmem:[#allocation4 + $0x10] sm:$0xff] %vm1883_vm5, %v1957_v14  ;;  %1962 = vst.msk [vmem:[#allocation4 + $0x18] sm:$0xff] %vm1883_vm5, %v1958_v23 }
 0x41d   :  { %v1983_v32 = vld [vmem:[#allocation4 + $0x3] sm:$0x1]  ;;  %v1974_v39 = vld [vmem:[#allocation4 + $0x1] sm:$0x1]  ;;  %v1981_v42 = vld [vmem:[#allocation4 + $0x2] sm:$0x1] }
 0x41e   :  { %v2047_v29 = vld [vmem:[#allocation4 + $0x13] sm:$0x1]  ;;  %1985 = vrot.lane.b32.xlu0 %v1983_v32, %s3265_s27  ;;  %v2039_v37 = vld [vmem:[#allocation4 + $0x11] sm:$0x1]  ;;  %v2045_v41 = vld [vmem:[#allocation4 + $0x12] sm:$0x1] }
 0x41f   :  { %2049 = vrot.lane.b32.xlu1 %v2047_v29, %s3265_s27  ;;  %v2063_v21 = vld [vmem:[#allocation4 + $0x17] sm:$0x1]  ;;  %2046 = vst.msk [vmem:[#allocation5 + $0x9] sm:$0x1] %vm1972_vm10, %v2045_v41  ;;  %1982 = vst.msk [vmem:[#allocation5 + $0x8] sm:$0x1] %vm1972_vm10, %v1981_v42 }
 0x420   :  { %v2037_v35 = vld [vmem:[#allocation4 + $0x10] sm:$0x1]  ;;  %v1971_v53 = vld [vmem:[#allocation4] sm:$0x1]  ;;  %v2061_v44 = vld [vmem:[#allocation4 + $0x16] sm:$0x1] }
 0x421   :  { %2038 = vst.msk [vmem:[#allocation5 + $0x1] sm:$0x1] %vm1972_vm10, %v2037_v35  ;;  %1973 = vst.msk [vmem:[#allocation5] sm:$0x1] %vm1972_vm10, %v1971_v53  ;;  %v1997_v11 = vld [vmem:[#allocation4 + $0x6] sm:$0x1] }
 0x422   :  { %1976 = vrot.lane.b32.xlu0 %v1974_v39, %s3265_s27  ;;  %2062 = vst.msk [vmem:[#allocation5 + $0x19] sm:$0x1] %vm1972_vm10, %v2061_v44  ;;  %v2053_v26 = vld [vmem:[#allocation4 + $0x14] sm:$0x1]  ;;  %v1989_v45 = vld [vmem:[#allocation4 + $0x4] sm:$0x1] }
 0x423   :  { %2041 = vrot.lane.b32.xlu1 %v2039_v37, %s3265_s27  ;;  %v1999_v47 = vld [vmem:[#allocation4 + $0x7] sm:$0x1]  ;;  %1998 = vst.msk [vmem:[#allocation5 + $0x18] sm:$0x1] %vm1972_vm10, %v1997_v11  ;;  %2054 = vst.msk [vmem:[#allocation5 + $0x11] sm:$0x1] %vm1972_vm10, %v2053_v26 }
 0x424   :  { %1990 = vst.msk [vmem:[#allocation5 + $0x10] sm:$0x1] %vm1972_vm10, %v1989_v45  ;;  %v2077_v43 = vld [vmem:[#allocation4 + $0x1a] sm:$0x1]  ;;  %v2013_v16 = vld [vmem:[#allocation4 + $0xa] sm:$0x1] }
 0x425   :  { %2078 = vst.msk [vmem:[#allocation5 + $0x29] sm:$0x1] %vm1972_vm10, %v2077_v43  ;;  %2014 = vst.msk [vmem:[#allocation5 + $0x28] sm:$0x1] %vm1972_vm10, %v2013_v16  ;;  %v2069_v19 = vld [vmem:[#allocation4 + $0x18] sm:$0x1] }
 0x426   :  { %2001 = vrot.lane.b32.xlu0 %v1999_v47, %s3265_s27  ;;  %v2005_v33 = vld [vmem:[#allocation4 + $0x8] sm:$0x1]  ;;  %v2055_v34 = vld [vmem:[#allocation4 + $0x15] sm:$0x1]  ;;  %2070 = vst.msk [vmem:[#allocation5 + $0x21] sm:$0x1] %vm1972_vm10, %v2069_v19 }
 0x427   :  { %2065 = vrot.lane.b32.xlu1 %v2063_v21, %s3265_s27  ;;  %2006 = vst.msk [vmem:[#allocation5 + $0x20] sm:$0x1] %vm1972_vm10, %v2005_v33  ;;  %v1991_v55 = vld [vmem:[#allocation4 + $0x5] sm:$0x1]  ;;  %v2093_v56 = vld [vmem:[#allocation4 + $0x1e] sm:$0x1] }
 0x428   :  { %v2029_v63 = vld [vmem:[#allocation4 + $0xe] sm:$0x1]  ;;  %2094 = vst.msk [vmem:[#allocation5 + $0x39] sm:$0x1] %vm1972_vm10, %v2093_v56  ;;  %v2085_v52 = vld [vmem:[#allocation4 + $0x1c] sm:$0x1] }
 0x429   :  { %2030 = vst.msk [vmem:[#allocation5 + $0x38] sm:$0x1] %vm1972_vm10, %v2029_v63  ;;  %2086 = vst.msk [vmem:[#allocation5 + $0x31] sm:$0x1] %vm1972_vm10, %v2085_v52  ;;  %v2021_v57 = vld [vmem:[#allocation4 + $0xc] sm:$0x1] }
 0x42a   :  { %1993 = vrot.lane.b32.xlu0 %v1991_v55, %s3265_s27  ;;  %2022 = vst.msk [vmem:[#allocation5 + $0x30] sm:$0x1] %vm1972_vm10, %v2021_v57  ;;  %v2079_v0 = vld [vmem:[#allocation4 + $0x1b] sm:$0x1]  ;;  %v2015_v17 = vld [vmem:[#allocation4 + $0xb] sm:$0x1] }
 0x42b   :  { %2057 = vrot.lane.b32.xlu1 %v2055_v34, %s3265_s27  ;;  %v2071_v20 = vld [vmem:[#allocation4 + $0x19] sm:$0x1]  ;;  %v2007_v1 = vld [vmem:[#allocation4 + $0x9] sm:$0x1]  ;;  %v2095_v3 = vld [vmem:[#allocation4 + $0x1f] sm:$0x1] }
 0x42c   :  { %v2031_v4 = vld [vmem:[#allocation4 + $0xf] sm:$0x1]  ;;  %v2087_v5 = vld [vmem:[#allocation4 + $0x1d] sm:$0x1]  ;;  %v2023_v7 = vld [vmem:[#allocation4 + $0xd] sm:$0x1] }
 0x42d   :  { %v3236_v29 = vld [vmem:[%s4440_s9 + $0x118] sm:$0xff]   ;;  %v3237_v37 = vld [vmem:[%s4440_s9 + $0x188] sm:$0xff]   ;;  %v3238_v41 = vld [vmem:[%s4440_s9 + $0x160] sm:$0xff]  }
 0x42e   :  { %2017 = vrot.lane.b32.xlu0 %v2015_v17, %s3265_s27  ;;  %v3239_v42 = vld [vmem:[%s4440_s9 + $0x1d0] sm:$0xff]   ;;  %v3240_v53 = vld [vmem:[%s4440_s9 + $0x120] sm:$0xff]   ;;  %v3242_v11 = vld [vmem:[%s4440_s9 + $0x168] sm:$0xff]  }
 0x42f   :  { %2081 = vrot.lane.b32.xlu1 %v2079_v0, %s3265_s27  ;;  %v3241_v44 = vld [vmem:[%s4440_s9 + $0x190] sm:$0xff]   ;;  %v3243_v26 = vld [vmem:[%s4440_s9 + $0x1d8] sm:$0xff]   ;;  %v3244_v45 = vld [vmem:[%s4440_s9 + $0x128] sm:$0xff]  }
 0x430   :  { %v3245_v47 = vld [vmem:[%s4440_s9 + $0x198] sm:$0xff]   ;;  %v3246_v16 = vld [vmem:[%s4440_s9 + $0x170] sm:$0xff]   ;;  %v3247_v19 = vld [vmem:[%s4440_s9 + $0x1e0] sm:$0xff]  }
 0x431   :  { %v3248_v33 = vld [vmem:[%s4440_s9 + $0x130] sm:$0xff]   ;;  %v3249_v34 = vld [vmem:[%s4440_s9 + $0x1a0] sm:$0xff]   ;;  %v3251_v55 = vld [vmem:[%s4440_s9 + $0x1e8] sm:$0xff]  }
 0x432   :  { %2009 = vrot.lane.b32.xlu0 %v2007_v1, %s3265_s27  ;;  %v3252_v56 = vld [vmem:[%s4440_s9 + $0x138] sm:$0xff]   ;;  %v3253_v63 = vld [vmem:[%s4440_s9 + $0x1a8] sm:$0xff]   ;;  %v3254_v52 = vld [vmem:[%s4440_s9 + $0x1f0] sm:$0xff]  }
 0x433   :  { %2073 = vrot.lane.b32.xlu1 %v2071_v20, %s3265_s27  ;;  %v3255_v0 = vld [vmem:[%s4440_s9 + $0x1b0] sm:$0xff]   ;;  %v3256_v20 = vld [vmem:[%s4440_s9 + $0x1f8] sm:$0xff]  }
 0x434   :  { %v3257_v1 = vld [vmem:[%s4440_s9 + $0x1b8] sm:$0xff]  }
 0x436   :  { %2033 = vrot.lane.b32.xlu0 %v2031_v4, %s3265_s27 }
 0x437   :  { %2097 = vrot.lane.b32.xlu1 %v2095_v3, %s3265_s27 }
 0x43a   :  { %2025 = vrot.lane.b32.xlu0 %v2023_v7, %s3265_s27 }
 0x43b   :  { %2089 = vrot.lane.b32.xlu1 %v2087_v5, %s3265_s27 }
 0x490   :  { %v1986_v40 = vpop.permute.xlu0 %1985 }
 0x491   :  { %v2050_v36 = vpop.permute.xlu1 %2049  ;;  %1988 = vst.msk [vmem:[#allocation5 + $0x8] sm:$0x1] %vm1979_vm11, %v1986_v40 }
 0x492   :  { %2052 = vst.msk [vmem:[#allocation5 + $0x9] sm:$0x1] %vm1979_vm11, %v2050_v36 }
 0x494   :  { %v1977_v60 = vpop.permute.xlu0 %1976 }
 0x495   :  { %v2042_v50 = vpop.permute.xlu1 %2041  ;;  %1980 = vst.msk [vmem:[#allocation5] sm:$0x1] %vm1979_vm11, %v1977_v60  ;;  %v2866_v60 = vld [vmem:[%s4443_s10] ss:$0 sm:$0xff] }
 0x496   :  { %2044 = vst.msk [vmem:[#allocation5 + $0x1] sm:$0x1] %vm1979_vm11, %v2042_v50 }
 0x498   :  { %v2002_v49 = vpop.permute.xlu0 %2001 }
 0x499   :  { %v2066_v2 = vpop.permute.xlu1 %2065  ;;  %v2102_v6 = vld [vmem:[#allocation5 + $0x8] sm:$0xff]  ;;  %2004 = vst.msk [vmem:[#allocation5 + $0x18] sm:$0x1] %vm1979_vm11, %v2002_v49 }
 0x49a   :  { %2068 = vst.msk [vmem:[#allocation5 + $0x19] sm:$0x1] %vm1979_vm11, %v2066_v2  ;;  %v2110_v12 = vpack.c.bf16 %v2102_v6, %v2102_v6 }
 0x49c   :  { %2668 = vmatprep.mubr.bf16.mxu1 %v2110_v12  ;;  %v1994_v15 = vpop.permute.xlu0 %1993 }
 0x49d   :  { %v2058_v18 = vpop.permute.xlu1 %2057  ;;  %v2101_v46 = vld [vmem:[#allocation5] sm:$0xff]  ;;  %1996 = vst.msk [vmem:[#allocation5 + $0x10] sm:$0x1] %vm1979_vm11, %v1994_v15 }
 0x49e   :  { %2060 = vst.msk [vmem:[#allocation5 + $0x11] sm:$0x1] %vm1979_vm11, %v2058_v18  ;;  %v2109_v61 = vpack.c.bf16 %v2101_v46, %v2101_v46 }
 0x4a0   :  { %2669 = vmatmul.mubr.bf16.vlgmr.msra.gmra.mrb[16].mxu1 %v2109_v61  ;;  %v2018_v54 = vpop.permute.xlu0 %2017 }
 0x4a1   :  { %3046 = vmatpush3.bf16.msra.mxu1 %v3227_v30  ;;  %v2082_v8 = vpop.permute.xlu1 %2081  ;;  %v2104_v59 = vld [vmem:[#allocation5 + $0x18] sm:$0xff]  ;;  %2020 = vst.msk [vmem:[#allocation5 + $0x28] sm:$0x1] %vm1979_vm11, %v2018_v54 }
 0x4a2   :  { %2084 = vst.msk [vmem:[#allocation5 + $0x29] sm:$0x1] %vm1979_vm11, %v2082_v8  ;;  %3047 = vmatprep.subr.bf16.mxu1 %v3228_v48  ;;  %v2112_v9 = vpack.c.bf16 %v2104_v59, %v2104_v59 }
 0x4a4   :  { %2708 = vmatprep.mubr.bf16.mxu0 %v2112_v9  ;;  %v2010_v10 = vpop.permute.xlu0 %2009 }
 0x4a5   :  { %3048 = vmatpush3.bf16.msra.mxu1 %v3229_v25  ;;  %v2074_v31 = vpop.permute.xlu1 %2073  ;;  %v2103_v14 = vld [vmem:[#allocation5 + $0x10] sm:$0xff]  ;;  %2012 = vst.msk [vmem:[#allocation5 + $0x20] sm:$0x1] %vm1979_vm11, %v2010_v10 }
 0x4a6   :  { %2076 = vst.msk [vmem:[#allocation5 + $0x21] sm:$0x1] %vm1979_vm11, %v2074_v31  ;;  %3049 = vmatprep.subr.bf16.mxu1 %v3230_v62  ;;  %v2111_v23 = vpack.c.bf16 %v2103_v14, %v2103_v14 }
 0x4a8   :  { %2709 = vmatmul.mubr.bf16.vlgmr.msra.gmra.mrb[52].mxu0 %v2111_v23  ;;  %v2034_v28 = vpop.permute.xlu0 %2033 }
 0x4a9   :  { %3050 = vmatpush3.bf16.msra.mxu1 %v3232_v22  ;;  %3068 = vmatpush3.bf16.msra.mxu0 %v3233_v58  ;;  %v2098_v13 = vpop.permute.xlu1 %2097  ;;  %v2106_v32 = vld [vmem:[#allocation5 + $0x28] sm:$0xff]  ;;  %2036 = vst.msk [vmem:[#allocation5 + $0x38] sm:$0x1] %vm1979_vm11, %v2034_v28 }
 0x4aa   :  { %2100 = vst.msk [vmem:[#allocation5 + $0x39] sm:$0x1] %vm1979_vm11, %v2098_v13  ;;  %3051 = vmatprep.subr.bf16.mxu1 %v3234_v24  ;;  %3069 = vmatprep.subr.bf16.mxu0 %v3235_v27  ;;  %v2114_v39 = vpack.c.bf16 %v2106_v32, %v2106_v32 }
 0x4ac   :  { %2748 = vmatprep.mubr.bf16.mxu1 %v2114_v39  ;;  %v2026_v35 = vpop.permute.xlu0 %2025 }
 0x4ad   :  { %3052 = vmatpush3.bf16.msra.mxu1 %v3236_v29  ;;  %3070 = vmatpush3.bf16.msra.mxu0 %v3237_v37  ;;  %v2090_v21 = vpop.permute.xlu1 %2089  ;;  %2028 = vst.msk [vmem:[#allocation5 + $0x30] sm:$0x1] %vm1979_vm11, %v2026_v35  ;;  %v2105_v57 = vld [vmem:[#allocation5 + $0x20] sm:$0xff] }
 0x4ae   :  { %2092 = vst.msk [vmem:[#allocation5 + $0x31] sm:$0x1] %vm1979_vm11, %v2090_v21  ;;  %3053 = vmatprep.subr.bf16.mxu1 %v3238_v41  ;;  %3071 = vmatprep.subr.bf16.mxu0 %v3239_v42  ;;  %v2113_v17 = vpack.c.bf16 %v2105_v57, %v2105_v57 }
 0x4b1   :  { %3054 = vmatpush3.bf16.msra.mxu1 %v3240_v53  ;;  %3072 = vmatpush3.bf16.msra.mxu0 %v3241_v44  ;;  %v2108_v38 = vld [vmem:[#allocation5 + $0x38] sm:$0xff] }
 0x4b2   :  { %3055 = vmatprep.subr.bf16.mxu1 %v3242_v11  ;;  %3073 = vmatprep.subr.bf16.mxu0 %v3243_v26  ;;  %v2116_v43 = vpack.c.bf16 %v2108_v38, %v2108_v38 }
 0x4b4   :  { %2788 = vmatprep.mubr.bf16.mxu0 %v2116_v43 }
 0x4b5   :  { %3056 = vmatpush3.bf16.msra.mxu1 %v3244_v45  ;;  %3074 = vmatpush3.bf16.msra.mxu0 %v3245_v47  ;;  %v2107_v3 = vld [vmem:[#allocation5 + $0x30] sm:$0xff] }
 0x4b6   :  { %3057 = vmatprep.subr.bf16.mxu1 %v3246_v16  ;;  %3075 = vmatprep.subr.bf16.mxu0 %v3247_v19  ;;  %v2115_v4 = vpack.c.bf16 %v2107_v3, %v2107_v3 }
 0x4b9   :  { %3058 = vmatpush3.bf16.msra.mxu1 %v3248_v33  ;;  %3076 = vmatpush3.bf16.msra.mxu0 %v3249_v34 }
 0x4ba   :  { %3059 = vmatprep.subr.bf16.mxu1 %v3250_v51  ;;  %3077 = vmatprep.subr.bf16.mxu0 %v3251_v55 }
 0x4bd   :  { %3060 = vmatpush3.bf16.msra.mxu1 %v3252_v56  ;;  %3078 = vmatpush3.bf16.msra.mxu0 %v3253_v63 }
 0x4be   :  { %3079 = vmatprep.subr.bf16.mxu0 %v3254_v52 }
 0x4c0   :  { %2749 = vmatmul.mubr.bf16.vlgmr.msra.gmra.mrb[20].mxu1 %v2113_v17 }
 0x4c1   :  { %3080 = vmatpush3.bf16.msra.mxu0 %v3255_v0 }
 0x4c2   :  { %3081 = vmatprep.subr.bf16.mxu0 %v3256_v20 }
 0x4c5   :  { %3082 = vmatpush3.bf16.msra.mxu0 %v3257_v1 }
 0x4c8   :  { %2789 = vmatmul.mubr.bf16.vlgmr.msra.gmra.mrb[56].mxu0 %v2115_v4 }
 0x573   :  { %v3017_v5 = vpop.f32.mrb[16].mxu1 }
 0x574   :  { %v3018_v7 = vpop.f32.mrb[17].mxu1 }
 0x575   :  { %v3019_v36 = vadd.f32 %v3018_v7, %v3017_v5  ;;  %v3020_v40 = vpop.f32.mrb[18].mxu1 }
 0x576   :  { %v3021_v50 = vpop.f32.mrb[19].mxu1 }
 0x577   :  { %v2671_v6 = vadd.f32 %v3019_v36, %v2866_v60 }
 0x57b   :  { %v3039_v2 = vpop.f32.mrb[52].mxu0 }
 0x57c   :  { %v3040_v49 = vpop.f32.mrb[53].mxu0 }
 0x57d   :  { %v3041_v12 = vadd.f32 %v3040_v49, %v3039_v2  ;;  %v3042_v18 = vpop.f32.mrb[54].mxu0 }
 0x57e   :  { %v3043_v15 = vpop.f32.mrb[55].mxu0 }
 0x57f   :  { %v2711_v46 = vadd.f32 %v3041_v12, %v2671_v6 }
 0x593   :  { %v3061_v30 = vpop.f32.mrb[20].mxu1 }
 0x594   :  { %v3062_v61 = vpop.f32.mrb[21].mxu1 }
 0x595   :  { %v3063_v48 = vadd.f32 %v3062_v61, %v3061_v30  ;;  %v3064_v8 = vpop.f32.mrb[22].mxu1 }
 0x596   :  { %v3065_v54 = vpop.f32.mrb[23].mxu1 }
 0x597   :  { %v2751_v59 = vadd.f32 %v3063_v48, %v2711_v46 }
 0x59b   :  { %v3083_v25 = vpop.f32.mrb[56].mxu0 }
 0x59c   :  { %v3084_v9 = vpop.f32.mrb[57].mxu0 }
 0x59d   :  { %v3085_v62 = vadd.f32 %v3084_v9, %v3083_v25  ;;  %v3086_v31 = vpop.f32.mrb[58].mxu0 }
 0x59e   :  { %v3087_v10 = vpop.f32.mrb[59].mxu0 }
 0x59f   :  { %v2791_v14 = vadd.f32 %v3085_v62, %v2751_v59 }
 0x5a1   :  { %2796 = vst [vmem:[%s4444_s11] sm:$0xff] %v2791_v14 }

</bundles_post_ra>
